<compile_context>
chip_gen: v6e
topology: v6e:2x2x1
jax: 0.10.0
libtpu: 0.0.40
codegen_flags: <defaults>
</compile_context>

<pallas_src>
import math
import functools

import jax
import jax.numpy as jnp
from jax.experimental import pallas as pl
from jax.experimental.pallas import tpu as pltpu

_BF16 = jnp.bfloat16
_NEG = -1e30            # finite large-negative additive mask (exp underflows to exactly 0)
_EPS = 1e-6             # torch.nn.LayerNorm(eps=1e-06)
_LANE = 128
_SUBLANE = 8


def _round_up(x, m):
    return ((x + m - 1) // m) * m


# ----------------------------------------------------------------------------------------------
# Fused decoder-layer kernel: self-attention + cross-attention + FFN (+ residuals + 3 LayerNorms)
# grid = (B,); each grid step processes the full (Ltp, Dp) tile of one batch element.
# ----------------------------------------------------------------------------------------------
def _decoder_layer_kernel(
        x_ref, enc_ref, keep_ref, kvbias_ref,
        sa_wqkv_ref, sa_bqkv_ref, sa_wo_ref, sa_bo_ref, ln1_g_ref, ln1_b_ref,
        ca_wq_ref, ca_bq_ref, ca_wkv_ref, ca_bkv_ref, ca_wo_ref, ca_bo_ref,
        ln2_g_ref, ln2_b_ref,
        ff_w1_ref, ff_b1_ref, ff_w2_ref, ff_b2_ref, ln3_g_ref, ln3_b_ref,
        o_ref, *, num_head, dhp, d_real, eps):
    x = x_ref[0]                      # (Ltp, Dp) f32, residual stream (pad lanes are zero)
    enc = enc_ref[0]                  # (Lsp, Dp) f32
    keep = keep_ref[0]                # (Ltp, 1)  f32, 1.0 = valid target token
    kvbias = kvbias_ref[0]            # (1, Lsp)  f32, -1e30 on padded source keys
    Lt, Dp = x.shape
    QH = num_head * dhp
    inv_d = 1.0 / d_real

    # lane mask for LayerNorm statistics over the REAL model dim only
    lane = jax.lax.broadcasted_iota(jnp.int32, (1, Dp), 1)
    dmask = (lane < d_real).astype(jnp.float32)

    def mm(a, w):                     # bf16 operands, f32 accumulation on the MXU
        return jnp.dot(a.astype(_BF16), w, preferred_element_type=jnp.float32)

    def layernorm(y, g, b):
        mu = jnp.sum(y, axis=-1, keepdims=True) * inv_d
        d = (y - mu) * dmask
        var = jnp.sum(d * d, axis=-1, keepdims=True) * inv_d
        return d * jax.lax.rsqrt(var + eps) * g + b

    def attention(q, k, v, bias):
        # q: (Lq, QH), k/v: (Lk, QH), bias broadcastable to (Lq, Lk).
        qb = q.astype(_BF16)
        kb = k.astype(_BF16)
        vb = v.astype(_BF16)
        ctxs = []
        for h in range(num_head):               # static unroll; 128-lane-aligned head slots
            sl = slice(h * dhp, (h + 1) * dhp)
            s = jax.lax.dot_general(qb[:, sl], kb[:, sl],
                                    (((1,), (1,)), ((), ())),
                                    preferred_element_type=jnp.float32)
            s = s + bias
            s = s - jnp.max(s, axis=-1, keepdims=True)
            p = jnp.exp(s)
            p = p / jnp.sum(p, axis=-1, keepdims=True)      # exact division (no approx recip)
            ctxs.append(jnp.dot(p.astype(_BF16), vb[:, sl],
                                preferred_element_type=jnp.float32))
        # concat heads, THEN one output projection (done by the caller)
        return jnp.concatenate(ctxs, axis=-1)               # (Lq, QH) f32

    # ---------------- self-attention sublayer (causal mask replaces padding mask) -------------
    qkv = mm(x, sa_wqkv_ref[...]) + sa_bqkv_ref[...]         # fused q|k|v, scale folded into q
    q = qkv[:, :QH]
    k = qkv[:, QH:2 * QH] * keep                             # masked_fill of padded key rows
    v = qkv[:, 2 * QH:] * keep
    rows = jax.lax.broadcasted_iota(jnp.int32, (Lt, Lt), 0)
    cols = jax.lax.broadcasted_iota(jnp.int32, (Lt, Lt), 1)
    causal = jnp.where(cols > rows, _NEG, 0.0).astype(jnp.float32)
    ctx = attention(q, k, v, causal)
    y = mm(ctx, sa_wo_ref[...]) + sa_bo_ref[...]
    x1 = layernorm(y * keep + x, ln1_g_ref[...], ln1_b_ref[...])

    # ---------------- cross-attention sublayer -------------------------------------------------
    q = mm(x1, ca_wq_ref[...]) + ca_bq_ref[...]               # scale folded into wq/bq
    kv = mm(enc, ca_wkv_ref[...]) + ca_bkv_ref[...]           # fused k|v of encoder output
    # padded source keys handled solely by the -1e30 additive bias (k/v zeroing is redundant)
    ctx = attention(q, kv[:, :QH], kv[:, QH:], kvbias)
    y = mm(ctx, ca_wo_ref[...]) + ca_bo_ref[...]
    x2 = layernorm(y * keep + x1, ln2_g_ref[...], ln2_b_ref[...])

    # ---------------- feed-forward sublayer -----------------------------------------------------
    h = jnp.maximum(mm(x2, ff_w1_ref[...]) + ff_b1_ref[...], 0.0)
    y = mm(h, ff_w2_ref[...]) + ff_b2_ref[...]
    o_ref[0] = layernorm(y * keep + x2, ln3_g_ref[...], ln3_b_ref[...])


def _decoder_layer_pallas(x, enc, keep, kvbias, lw, *, num_head, dhp, d_real, eps=_EPS):
    B, Ltp, Dp = x.shape
    Lsp = enc.shape[1]
    QH = num_head * dhp
    Fp = lw["ff_w1"].shape[1]

    def act_spec(shape):
        return pl.BlockSpec(shape, lambda b: (b,) + (0,) * (len(shape) - 1))

    def const_spec(shape):
        # TODO(synk): pipeline_mode=pl.Buffered(1) here at production sizes (constant block index)
        return pl.BlockSpec(shape, lambda b: (0,) * len(shape))

    kernel = functools.partial(_decoder_layer_kernel, num_head=num_head, dhp=dhp,
                               d_real=d_real, eps=eps)
    return pl.pallas_call(
        kernel,
        out_shape=jax.ShapeDtypeStruct((B, Ltp, Dp), jnp.float32),
        grid=(B,),
        in_specs=[
            act_spec((1, Ltp, Dp)),          # x (residual stream)
            act_spec((1, Lsp, Dp)),          # encoder output
            act_spec((1, Ltp, 1)),           # tgt keep mask
            act_spec((1, 1, Lsp)),           # src additive key bias
            const_spec((Dp, 3 * QH)), const_spec((1, 3 * QH)),      # sa wqkv / bqkv
            const_spec((QH, Dp)), const_spec((1, Dp)),              # sa wo / bo
            const_spec((1, Dp)), const_spec((1, Dp)),               # ln1 gamma / beta
            const_spec((Dp, QH)), const_spec((1, QH)),              # ca wq / bq
            const_spec((Dp, 2 * QH)), const_spec((1, 2 * QH)),      # ca wkv / bkv
            const_spec((QH, Dp)), const_spec((1, Dp)),              # ca wo / bo
            const_spec((1, Dp)), const_spec((1, Dp)),               # ln2 gamma / beta
            const_spec((Dp, Fp)), const_spec((1, Fp)),              # ff w1 / b1
            const_spec((Fp, Dp)), const_spec((1, Dp)),              # ff w2 / b2
            const_spec((1, Dp)), const_spec((1, Dp)),               # ln3 gamma / beta
        ],
        out_specs=act_spec((1, Ltp, Dp)),
        compiler_params=pltpu.CompilerParams(
            dimension_semantics=("parallel",),
            vmem_limit_bytes=32 * 1024 * 1024),
    )(x, enc, keep, kvbias,
      lw["sa_wqkv"], lw["sa_bqkv"], lw["sa_wo"], lw["sa_bo"], lw["ln1_g"], lw["ln1_b"],
      lw["ca_wq"], lw["ca_bq"], lw["ca_wkv"], lw["ca_bkv"], lw["ca_wo"], lw["ca_bo"],
      lw["ln2_g"], lw["ln2_b"],
      lw["ff_w1"], lw["ff_b1"], lw["ff_w2"], lw["ff_b2"], lw["ln3_g"], lw["ln3_b"])


# ----------------------------------------------------------------------------------------------
# Pure-JAX reference (same math / same bf16 cast pattern, unpadded & unfused weights)
# ----------------------------------------------------------------------------------------------
def _ref_linear(x, w, b):
    return jnp.einsum("bld,de->ble", x.astype(_BF16), w.astype(_BF16),
                      preferred_element_type=jnp.float32) + b


def _ref_layernorm(y, g, b, eps=_EPS):
    mu = jnp.mean(y, axis=-1, keepdims=True)
    d = y - mu
    var = jnp.mean(d * d, axis=-1, keepdims=True)
    return d * jax.lax.rsqrt(var + eps) * g + b


def _ref_mha(q, k, v, bias, num_head):
    dh = q.shape[-1] // num_head
    outs = []
    for h in range(num_head):
        sl = slice(h * dh, (h + 1) * dh)
        s = jnp.einsum("bqd,bkd->bqk", q[..., sl].astype(_BF16), k[..., sl].astype(_BF16),
                       preferred_element_type=jnp.float32) + bias
        s = s - jnp.max(s, axis=-1, keepdims=True)
        p = jnp.exp(s)
        p = p / jnp.sum(p, axis=-1, keepdims=True)
        outs.append(jnp.einsum("bqk,bkd->bqd", p.astype(_BF16), v[..., sl].astype(_BF16),
                               preferred_element_type=jnp.float32))
    return jnp.concatenate(outs, axis=-1)


def _ref_layer(x, enc, keep, kvbias, lp, num_head, eps=_EPS):
    Lt = x.shape[1]
    # self-attention (subsequent mask replaces the padding mask, as in the torch module)
    q = _ref_linear(x, lp["sa_wq"], lp["sa_bq"])
    k = _ref_linear(x, lp["sa_wk"], lp["sa_bk"]) * keep
    v = _ref_linear(x, lp["sa_wv"], lp["sa_bv"]) * keep
    causal = jnp.where(jnp.arange(Lt)[None, :] > jnp.arange(Lt)[:, None],
                       _NEG, 0.0).astype(jnp.float32)
    ctx = _ref_mha(q, k, v, causal[None], num_head)
    y = _ref_linear(ctx, lp["sa_wo"], lp["sa_bo"])
    x = _ref_layernorm(y * keep + x, lp["ln1_g"], lp["ln1_b"], eps)
    # cross-attention
    q = _ref_linear(x, lp["ca_wq"], lp["ca_bq"])
    k = _ref_linear(enc, lp["ca_wk"], lp["ca_bk"])
    v = _ref_linear(enc, lp["ca_wv"], lp["ca_bv"])
    ctx = _ref_mha(q, k, v, kvbias, num_head)
    y = _ref_linear(ctx, lp["ca_wo"], lp["ca_bo"])
    x = _ref_layernorm(y * keep + x, lp["ln2_g"], lp["ln2_b"], eps)
    # feed-forward
    h = jnp.maximum(_ref_linear(x, lp["ff_w1"], lp["ff_b1"]), 0.0)
    y = _ref_linear(h, lp["ff_w2"], lp["ff_b2"])
    return _ref_layernorm(y * keep + x, lp["ln3_g"], lp["ln3_b"], eps)


# ----------------------------------------------------------------------------------------------
# Model forward (embedding / PE glue + per-layer fused kernel)
# ----------------------------------------------------------------------------------------------
def decoder_forward(params, prep, input_ids, encoder_output, src_mask, time_step=0,
                    use_pallas=True):
    B, Lt = input_ids.shape
    D = params["model_dim"]
    H = params["num_head"]

    tgt_mask = input_ids == 0                                           # True = padded target
    keep = jnp.logical_not(tgt_mask).astype(jnp.float32)[..., None]     # (B, Lt, 1)

    # embedding + positional encoding; dropout == identity (eval mode)
    x = params["embedding"][input_ids] + params["pe"][time_step:time_step + Lt][None]
    x = x * keep                                                        # PositionalEncoding masked_fill_

    if not use_pallas:
        kvbias = (src_mask.astype(jnp.float32) * _NEG)[:, None, :]      # (B, 1, Ls)
        for lp in params["layers"]:
            x = _ref_layer(x, encoder_output, keep, kvbias, lp, H)
        return x

    Dp, dhp = prep["Dp"], prep["dhp"]
    Ls = encoder_output.shape[1]
    Ltp = _round_up(Lt, _SUBLANE)
    Lsp = _round_up(Ls, _SUBLANE)

    # lane-/sublane-pad activations and masks (padded rows never contaminate real rows:
    # causal mask excludes future padded targets; -1e30 bias excludes padded source keys)
    xp = jnp.zeros((B, Ltp, Dp), jnp.float32).at[:, :Lt, :D].set(x)
    keep_p = jnp.zeros((B, Ltp, 1), jnp.float32).at[:, :Lt, :].set(keep)
    encp = jnp.zeros((B, Lsp, Dp), jnp.float32).at[:, :Ls, :D].set(encoder_output)
    srcm = jnp.ones((B, Lsp), jnp.float32).at[:, :Ls].set(src_mask.astype(jnp.float32))
    kvbias_p = (srcm * _NEG)[:, None, :]                                # (B, 1, Lsp)

    for lw in prep["layers"]:
        xp = _decoder_layer_pallas(xp, encp, keep_p, kvbias_p, lw,
                                   num_head=H, dhp=dhp, d_real=D)
    return xp[:, :Lt, :D]


# ----------------------------------------------------------------------------------------------
# Parameter init (logical, unpadded) + preparation of padded / fused / bf16 kernel weights
# ----------------------------------------------------------------------------------------------
def init_params(key, vocab_size, model_dim, ff_dim, num_layers, num_head, max_len=1000):
    assert model_dim % num_head == 0
    dh = model_dim // num_head
    scale = 1.0 / math.sqrt(dh)        # folded into the q projections
    keys = jax.random.split(key, 1 + num_layers)

    emb = jax.random.normal(keys[0], (vocab_size, model_dim), jnp.float32) * 0.1
    emb = emb.at[0].set(0.0)           # padding_idx = 0

    pos = jnp.arange(max_len, dtype=jnp.float32)[:, None]
    div = jnp.exp(jnp.arange(0, model_dim, 2, dtype=jnp.float32)
                  * -(math.log(10000.0) / model_dim))
    pe = jnp.zeros((max_len, model_dim), jnp.float32)
    pe = pe.at[:, 0::2].set(jnp.sin(pos * div))
    pe = pe.at[:, 1::2].set(jnp.cos(pos * div))

    def lin(k, din, dout):
        k1, k2 = jax.random.split(k)
        w = jax.random.normal(k1, (din, dout), jnp.float32) / math.sqrt(din)
        b = jax.random.normal(k2, (1, dout), jnp.float32) * 0.02
        return w, b

    ones = jnp.ones((1, model_dim), jnp.float32)
    zeros = jnp.zeros((1, model_dim), jnp.float32)

    layers = []
    for li in range(num_layers):
        lk = jax.random.split(keys[1 + li], 10)
        sa_wq, sa_bq = lin(lk[0], model_dim, model_dim)
        sa_wk, sa_bk = lin(lk[1], model_dim, model_dim)
        sa_wv, sa_bv = lin(lk[2], model_dim, model_dim)
        sa_wo, sa_bo = lin(lk[3], model_dim, model_dim)
        ca_wq, ca_bq = lin(lk[4], model_dim, model_dim)
        ca_wk, ca_bk = lin(lk[5], model_dim, model_dim)
        ca_wv, ca_bv = lin(lk[6], model_dim, model_dim)
        ca_wo, ca_bo = lin(lk[7], model_dim, model_dim)
        ff_w1, ff_b1 = lin(lk[8], model_dim, ff_dim)
        ff_w2, ff_b2 = lin(lk[9], ff_dim, model_dim)
        layers.append(dict(
            sa_wq=sa_wq * scale, sa_bq=sa_bq * scale, sa_wk=sa_wk, sa_bk=sa_bk,
            sa_wv=sa_wv, sa_bv=sa_bv, sa_wo=sa_wo, sa_bo=sa_bo,
            ln1_g=ones, ln1_b=zeros,
            ca_wq=ca_wq * scale, ca_bq=ca_bq * scale, ca_wk=ca_wk, ca_bk=ca_bk,
            ca_wv=ca_wv, ca_bv=ca_bv, ca_wo=ca_wo, ca_bo=ca_bo,
            ln2_g=ones, ln2_b=zeros,
            ff_w1=ff_w1, ff_b1=ff_b1, ff_w2=ff_w2, ff_b2=ff_b2,
            ln3_g=ones, ln3_b=zeros,
        ))
    return dict(embedding=emb, pe=pe, layers=layers, num_head=num_head,
                model_dim=model_dim)


def prepare_pallas_params(params):
    """Build lane-padded, head-slot-padded, fused, bf16 weights for the fused layer kernel."""
    D = params["model_dim"]
    H = params["num_head"]
    dh = D // H
    F = params["layers"][0]["ff_w1"].shape[1]
    Dp = _round_up(D, _LANE)
    dhp = _round_up(dh, _LANE)          # each head gets its own 128-lane slot
    Fp = _round_up(F, _LANE)
    QH = H * dhp

    def pad2(w, r, c):
        return jnp.zeros((r, c), jnp.float32).at[:w.shape[0], :w.shape[1]].set(w)

    def head_cols(w):                   # (r, H*dh) -> (r, QH), each head into its lane slot
        out = jnp.zeros((w.shape[0], QH), jnp.float32)
        for h in range(H):
            out = out.at[:, h * dhp:h * dhp + dh].set(w[:, h * dh:(h + 1) * dh])
        return out

    def head_rows(w):                   # (H*dh, c) -> (QH, c)
        out = jnp.zeros((QH, w.shape[1]), jnp.float32)
        for h in range(H):
            out = out.at[h * dhp:h * dhp + dh, :].set(w[h * dh:(h + 1) * dh, :])
        return out

    def w_in(w):                        # (D, H*dh) -> (Dp, QH) bf16
        return pad2(head_cols(w), Dp, QH).astype(_BF16)

    layers = []
    for lp in params["layers"]:
        layers.append(dict(
            sa_wqkv=jnp.concatenate([w_in(lp["sa_wq"]), w_in(lp["sa_wk"]),
                                     w_in(lp["sa_wv"])], axis=1),
            sa_bqkv=jnp.concatenate([head_cols(lp["sa_bq"]), head_cols(lp["sa_bk"]),
                                     head_cols(lp["sa_bv"])], axis=1),
            sa_wo=pad2(head_rows(lp["sa_wo"]), QH, Dp).astype(_BF16),
            sa_bo=pad2(lp["sa_bo"], 1, Dp),
            ln1_g=pad2(lp["ln1_g"], 1, Dp), ln1_b=pad2(lp["ln1_b"], 1, Dp),
            ca_wq=w_in(lp["ca_wq"]), ca_bq=head_cols(lp["ca_bq"]),
            ca_wkv=jnp.concatenate([w_in(lp["ca_wk"]), w_in(lp["ca_wv"])], axis=1),
            ca_bkv=jnp.concatenate([head_cols(lp["ca_bk"]), head_cols(lp["ca_bv"])], axis=1),
            ca_wo=pad2(head_rows(lp["ca_wo"]), QH, Dp).astype(_BF16),
            ca_bo=pad2(lp["ca_bo"], 1, Dp),
            ln2_g=pad2(lp["ln2_g"], 1, Dp), ln2_b=pad2(lp["ln2_b"], 1, Dp),
            ff_w1=pad2(lp["ff_w1"], Dp, Fp).astype(_BF16),
            ff_b1=pad2(lp["ff_b1"], 1, Fp),
            ff_w2=pad2(lp["ff_w2"], Fp, Dp).astype(_BF16),
            ff_b2=pad2(lp["ff_b2"], 1, Dp),
            ln3_g=pad2(lp["ln3_g"], 1, Dp), ln3_b=pad2(lp["ln3_b"], 1, Dp),
        ))
    return dict(Dp=Dp, dhp=dhp, Fp=Fp, QH=QH, layers=layers)


# ----------------------------------------------------------------------------------------------
if __name__ == "__main__":
    vocab_size, model_dim, ff_dim = 50, 32, 64
    num_layers, num_head = 2, 4
    B, Lt, Ls = 2, 8, 12

    key = jax.random.PRNGKey(0)
    kp, ki, ke = jax.random.split(key, 3)

    params = init_params(kp, vocab_size, model_dim, ff_dim, num_layers, num_head)
    prep = prepare_pallas_params(params)

    input_ids = jax.random.randint(ki, (B, Lt), 1, vocab_size).astype(jnp.int32)
    input_ids = input_ids.at[1, 6:].set(0)                    # target padding in batch 1
    encoder_output = jax.random.normal(ke, (B, Ls, model_dim), jnp.float32)
    src_lens = jnp.array([Ls, Ls - 3])
    src_mask = jnp.arange(Ls)[None, :] >= src_lens[:, None]   # True = padded source position

    out = decoder_forward(params, prep, input_ids, encoder_output, src_mask, use_pallas=True)
    out = jax.block_until_ready(out)

    ref = decoder_forward(params, prep, input_ids, encoder_output, src_mask, use_pallas=False)
    ref = jax.block_until_ready(ref)

    assert out.shape == (B, Lt, model_dim)
    assert not bool(jnp.any(jnp.isnan(out)))
    assert bool(jnp.allclose(out, ref, atol=1e-2, rtol=1e-2))

    print("KERNEL_OK")
</pallas_src>

<mosaic_0001>
module attributes {stable_mosaic.version = 11 : i64} {
  func.func @_decoder_layer_kernel(%arg0: i32, %arg1: memref<1x8x128xf32, #tpu.memory_space<vmem>>, %arg2: memref<1x16x128xf32, #tpu.memory_space<vmem>>, %arg3: memref<1x8x1xf32, #tpu.memory_space<vmem>>, %arg4: memref<1x1x16xf32, #tpu.memory_space<vmem>>, %arg5: memref<128x1536xbf16, #tpu.memory_space<vmem>>, %arg6: memref<1x1536xf32, #tpu.memory_space<vmem>>, %arg7: memref<512x128xbf16, #tpu.memory_space<vmem>>, %arg8: memref<1x128xf32, #tpu.memory_space<vmem>>, %arg9: memref<1x128xf32, #tpu.memory_space<vmem>>, %arg10: memref<1x128xf32, #tpu.memory_space<vmem>>, %arg11: memref<128x512xbf16, #tpu.memory_space<vmem>>, %arg12: memref<1x512xf32, #tpu.memory_space<vmem>>, %arg13: memref<128x1024xbf16, #tpu.memory_space<vmem>>, %arg14: memref<1x1024xf32, #tpu.memory_space<vmem>>, %arg15: memref<512x128xbf16, #tpu.memory_space<vmem>>, %arg16: memref<1x128xf32, #tpu.memory_space<vmem>>, %arg17: memref<1x128xf32, #tpu.memory_space<vmem>>, %arg18: memref<1x128xf32, #tpu.memory_space<vmem>>, %arg19: memref<128x128xbf16, #tpu.memory_space<vmem>>, %arg20: memref<1x128xf32, #tpu.memory_space<vmem>>, %arg21: memref<128x128xbf16, #tpu.memory_space<vmem>>, %arg22: memref<1x128xf32, #tpu.memory_space<vmem>>, %arg23: memref<1x128xf32, #tpu.memory_space<vmem>>, %arg24: memref<1x128xf32, #tpu.memory_space<vmem>>, %arg25: memref<1x8x128xf32, #tpu.memory_space<vmem>>) attributes {dimension_semantics = [#tpu.dimension_semantics<parallel>], iteration_bounds = array<i64: 2>, scalar_prefetch = 0 : i64, scratch_operands = 0 : i64, tpu.core_type = #tpu.core_type<tc>, window_params = [{transform_indices = @transform_0, window_bounds = array<i64: 1, 8, 128>}, {transform_indices = @transform_1, window_bounds = array<i64: 1, 16, 128>}, {transform_indices = @transform_2, window_bounds = array<i64: 1, 8, 1>}, {transform_indices = @transform_3, window_bounds = array<i64: 1, 1, 16>}, {pipeline_mode = #tpu.pipeline_mode<synchronous>, transform_indices = @transform_4, window_bounds = array<i64: 128, 1536>}, {pipeline_mode = #tpu.pipeline_mode<synchronous>, transform_indices = @transform_5, window_bounds = array<i64: 1, 1536>}, {pipeline_mode = #tpu.pipeline_mode<synchronous>, transform_indices = @transform_6, window_bounds = array<i64: 512, 128>}, {pipeline_mode = #tpu.pipeline_mode<synchronous>, transform_indices = @transform_7, window_bounds = array<i64: 1, 128>}, {pipeline_mode = #tpu.pipeline_mode<synchronous>, transform_indices = @transform_8, window_bounds = array<i64: 1, 128>}, {pipeline_mode = #tpu.pipeline_mode<synchronous>, transform_indices = @transform_9, window_bounds = array<i64: 1, 128>}, {pipeline_mode = #tpu.pipeline_mode<synchronous>, transform_indices = @transform_10, window_bounds = array<i64: 128, 512>}, {pipeline_mode = #tpu.pipeline_mode<synchronous>, transform_indices = @transform_11, window_bounds = array<i64: 1, 512>}, {pipeline_mode = #tpu.pipeline_mode<synchronous>, transform_indices = @transform_12, window_bounds = array<i64: 128, 1024>}, {pipeline_mode = #tpu.pipeline_mode<synchronous>, transform_indices = @transform_13, window_bounds = array<i64: 1, 1024>}, {pipeline_mode = #tpu.pipeline_mode<synchronous>, transform_indices = @transform_14, window_bounds = array<i64: 512, 128>}, {pipeline_mode = #tpu.pipeline_mode<synchronous>, transform_indices = @transform_15, window_bounds = array<i64: 1, 128>}, {pipeline_mode = #tpu.pipeline_mode<synchronous>, transform_indices = @transform_16, window_bounds = array<i64: 1, 128>}, {pipeline_mode = #tpu.pipeline_mode<synchronous>, transform_indices = @transform_17, window_bounds = array<i64: 1, 128>}, {pipeline_mode = #tpu.pipeline_mode<synchronous>, transform_indices = @transform_18, window_bounds = array<i64: 128, 128>}, {pipeline_mode = #tpu.pipeline_mode<synchronous>, transform_indices = @transform_19, window_bounds = array<i64: 1, 128>}, {pipeline_mode = #tpu.pipeline_mode<synchronous>, transform_indices = @transform_20, window_bounds = array<i64: 128, 128>}, {pipeline_mode = #tpu.pipeline_mode<synchronous>, transform_indices = @transform_21, window_bounds = array<i64: 1, 128>}, {pipeline_mode = #tpu.pipeline_mode<synchronous>, transform_indices = @transform_22, window_bounds = array<i64: 1, 128>}, {pipeline_mode = #tpu.pipeline_mode<synchronous>, transform_indices = @transform_23, window_bounds = array<i64: 1, 128>}, {transform_indices = @transform_24, window_bounds = array<i64: 1, 8, 128>}]} {
    %c0 = arith.constant 0 : index
    %c0_0 = arith.constant 0 : index
    %c0_1 = arith.constant 0 : index
    %0 = vector.load %arg1[%c0, %c0_0, %c0_1] : memref<1x8x128xf32, #tpu.memory_space<vmem>>, vector<1x8x128xf32>
    %1 = vector.shape_cast %0 : vector<1x8x128xf32> to vector<8x128xf32>
    %c0_2 = arith.constant 0 : index
    %c0_3 = arith.constant 0 : index
    %c0_4 = arith.constant 0 : index
    %2 = vector.load %arg2[%c0_2, %c0_3, %c0_4] : memref<1x16x128xf32, #tpu.memory_space<vmem>>, vector<1x16x128xf32>
    %3 = vector.shape_cast %2 : vector<1x16x128xf32> to vector<16x128xf32>
    %c0_5 = arith.constant 0 : index
    %c0_6 = arith.constant 0 : index
    %c0_7 = arith.constant 0 : index
    %4 = vector.load %arg3[%c0_5, %c0_6, %c0_7] : memref<1x8x1xf32, #tpu.memory_space<vmem>>, vector<1x8x1xf32>
    %5 = vector.shape_cast %4 : vector<1x8x1xf32> to vector<8x1xf32>
    %c0_8 = arith.constant 0 : index
    %c0_9 = arith.constant 0 : index
    %c0_10 = arith.constant 0 : index
    %6 = vector.load %arg4[%c0_8, %c0_9, %c0_10] : memref<1x1x16xf32, #tpu.memory_space<vmem>>, vector<1x1x16xf32>
    %7 = vector.shape_cast %6 : vector<1x1x16xf32> to vector<1x16xf32>
    %8 = tpu.iota {dimensions = array<i32: 1>} : vector<1x128xi32>
    %c32_i32 = arith.constant 32 : i32
    %9 = vector.broadcast %c32_i32 : i32 to vector<1x128xi32>
    %10 = arith.cmpi slt, %8, %9 : vector<1x128xi32>
    %11 = arith.extui %10 : vector<1x128xi1> to vector<1x128xi32>
    %12 = arith.sitofp %11 : vector<1x128xi32> to vector<1x128xf32>
    %c0_11 = arith.constant 0 : index
    %c0_12 = arith.constant 0 : index
    %13 = vector.load %arg5[%c0_11, %c0_12] : memref<128x1536xbf16, #tpu.memory_space<vmem>>, vector<128x1536xbf16>
    %14 = arith.truncf %1 : vector<8x128xf32> to vector<8x128xbf16>
    %cst = arith.constant dense<0.000000e+00> : vector<8x1536xf32>
    %15 = tpu.matmul %14, %13, %cst {dimension_numbers = #tpu.dot_dimension_numbers<[1], [0], [0], [1], [0, 0, 1, 1], [], []>} : vector<8x128xbf16>, vector<128x1536xbf16>, vector<8x1536xf32> -> vector<8x1536xf32>
    %c0_13 = arith.constant 0 : index
    %c0_14 = arith.constant 0 : index
    %16 = vector.load %arg6[%c0_13, %c0_14] : memref<1x1536xf32, #tpu.memory_space<vmem>>, vector<1x1536xf32>
    %17 = vector.broadcast %16 : vector<1x1536xf32> to vector<8x1536xf32>
    %18 = arith.addf %15, %17 : vector<8x1536xf32>
    %19 = vector.extract_strided_slice %18 {offsets = [0, 0], sizes = [8, 512], strides = [1, 1]} : vector<8x1536xf32> to vector<8x512xf32>
    %20 = vector.extract_strided_slice %18 {offsets = [0, 512], sizes = [8, 512], strides = [1, 1]} : vector<8x1536xf32> to vector<8x512xf32>
    %21 = vector.broadcast %5 : vector<8x1xf32> to vector<8x512xf32>
    %22 = arith.mulf %20, %21 : vector<8x512xf32>
    %23 = vector.extract_strided_slice %18 {offsets = [0, 1024], sizes = [8, 512], strides = [1, 1]} : vector<8x1536xf32> to vector<8x512xf32>
    %24 = vector.broadcast %5 : vector<8x1xf32> to vector<8x512xf32>
    %25 = arith.mulf %23, %24 : vector<8x512xf32>
    %26 = tpu.iota {dimensions = array<i32: 0>} : vector<8x8xi32>
    %27 = tpu.iota {dimensions = array<i32: 1>} : vector<8x8xi32>
    %28 = arith.cmpi sgt, %27, %26 : vector<8x8xi32>
    %cst_15 = arith.constant -1.000000e+30 : f32
    %cst_16 = arith.constant 0.000000e+00 : f32
    %29 = vector.broadcast %cst_15 : f32 to vector<8x8xf32>
    %30 = vector.broadcast %cst_16 : f32 to vector<8x8xf32>
    %31 = arith.select %28, %29, %30 : vector<8x8xi1>, vector<8x8xf32>
    %32 = arith.truncf %19 : vector<8x512xf32> to vector<8x512xbf16>
    %33 = arith.truncf %22 : vector<8x512xf32> to vector<8x512xbf16>
    %34 = arith.truncf %25 : vector<8x512xf32> to vector<8x512xbf16>
    %35 = vector.extract_strided_slice %32 {offsets = [0, 0], sizes = [8, 128], strides = [1, 1]} : vector<8x512xbf16> to vector<8x128xbf16>
    %36 = vector.extract_strided_slice %33 {offsets = [0, 0], sizes = [8, 128], strides = [1, 1]} : vector<8x512xbf16> to vector<8x128xbf16>
    %cst_17 = arith.constant dense<0.000000e+00> : vector<8x8xf32>
    %37 = tpu.matmul %35, %36, %cst_17 {dimension_numbers = #tpu.dot_dimension_numbers<[1], [1], [0], [0], [0, 0, 1, 0], [], []>} : vector<8x128xbf16>, vector<8x128xbf16>, vector<8x8xf32> -> vector<8x8xf32>
    %38 = arith.addf %37, %31 : vector<8x8xf32>
    %cst_18 = arith.constant dense<0xFF800000> : vector<8xf32>
    %39 = vector.multi_reduction <maximumf>, %38, %cst_18 [1] : vector<8x8xf32> to vector<8xf32>
    %40 = vector.shape_cast %39 : vector<8xf32> to vector<8x1xf32>
    %41 = vector.broadcast %40 : vector<8x1xf32> to vector<8x8xf32>
    %42 = arith.subf %38, %41 : vector<8x8xf32>
    %43 = math.exp %42 : vector<8x8xf32>
    %cst_19 = arith.constant dense<0.000000e+00> : vector<8xf32>
    %44 = vector.multi_reduction <add>, %43, %cst_19 [1] : vector<8x8xf32> to vector<8xf32>
    %45 = vector.shape_cast %44 : vector<8xf32> to vector<8x1xf32>
    %46 = vector.broadcast %45 : vector<8x1xf32> to vector<8x8xf32>
    %47 = arith.divf %43, %46 : vector<8x8xf32>
    %48 = arith.truncf %47 : vector<8x8xf32> to vector<8x8xbf16>
    %49 = vector.extract_strided_slice %34 {offsets = [0, 0], sizes = [8, 128], strides = [1, 1]} : vector<8x512xbf16> to vector<8x128xbf16>
    %cst_20 = arith.constant dense<0.000000e+00> : vector<8x128xf32>
    %50 = tpu.matmul %48, %49, %cst_20 {dimension_numbers = #tpu.dot_dimension_numbers<[1], [0], [0], [1], [0, 0, 1, 1], [], []>} : vector<8x8xbf16>, vector<8x128xbf16>, vector<8x128xf32> -> vector<8x128xf32>
    %51 = vector.extract_strided_slice %32 {offsets = [0, 128], sizes = [8, 128], strides = [1, 1]} : vector<8x512xbf16> to vector<8x128xbf16>
    %52 = vector.extract_strided_slice %33 {offsets = [0, 128], sizes = [8, 128], strides = [1, 1]} : vector<8x512xbf16> to vector<8x128xbf16>
    %cst_21 = arith.constant dense<0.000000e+00> : vector<8x8xf32>
    %53 = tpu.matmul %51, %52, %cst_21 {dimension_numbers = #tpu.dot_dimension_numbers<[1], [1], [0], [0], [0, 0, 1, 0], [], []>} : vector<8x128xbf16>, vector<8x128xbf16>, vector<8x8xf32> -> vector<8x8xf32>
    %54 = arith.addf %53, %31 : vector<8x8xf32>
    %cst_22 = arith.constant dense<0xFF800000> : vector<8xf32>
    %55 = vector.multi_reduction <maximumf>, %54, %cst_22 [1] : vector<8x8xf32> to vector<8xf32>
    %56 = vector.shape_cast %55 : vector<8xf32> to vector<8x1xf32>
    %57 = vector.broadcast %56 : vector<8x1xf32> to vector<8x8xf32>
    %58 = arith.subf %54, %57 : vector<8x8xf32>
    %59 = math.exp %58 : vector<8x8xf32>
    %cst_23 = arith.constant dense<0.000000e+00> : vector<8xf32>
    %60 = vector.multi_reduction <add>, %59, %cst_23 [1] : vector<8x8xf32> to vector<8xf32>
    %61 = vector.shape_cast %60 : vector<8xf32> to vector<8x1xf32>
    %62 = vector.broadcast %61 : vector<8x1xf32> to vector<8x8xf32>
    %63 = arith.divf %59, %62 : vector<8x8xf32>
    %64 = arith.truncf %63 : vector<8x8xf32> to vector<8x8xbf16>
    %65 = vector.extract_strided_slice %34 {offsets = [0, 128], sizes = [8, 128], strides = [1, 1]} : vector<8x512xbf16> to vector<8x128xbf16>
    %cst_24 = arith.constant dense<0.000000e+00> : vector<8x128xf32>
    %66 = tpu.matmul %64, %65, %cst_24 {dimension_numbers = #tpu.dot_dimension_numbers<[1], [0], [0], [1], [0, 0, 1, 1], [], []>} : vector<8x8xbf16>, vector<8x128xbf16>, vector<8x128xf32> -> vector<8x128xf32>
    %67 = vector.extract_strided_slice %32 {offsets = [0, 256], sizes = [8, 128], strides = [1, 1]} : vector<8x512xbf16> to vector<8x128xbf16>
    %68 = vector.extract_strided_slice %33 {offsets = [0, 256], sizes = [8, 128], strides = [1, 1]} : vector<8x512xbf16> to vector<8x128xbf16>
    %cst_25 = arith.constant dense<0.000000e+00> : vector<8x8xf32>
    %69 = tpu.matmul %67, %68, %cst_25 {dimension_numbers = #tpu.dot_dimension_numbers<[1], [1], [0], [0], [0, 0, 1, 0], [], []>} : vector<8x128xbf16>, vector<8x128xbf16>, vector<8x8xf32> -> vector<8x8xf32>
    %70 = arith.addf %69, %31 : vector<8x8xf32>
    %cst_26 = arith.constant dense<0xFF800000> : vector<8xf32>
    %71 = vector.multi_reduction <maximumf>, %70, %cst_26 [1] : vector<8x8xf32> to vector<8xf32>
    %72 = vector.shape_cast %71 : vector<8xf32> to vector<8x1xf32>
    %73 = vector.broadcast %72 : vector<8x1xf32> to vector<8x8xf32>
    %74 = arith.subf %70, %73 : vector<8x8xf32>
    %75 = math.exp %74 : vector<8x8xf32>
    %cst_27 = arith.constant dense<0.000000e+00> : vector<8xf32>
    %76 = vector.multi_reduction <add>, %75, %cst_27 [1] : vector<8x8xf32> to vector<8xf32>
    %77 = vector.shape_cast %76 : vector<8xf32> to vector<8x1xf32>
    %78 = vector.broadcast %77 : vector<8x1xf32> to vector<8x8xf32>
    %79 = arith.divf %75, %78 : vector<8x8xf32>
    %80 = arith.truncf %79 : vector<8x8xf32> to vector<8x8xbf16>
    %81 = vector.extract_strided_slice %34 {offsets = [0, 256], sizes = [8, 128], strides = [1, 1]} : vector<8x512xbf16> to vector<8x128xbf16>
    %cst_28 = arith.constant dense<0.000000e+00> : vector<8x128xf32>
    %82 = tpu.matmul %80, %81, %cst_28 {dimension_numbers = #tpu.dot_dimension_numbers<[1], [0], [0], [1], [0, 0, 1, 1], [], []>} : vector<8x8xbf16>, vector<8x128xbf16>, vector<8x128xf32> -> vector<8x128xf32>
    %83 = vector.extract_strided_slice %32 {offsets = [0, 384], sizes = [8, 128], strides = [1, 1]} : vector<8x512xbf16> to vector<8x128xbf16>
    %84 = vector.extract_strided_slice %33 {offsets = [0, 384], sizes = [8, 128], strides = [1, 1]} : vector<8x512xbf16> to vector<8x128xbf16>
    %cst_29 = arith.constant dense<0.000000e+00> : vector<8x8xf32>
    %85 = tpu.matmul %83, %84, %cst_29 {dimension_numbers = #tpu.dot_dimension_numbers<[1], [1], [0], [0], [0, 0, 1, 0], [], []>} : vector<8x128xbf16>, vector<8x128xbf16>, vector<8x8xf32> -> vector<8x8xf32>
    %86 = arith.addf %85, %31 : vector<8x8xf32>
    %cst_30 = arith.constant dense<0xFF800000> : vector<8xf32>
    %87 = vector.multi_reduction <maximumf>, %86, %cst_30 [1] : vector<8x8xf32> to vector<8xf32>
    %88 = vector.shape_cast %87 : vector<8xf32> to vector<8x1xf32>
    %89 = vector.broadcast %88 : vector<8x1xf32> to vector<8x8xf32>
    %90 = arith.subf %86, %89 : vector<8x8xf32>
    %91 = math.exp %90 : vector<8x8xf32>
    %cst_31 = arith.constant dense<0.000000e+00> : vector<8xf32>
    %92 = vector.multi_reduction <add>, %91, %cst_31 [1] : vector<8x8xf32> to vector<8xf32>
    %93 = vector.shape_cast %92 : vector<8xf32> to vector<8x1xf32>
    %94 = vector.broadcast %93 : vector<8x1xf32> to vector<8x8xf32>
    %95 = arith.divf %91, %94 : vector<8x8xf32>
    %96 = arith.truncf %95 : vector<8x8xf32> to vector<8x8xbf16>
    %97 = vector.extract_strided_slice %34 {offsets = [0, 384], sizes = [8, 128], strides = [1, 1]} : vector<8x512xbf16> to vector<8x128xbf16>
    %cst_32 = arith.constant dense<0.000000e+00> : vector<8x128xf32>
    %98 = tpu.matmul %96, %97, %cst_32 {dimension_numbers = #tpu.dot_dimension_numbers<[1], [0], [0], [1], [0, 0, 1, 1], [], []>} : vector<8x8xbf16>, vector<8x128xbf16>, vector<8x128xf32> -> vector<8x128xf32>
    %99 = tpu.concatenate %50, %66, %82, %98 in 1 : vector<8x128xf32>, vector<8x128xf32>, vector<8x128xf32>, vector<8x128xf32> -> vector<8x512xf32>
    %c0_33 = arith.constant 0 : index
    %c0_34 = arith.constant 0 : index
    %100 = vector.load %arg7[%c0_33, %c0_34] : memref<512x128xbf16, #tpu.memory_space<vmem>>, vector<512x128xbf16>
    %101 = arith.truncf %99 : vector<8x512xf32> to vector<8x512xbf16>
    %cst_35 = arith.constant dense<0.000000e+00> : vector<8x128xf32>
    %102 = tpu.matmul %101, %100, %cst_35 {dimension_numbers = #tpu.dot_dimension_numbers<[1], [0], [0], [1], [0, 0, 1, 1], [], []>} : vector<8x512xbf16>, vector<512x128xbf16>, vector<8x128xf32> -> vector<8x128xf32>
    %c0_36 = arith.constant 0 : index
    %c0_37 = arith.constant 0 : index
    %103 = vector.load %arg8[%c0_36, %c0_37] : memref<1x128xf32, #tpu.memory_space<vmem>>, vector<1x128xf32>
    %104 = vector.broadcast %103 : vector<1x128xf32> to vector<8x128xf32>
    %105 = arith.addf %102, %104 : vector<8x128xf32>
    %106 = vector.broadcast %5 : vector<8x1xf32> to vector<8x128xf32>
    %107 = arith.mulf %105, %106 : vector<8x128xf32>
    %108 = arith.addf %107, %1 : vector<8x128xf32>
    %c0_38 = arith.constant 0 : index
    %c0_39 = arith.constant 0 : index
    %109 = vector.load %arg9[%c0_38, %c0_39] : memref<1x128xf32, #tpu.memory_space<vmem>>, vector<1x128xf32>
    %c0_40 = arith.constant 0 : index
    %c0_41 = arith.constant 0 : index
    %110 = vector.load %arg10[%c0_40, %c0_41] : memref<1x128xf32, #tpu.memory_space<vmem>>, vector<1x128xf32>
    %cst_42 = arith.constant dense<0.000000e+00> : vector<8xf32>
    %111 = vector.multi_reduction <add>, %108, %cst_42 [1] : vector<8x128xf32> to vector<8xf32>
    %112 = vector.shape_cast %111 : vector<8xf32> to vector<8x1xf32>
    %cst_43 = arith.constant 3.125000e-02 : f32
    %113 = vector.broadcast %cst_43 : f32 to vector<8x1xf32>
    %114 = arith.mulf %112, %113 : vector<8x1xf32>
    %115 = vector.broadcast %114 : vector<8x1xf32> to vector<8x128xf32>
    %116 = arith.subf %108, %115 : vector<8x128xf32>
    %117 = vector.broadcast %12 : vector<1x128xf32> to vector<8x128xf32>
    %118 = arith.mulf %116, %117 : vector<8x128xf32>
    %119 = arith.mulf %118, %118 : vector<8x128xf32>
    %cst_44 = arith.constant dense<0.000000e+00> : vector<8xf32>
    %120 = vector.multi_reduction <add>, %119, %cst_44 [1] : vector<8x128xf32> to vector<8xf32>
    %121 = vector.shape_cast %120 : vector<8xf32> to vector<8x1xf32>
    %cst_45 = arith.constant 3.125000e-02 : f32
    %122 = vector.broadcast %cst_45 : f32 to vector<8x1xf32>
    %123 = arith.mulf %121, %122 : vector<8x1xf32>
    %cst_46 = arith.constant 9.99999997E-7 : f32
    %124 = vector.broadcast %cst_46 : f32 to vector<8x1xf32>
    %125 = arith.addf %123, %124 : vector<8x1xf32>
    %126 = math.rsqrt %125 : vector<8x1xf32>
    %127 = vector.broadcast %126 : vector<8x1xf32> to vector<8x128xf32>
    %128 = arith.mulf %118, %127 : vector<8x128xf32>
    %129 = vector.broadcast %109 : vector<1x128xf32> to vector<8x128xf32>
    %130 = arith.mulf %128, %129 : vector<8x128xf32>
    %131 = vector.broadcast %110 : vector<1x128xf32> to vector<8x128xf32>
    %132 = arith.addf %130, %131 : vector<8x128xf32>
    %c0_47 = arith.constant 0 : index
    %c0_48 = arith.constant 0 : index
    %133 = vector.load %arg11[%c0_47, %c0_48] : memref<128x512xbf16, #tpu.memory_space<vmem>>, vector<128x512xbf16>
    %134 = arith.truncf %132 : vector<8x128xf32> to vector<8x128xbf16>
    %cst_49 = arith.constant dense<0.000000e+00> : vector<8x512xf32>
    %135 = tpu.matmul %134, %133, %cst_49 {dimension_numbers = #tpu.dot_dimension_numbers<[1], [0], [0], [1], [0, 0, 1, 1], [], []>} : vector<8x128xbf16>, vector<128x512xbf16>, vector<8x512xf32> -> vector<8x512xf32>
    %c0_50 = arith.constant 0 : index
    %c0_51 = arith.constant 0 : index
    %136 = vector.load %arg12[%c0_50, %c0_51] : memref<1x512xf32, #tpu.memory_space<vmem>>, vector<1x512xf32>
    %137 = vector.broadcast %136 : vector<1x512xf32> to vector<8x512xf32>
    %138 = arith.addf %135, %137 : vector<8x512xf32>
    %c0_52 = arith.constant 0 : index
    %c0_53 = arith.constant 0 : index
    %139 = vector.load %arg13[%c0_52, %c0_53] : memref<128x1024xbf16, #tpu.memory_space<vmem>>, vector<128x1024xbf16>
    %140 = arith.truncf %3 : vector<16x128xf32> to vector<16x128xbf16>
    %cst_54 = arith.constant dense<0.000000e+00> : vector<16x1024xf32>
    %141 = tpu.matmul %140, %139, %cst_54 {dimension_numbers = #tpu.dot_dimension_numbers<[1], [0], [0], [1], [0, 0, 1, 1], [], []>} : vector<16x128xbf16>, vector<128x1024xbf16>, vector<16x1024xf32> -> vector<16x1024xf32>
    %c0_55 = arith.constant 0 : index
    %c0_56 = arith.constant 0 : index
    %142 = vector.load %arg14[%c0_55, %c0_56] : memref<1x1024xf32, #tpu.memory_space<vmem>>, vector<1x1024xf32>
    %143 = vector.broadcast %142 : vector<1x1024xf32> to vector<16x1024xf32>
    %144 = arith.addf %141, %143 : vector<16x1024xf32>
    %145 = vector.extract_strided_slice %144 {offsets = [0, 0], sizes = [16, 512], strides = [1, 1]} : vector<16x1024xf32> to vector<16x512xf32>
    %146 = vector.extract_strided_slice %144 {offsets = [0, 512], sizes = [16, 512], strides = [1, 1]} : vector<16x1024xf32> to vector<16x512xf32>
    %147 = arith.truncf %138 : vector<8x512xf32> to vector<8x512xbf16>
    %148 = arith.truncf %145 : vector<16x512xf32> to vector<16x512xbf16>
    %149 = arith.truncf %146 : vector<16x512xf32> to vector<16x512xbf16>
    %150 = vector.extract_strided_slice %147 {offsets = [0, 0], sizes = [8, 128], strides = [1, 1]} : vector<8x512xbf16> to vector<8x128xbf16>
    %151 = vector.extract_strided_slice %148 {offsets = [0, 0], sizes = [16, 128], strides = [1, 1]} : vector<16x512xbf16> to vector<16x128xbf16>
    %cst_57 = arith.constant dense<0.000000e+00> : vector<8x16xf32>
    %152 = tpu.matmul %150, %151, %cst_57 {dimension_numbers = #tpu.dot_dimension_numbers<[1], [1], [0], [0], [0, 0, 1, 0], [], []>} : vector<8x128xbf16>, vector<16x128xbf16>, vector<8x16xf32> -> vector<8x16xf32>
    %153 = vector.broadcast %7 : vector<1x16xf32> to vector<8x16xf32>
    %154 = arith.addf %152, %153 : vector<8x16xf32>
    %cst_58 = arith.constant dense<0xFF800000> : vector<8xf32>
    %155 = vector.multi_reduction <maximumf>, %154, %cst_58 [1] : vector<8x16xf32> to vector<8xf32>
    %156 = vector.shape_cast %155 : vector<8xf32> to vector<8x1xf32>
    %157 = vector.broadcast %156 : vector<8x1xf32> to vector<8x16xf32>
    %158 = arith.subf %154, %157 : vector<8x16xf32>
    %159 = math.exp %158 : vector<8x16xf32>
    %cst_59 = arith.constant dense<0.000000e+00> : vector<8xf32>
    %160 = vector.multi_reduction <add>, %159, %cst_59 [1] : vector<8x16xf32> to vector<8xf32>
    %161 = vector.shape_cast %160 : vector<8xf32> to vector<8x1xf32>
    %162 = vector.broadcast %161 : vector<8x1xf32> to vector<8x16xf32>
    %163 = arith.divf %159, %162 : vector<8x16xf32>
    %164 = arith.truncf %163 : vector<8x16xf32> to vector<8x16xbf16>
    %165 = vector.extract_strided_slice %149 {offsets = [0, 0], sizes = [16, 128], strides = [1, 1]} : vector<16x512xbf16> to vector<16x128xbf16>
    %cst_60 = arith.constant dense<0.000000e+00> : vector<8x128xf32>
    %166 = tpu.matmul %164, %165, %cst_60 {dimension_numbers = #tpu.dot_dimension_numbers<[1], [0], [0], [1], [0, 0, 1, 1], [], []>} : vector<8x16xbf16>, vector<16x128xbf16>, vector<8x128xf32> -> vector<8x128xf32>
    %167 = vector.extract_strided_slice %147 {offsets = [0, 128], sizes = [8, 128], strides = [1, 1]} : vector<8x512xbf16> to vector<8x128xbf16>
    %168 = vector.extract_strided_slice %148 {offsets = [0, 128], sizes = [16, 128], strides = [1, 1]} : vector<16x512xbf16> to vector<16x128xbf16>
    %cst_61 = arith.constant dense<0.000000e+00> : vector<8x16xf32>
    %169 = tpu.matmul %167, %168, %cst_61 {dimension_numbers = #tpu.dot_dimension_numbers<[1], [1], [0], [0], [0, 0, 1, 0], [], []>} : vector<8x128xbf16>, vector<16x128xbf16>, vector<8x16xf32> -> vector<8x16xf32>
    %170 = vector.broadcast %7 : vector<1x16xf32> to vector<8x16xf32>
    %171 = arith.addf %169, %170 : vector<8x16xf32>
    %cst_62 = arith.constant dense<0xFF800000> : vector<8xf32>
    %172 = vector.multi_reduction <maximumf>, %171, %cst_62 [1] : vector<8x16xf32> to vector<8xf32>
    %173 = vector.shape_cast %172 : vector<8xf32> to vector<8x1xf32>
    %174 = vector.broadcast %173 : vector<8x1xf32> to vector<8x16xf32>
    %175 = arith.subf %171, %174 : vector<8x16xf32>
    %176 = math.exp %175 : vector<8x16xf32>
    %cst_63 = arith.constant dense<0.000000e+00> : vector<8xf32>
    %177 = vector.multi_reduction <add>, %176, %cst_63 [1] : vector<8x16xf32> to vector<8xf32>
    %178 = vector.shape_cast %177 : vector<8xf32> to vector<8x1xf32>
    %179 = vector.broadcast %178 : vector<8x1xf32> to vector<8x16xf32>
    %180 = arith.divf %176, %179 : vector<8x16xf32>
    %181 = arith.truncf %180 : vector<8x16xf32> to vector<8x16xbf16>
    %182 = vector.extract_strided_slice %149 {offsets = [0, 128], sizes = [16, 128], strides = [1, 1]} : vector<16x512xbf16> to vector<16x128xbf16>
    %cst_64 = arith.constant dense<0.000000e+00> : vector<8x128xf32>
    %183 = tpu.matmul %181, %182, %cst_64 {dimension_numbers = #tpu.dot_dimension_numbers<[1], [0], [0], [1], [0, 0, 1, 1], [], []>} : vector<8x16xbf16>, vector<16x128xbf16>, vector<8x128xf32> -> vector<8x128xf32>
    %184 = vector.extract_strided_slice %147 {offsets = [0, 256], sizes = [8, 128], strides = [1, 1]} : vector<8x512xbf16> to vector<8x128xbf16>
    %185 = vector.extract_strided_slice %148 {offsets = [0, 256], sizes = [16, 128], strides = [1, 1]} : vector<16x512xbf16> to vector<16x128xbf16>
    %cst_65 = arith.constant dense<0.000000e+00> : vector<8x16xf32>
    %186 = tpu.matmul %184, %185, %cst_65 {dimension_numbers = #tpu.dot_dimension_numbers<[1], [1], [0], [0], [0, 0, 1, 0], [], []>} : vector<8x128xbf16>, vector<16x128xbf16>, vector<8x16xf32> -> vector<8x16xf32>
    %187 = vector.broadcast %7 : vector<1x16xf32> to vector<8x16xf32>
    %188 = arith.addf %186, %187 : vector<8x16xf32>
    %cst_66 = arith.constant dense<0xFF800000> : vector<8xf32>
    %189 = vector.multi_reduction <maximumf>, %188, %cst_66 [1] : vector<8x16xf32> to vector<8xf32>
    %190 = vector.shape_cast %189 : vector<8xf32> to vector<8x1xf32>
    %191 = vector.broadcast %190 : vector<8x1xf32> to vector<8x16xf32>
    %192 = arith.subf %188, %191 : vector<8x16xf32>
    %193 = math.exp %192 : vector<8x16xf32>
    %cst_67 = arith.constant dense<0.000000e+00> : vector<8xf32>
    %194 = vector.multi_reduction <add>, %193, %cst_67 [1] : vector<8x16xf32> to vector<8xf32>
    %195 = vector.shape_cast %194 : vector<8xf32> to vector<8x1xf32>
    %196 = vector.broadcast %195 : vector<8x1xf32> to vector<8x16xf32>
    %197 = arith.divf %193, %196 : vector<8x16xf32>
    %198 = arith.truncf %197 : vector<8x16xf32> to vector<8x16xbf16>
    %199 = vector.extract_strided_slice %149 {offsets = [0, 256], sizes = [16, 128], strides = [1, 1]} : vector<16x512xbf16> to vector<16x128xbf16>
    %cst_68 = arith.constant dense<0.000000e+00> : vector<8x128xf32>
    %200 = tpu.matmul %198, %199, %cst_68 {dimension_numbers = #tpu.dot_dimension_numbers<[1], [0], [0], [1], [0, 0, 1, 1], [], []>} : vector<8x16xbf16>, vector<16x128xbf16>, vector<8x128xf32> -> vector<8x128xf32>
    %201 = vector.extract_strided_slice %147 {offsets = [0, 384], sizes = [8, 128], strides = [1, 1]} : vector<8x512xbf16> to vector<8x128xbf16>
    %202 = vector.extract_strided_slice %148 {offsets = [0, 384], sizes = [16, 128], strides = [1, 1]} : vector<16x512xbf16> to vector<16x128xbf16>
    %cst_69 = arith.constant dense<0.000000e+00> : vector<8x16xf32>
    %203 = tpu.matmul %201, %202, %cst_69 {dimension_numbers = #tpu.dot_dimension_numbers<[1], [1], [0], [0], [0, 0, 1, 0], [], []>} : vector<8x128xbf16>, vector<16x128xbf16>, vector<8x16xf32> -> vector<8x16xf32>
    %204 = vector.broadcast %7 : vector<1x16xf32> to vector<8x16xf32>
    %205 = arith.addf %203, %204 : vector<8x16xf32>
    %cst_70 = arith.constant dense<0xFF800000> : vector<8xf32>
    %206 = vector.multi_reduction <maximumf>, %205, %cst_70 [1] : vector<8x16xf32> to vector<8xf32>
    %207 = vector.shape_cast %206 : vector<8xf32> to vector<8x1xf32>
    %208 = vector.broadcast %207 : vector<8x1xf32> to vector<8x16xf32>
    %209 = arith.subf %205, %208 : vector<8x16xf32>
    %210 = math.exp %209 : vector<8x16xf32>
    %cst_71 = arith.constant dense<0.000000e+00> : vector<8xf32>
    %211 = vector.multi_reduction <add>, %210, %cst_71 [1] : vector<8x16xf32> to vector<8xf32>
    %212 = vector.shape_cast %211 : vector<8xf32> to vector<8x1xf32>
    %213 = vector.broadcast %212 : vector<8x1xf32> to vector<8x16xf32>
    %214 = arith.divf %210, %213 : vector<8x16xf32>
    %215 = arith.truncf %214 : vector<8x16xf32> to vector<8x16xbf16>
    %216 = vector.extract_strided_slice %149 {offsets = [0, 384], sizes = [16, 128], strides = [1, 1]} : vector<16x512xbf16> to vector<16x128xbf16>
    %cst_72 = arith.constant dense<0.000000e+00> : vector<8x128xf32>
    %217 = tpu.matmul %215, %216, %cst_72 {dimension_numbers = #tpu.dot_dimension_numbers<[1], [0], [0], [1], [0, 0, 1, 1], [], []>} : vector<8x16xbf16>, vector<16x128xbf16>, vector<8x128xf32> -> vector<8x128xf32>
    %218 = tpu.concatenate %166, %183, %200, %217 in 1 : vector<8x128xf32>, vector<8x128xf32>, vector<8x128xf32>, vector<8x128xf32> -> vector<8x512xf32>
    %c0_73 = arith.constant 0 : index
    %c0_74 = arith.constant 0 : index
    %219 = vector.load %arg15[%c0_73, %c0_74] : memref<512x128xbf16, #tpu.memory_space<vmem>>, vector<512x128xbf16>
    %220 = arith.truncf %218 : vector<8x512xf32> to vector<8x512xbf16>
    %cst_75 = arith.constant dense<0.000000e+00> : vector<8x128xf32>
    %221 = tpu.matmul %220, %219, %cst_75 {dimension_numbers = #tpu.dot_dimension_numbers<[1], [0], [0], [1], [0, 0, 1, 1], [], []>} : vector<8x512xbf16>, vector<512x128xbf16>, vector<8x128xf32> -> vector<8x128xf32>
    %c0_76 = arith.constant 0 : index
    %c0_77 = arith.constant 0 : index
    %222 = vector.load %arg16[%c0_76, %c0_77] : memref<1x128xf32, #tpu.memory_space<vmem>>, vector<1x128xf32>
    %223 = vector.broadcast %222 : vector<1x128xf32> to vector<8x128xf32>
    %224 = arith.addf %221, %223 : vector<8x128xf32>
    %225 = vector.broadcast %5 : vector<8x1xf32> to vector<8x128xf32>
    %226 = arith.mulf %224, %225 : vector<8x128xf32>
    %227 = arith.addf %226, %132 : vector<8x128xf32>
    %c0_78 = arith.constant 0 : index
    %c0_79 = arith.constant 0 : index
    %228 = vector.load %arg17[%c0_78, %c0_79] : memref<1x128xf32, #tpu.memory_space<vmem>>, vector<1x128xf32>
    %c0_80 = arith.constant 0 : index
    %c0_81 = arith.constant 0 : index
    %229 = vector.load %arg18[%c0_80, %c0_81] : memref<1x128xf32, #tpu.memory_space<vmem>>, vector<1x128xf32>
    %cst_82 = arith.constant dense<0.000000e+00> : vector<8xf32>
    %230 = vector.multi_reduction <add>, %227, %cst_82 [1] : vector<8x128xf32> to vector<8xf32>
    %231 = vector.shape_cast %230 : vector<8xf32> to vector<8x1xf32>
    %cst_83 = arith.constant 3.125000e-02 : f32
    %232 = vector.broadcast %cst_83 : f32 to vector<8x1xf32>
    %233 = arith.mulf %231, %232 : vector<8x1xf32>
    %234 = vector.broadcast %233 : vector<8x1xf32> to vector<8x128xf32>
    %235 = arith.subf %227, %234 : vector<8x128xf32>
    %236 = vector.broadcast %12 : vector<1x128xf32> to vector<8x128xf32>
    %237 = arith.mulf %235, %236 : vector<8x128xf32>
    %238 = arith.mulf %237, %237 : vector<8x128xf32>
    %cst_84 = arith.constant dense<0.000000e+00> : vector<8xf32>
    %239 = vector.multi_reduction <add>, %238, %cst_84 [1] : vector<8x128xf32> to vector<8xf32>
    %240 = vector.shape_cast %239 : vector<8xf32> to vector<8x1xf32>
    %cst_85 = arith.constant 3.125000e-02 : f32
    %241 = vector.broadcast %cst_85 : f32 to vector<8x1xf32>
    %242 = arith.mulf %240, %241 : vector<8x1xf32>
    %cst_86 = arith.constant 9.99999997E-7 : f32
    %243 = vector.broadcast %cst_86 : f32 to vector<8x1xf32>
    %244 = arith.addf %242, %243 : vector<8x1xf32>
    %245 = math.rsqrt %244 : vector<8x1xf32>
    %246 = vector.broadcast %245 : vector<8x1xf32> to vector<8x128xf32>
    %247 = arith.mulf %237, %246 : vector<8x128xf32>
    %248 = vector.broadcast %228 : vector<1x128xf32> to vector<8x128xf32>
    %249 = arith.mulf %247, %248 : vector<8x128xf32>
    %250 = vector.broadcast %229 : vector<1x128xf32> to vector<8x128xf32>
    %251 = arith.addf %249, %250 : vector<8x128xf32>
    %c0_87 = arith.constant 0 : index
    %c0_88 = arith.constant 0 : index
    %252 = vector.load %arg19[%c0_87, %c0_88] : memref<128x128xbf16, #tpu.memory_space<vmem>>, vector<128x128xbf16>
    %253 = arith.truncf %251 : vector<8x128xf32> to vector<8x128xbf16>
    %cst_89 = arith.constant dense<0.000000e+00> : vector<8x128xf32>
    %254 = tpu.matmul %253, %252, %cst_89 {dimension_numbers = #tpu.dot_dimension_numbers<[1], [0], [0], [1], [0, 0, 1, 1], [], []>} : vector<8x128xbf16>, vector<128x128xbf16>, vector<8x128xf32> -> vector<8x128xf32>
    %c0_90 = arith.constant 0 : index
    %c0_91 = arith.constant 0 : index
    %255 = vector.load %arg20[%c0_90, %c0_91] : memref<1x128xf32, #tpu.memory_space<vmem>>, vector<1x128xf32>
    %256 = vector.broadcast %255 : vector<1x128xf32> to vector<8x128xf32>
    %257 = arith.addf %254, %256 : vector<8x128xf32>
    %cst_92 = arith.constant 0.000000e+00 : f32
    %258 = vector.broadcast %cst_92 : f32 to vector<8x128xf32>
    %259 = arith.maximumf %257, %258 : vector<8x128xf32>
    %c0_93 = arith.constant 0 : index
    %c0_94 = arith.constant 0 : index
    %260 = vector.load %arg21[%c0_93, %c0_94] : memref<128x128xbf16, #tpu.memory_space<vmem>>, vector<128x128xbf16>
    %261 = arith.truncf %259 : vector<8x128xf32> to vector<8x128xbf16>
    %cst_95 = arith.constant dense<0.000000e+00> : vector<8x128xf32>
    %262 = tpu.matmul %261, %260, %cst_95 {dimension_numbers = #tpu.dot_dimension_numbers<[1], [0], [0], [1], [0, 0, 1, 1], [], []>} : vector<8x128xbf16>, vector<128x128xbf16>, vector<8x128xf32> -> vector<8x128xf32>
    %c0_96 = arith.constant 0 : index
    %c0_97 = arith.constant 0 : index
    %263 = vector.load %arg22[%c0_96, %c0_97] : memref<1x128xf32, #tpu.memory_space<vmem>>, vector<1x128xf32>
    %264 = vector.broadcast %263 : vector<1x128xf32> to vector<8x128xf32>
    %265 = arith.addf %262, %264 : vector<8x128xf32>
    %266 = vector.broadcast %5 : vector<8x1xf32> to vector<8x128xf32>
    %267 = arith.mulf %265, %266 : vector<8x128xf32>
    %268 = arith.addf %267, %251 : vector<8x128xf32>
    %c0_98 = arith.constant 0 : index
    %c0_99 = arith.constant 0 : index
    %269 = vector.load %arg23[%c0_98, %c0_99] : memref<1x128xf32, #tpu.memory_space<vmem>>, vector<1x128xf32>
    %c0_100 = arith.constant 0 : index
    %c0_101 = arith.constant 0 : index
    %270 = vector.load %arg24[%c0_100, %c0_101] : memref<1x128xf32, #tpu.memory_space<vmem>>, vector<1x128xf32>
    %cst_102 = arith.constant dense<0.000000e+00> : vector<8xf32>
    %271 = vector.multi_reduction <add>, %268, %cst_102 [1] : vector<8x128xf32> to vector<8xf32>
    %272 = vector.shape_cast %271 : vector<8xf32> to vector<8x1xf32>
    %cst_103 = arith.constant 3.125000e-02 : f32
    %273 = vector.broadcast %cst_103 : f32 to vector<8x1xf32>
    %274 = arith.mulf %272, %273 : vector<8x1xf32>
    %275 = vector.broadcast %274 : vector<8x1xf32> to vector<8x128xf32>
    %276 = arith.subf %268, %275 : vector<8x128xf32>
    %277 = vector.broadcast %12 : vector<1x128xf32> to vector<8x128xf32>
    %278 = arith.mulf %276, %277 : vector<8x128xf32>
    %279 = arith.mulf %278, %278 : vector<8x128xf32>
    %cst_104 = arith.constant dense<0.000000e+00> : vector<8xf32>
    %280 = vector.multi_reduction <add>, %279, %cst_104 [1] : vector<8x128xf32> to vector<8xf32>
    %281 = vector.shape_cast %280 : vector<8xf32> to vector<8x1xf32>
    %cst_105 = arith.constant 3.125000e-02 : f32
    %282 = vector.broadcast %cst_105 : f32 to vector<8x1xf32>
    %283 = arith.mulf %281, %282 : vector<8x1xf32>
    %cst_106 = arith.constant 9.99999997E-7 : f32
    %284 = vector.broadcast %cst_106 : f32 to vector<8x1xf32>
    %285 = arith.addf %283, %284 : vector<8x1xf32>
    %286 = math.rsqrt %285 : vector<8x1xf32>
    %287 = vector.broadcast %286 : vector<8x1xf32> to vector<8x128xf32>
    %288 = arith.mulf %278, %287 : vector<8x128xf32>
    %289 = vector.broadcast %269 : vector<1x128xf32> to vector<8x128xf32>
    %290 = arith.mulf %288, %289 : vector<8x128xf32>
    %291 = vector.broadcast %270 : vector<1x128xf32> to vector<8x128xf32>
    %292 = arith.addf %290, %291 : vector<8x128xf32>
    %c0_107 = arith.constant 0 : index
    %c0_108 = arith.constant 0 : index
    %c0_109 = arith.constant 0 : index
    %293 = vector.load %arg25[%c0_107, %c0_108, %c0_109] : memref<1x8x128xf32, #tpu.memory_space<vmem>>, vector<1x8x128xf32>
    %294 = vector.shape_cast %293 : vector<1x8x128xf32> to vector<8x128xf32>
    %295 = vector.shape_cast %292 : vector<8x128xf32> to vector<1x8x128xf32>
    tpu.vector_store %arg25[%c0_107, %c0_108, %c0_109], %295 {strides = array<i32>} : memref<1x8x128xf32, #tpu.memory_space<vmem>>, vector<1x8x128xf32>,
    return
  }
  func.func @transform_0(%arg0: i32) -> (i32, i32, i32) {
    %c0_i32 = arith.constant 0 : i32
    %c0_i32_0 = arith.constant 0 : i32
    %c0_i32_1 = arith.constant 0 : i32
    return %arg0, %c0_i32, %c0_i32_0 : i32, i32, i32
  }
  func.func @transform_1(%arg0: i32) -> (i32, i32, i32) {
    %c0_i32 = arith.constant 0 : i32
    %c0_i32_0 = arith.constant 0 : i32
    %c0_i32_1 = arith.constant 0 : i32
    return %arg0, %c0_i32, %c0_i32_0 : i32, i32, i32
  }
  func.func @transform_2(%arg0: i32) -> (i32, i32, i32) {
    %c0_i32 = arith.constant 0 : i32
    %c0_i32_0 = arith.constant 0 : i32
    %c0_i32_1 = arith.constant 0 : i32
    return %arg0, %c0_i32, %c0_i32_0 : i32, i32, i32
  }
  func.func @transform_3(%arg0: i32) -> (i32, i32, i32) {
    %c0_i32 = arith.constant 0 : i32
    %c0_i32_0 = arith.constant 0 : i32
    %c0_i32_1 = arith.constant 0 : i32
    return %arg0, %c0_i32, %c0_i32_0 : i32, i32, i32
  }
  func.func @transform_4(%arg0: i32) -> (i32, i32) {
    %c0_i32 = arith.constant 0 : i32
    %c0_i32_0 = arith.constant 0 : i32
    %c0_i32_1 = arith.constant 0 : i32
    return %c0_i32, %c0_i32_0 : i32, i32
  }
  func.func @transform_5(%arg0: i32) -> (i32, i32) {
    %c0_i32 = arith.constant 0 : i32
    %c0_i32_0 = arith.constant 0 : i32
    %c0_i32_1 = arith.constant 0 : i32
    return %c0_i32, %c0_i32_0 : i32, i32
  }
  func.func @transform_6(%arg0: i32) -> (i32, i32) {
    %c0_i32 = arith.constant 0 : i32
    %c0_i32_0 = arith.constant 0 : i32
    %c0_i32_1 = arith.constant 0 : i32
    return %c0_i32, %c0_i32_0 : i32, i32
  }
  func.func @transform_7(%arg0: i32) -> (i32, i32) {
    %c0_i32 = arith.constant 0 : i32
    %c0_i32_0 = arith.constant 0 : i32
    %c0_i32_1 = arith.constant 0 : i32
    return %c0_i32, %c0_i32_0 : i32, i32
  }
  func.func @transform_8(%arg0: i32) -> (i32, i32) {
    %c0_i32 = arith.constant 0 : i32
    %c0_i32_0 = arith.constant 0 : i32
    %c0_i32_1 = arith.constant 0 : i32
    return %c0_i32, %c0_i32_0 : i32, i32
  }
  func.func @transform_9(%arg0: i32) -> (i32, i32) {
    %c0_i32 = arith.constant 0 : i32
    %c0_i32_0 = arith.constant 0 : i32
    %c0_i32_1 = arith.constant 0 : i32
    return %c0_i32, %c0_i32_0 : i32, i32
  }
  func.func @transform_10(%arg0: i32) -> (i32, i32) {
    %c0_i32 = arith.constant 0 : i32
    %c0_i32_0 = arith.constant 0 : i32
    %c0_i32_1 = arith.constant 0 : i32
    return %c0_i32, %c0_i32_0 : i32, i32
  }
  func.func @transform_11(%arg0: i32) -> (i32, i32) {
    %c0_i32 = arith.constant 0 : i32
    %c0_i32_0 = arith.constant 0 : i32
    %c0_i32_1 = arith.constant 0 : i32
    return %c0_i32, %c0_i32_0 : i32, i32
  }
  func.func @transform_12(%arg0: i32) -> (i32, i32) {
    %c0_i32 = arith.constant 0 : i32
    %c0_i32_0 = arith.constant 0 : i32
    %c0_i32_1 = arith.constant 0 : i32
    return %c0_i32, %c0_i32_0 : i32, i32
  }
  func.func @transform_13(%arg0: i32) -> (i32, i32) {
    %c0_i32 = arith.constant 0 : i32
    %c0_i32_0 = arith.constant 0 : i32
    %c0_i32_1 = arith.constant 0 : i32
    return %c0_i32, %c0_i32_0 : i32, i32
  }
  func.func @transform_14(%arg0: i32) -> (i32, i32) {
    %c0_i32 = arith.constant 0 : i32
    %c0_i32_0 = arith.constant 0 : i32
    %c0_i32_1 = arith.constant 0 : i32
    return %c0_i32, %c0_i32_0 : i32, i32
  }
  func.func @transform_15(%arg0: i32) -> (i32, i32) {
    %c0_i32 = arith.constant 0 : i32
    %c0_i32_0 = arith.constant 0 : i32
    %c0_i32_1 = arith.constant 0 : i32
    return %c0_i32, %c0_i32_0 : i32, i32
  }
  func.func @transform_16(%arg0: i32) -> (i32, i32) {
    %c0_i32 = arith.constant 0 : i32
    %c0_i32_0 = arith.constant 0 : i32
    %c0_i32_1 = arith.constant 0 : i32
    return %c0_i32, %c0_i32_0 : i32, i32
  }
  func.func @transform_17(%arg0: i32) -> (i32, i32) {
    %c0_i32 = arith.constant 0 : i32
    %c0_i32_0 = arith.constant 0 : i32
    %c0_i32_1 = arith.constant 0 : i32
    return %c0_i32, %c0_i32_0 : i32, i32
  }
  func.func @transform_18(%arg0: i32) -> (i32, i32) {
    %c0_i32 = arith.constant 0 : i32
    %c0_i32_0 = arith.constant 0 : i32
    %c0_i32_1 = arith.constant 0 : i32
    return %c0_i32, %c0_i32_0 : i32, i32
  }
  func.func @transform_19(%arg0: i32) -> (i32, i32) {
    %c0_i32 = arith.constant 0 : i32
    %c0_i32_0 = arith.constant 0 : i32
    %c0_i32_1 = arith.constant 0 : i32
    return %c0_i32, %c0_i32_0 : i32, i32
  }
  func.func @transform_20(%arg0: i32) -> (i32, i32) {
    %c0_i32 = arith.constant 0 : i32
    %c0_i32_0 = arith.constant 0 : i32
    %c0_i32_1 = arith.constant 0 : i32
    return %c0_i32, %c0_i32_0 : i32, i32
  }
  func.func @transform_21(%arg0: i32) -> (i32, i32) {
    %c0_i32 = arith.constant 0 : i32
    %c0_i32_0 = arith.constant 0 : i32
    %c0_i32_1 = arith.constant 0 : i32
    return %c0_i32, %c0_i32_0 : i32, i32
  }
  func.func @transform_22(%arg0: i32) -> (i32, i32) {
    %c0_i32 = arith.constant 0 : i32
    %c0_i32_0 = arith.constant 0 : i32
    %c0_i32_1 = arith.constant 0 : i32
    return %c0_i32, %c0_i32_0 : i32, i32
  }
  func.func @transform_23(%arg0: i32) -> (i32, i32) {
    %c0_i32 = arith.constant 0 : i32
    %c0_i32_0 = arith.constant 0 : i32
    %c0_i32_1 = arith.constant 0 : i32
    return %c0_i32, %c0_i32_0 : i32, i32
  }
  func.func @transform_24(%arg0: i32) -> (i32, i32, i32) {
    %c0_i32 = arith.constant 0 : i32
    %c0_i32_0 = arith.constant 0 : i32
    %c0_i32_1 = arith.constant 0 : i32
    return %arg0, %c0_i32, %c0_i32_0 : i32, i32, i32
  }
}

</mosaic_0001>

<bundles_post_ra>
// kernel: tpu_custom_call.1
= control target key start
LH: loop header
LB: loop body
LE: loop exit
PB: predicated region body
PF: predicated region fallthrough
CT: control target
= control target key end

     0   :  { %s6929_s0 = inlined_call_operand.vmem [shape: f32[2,8,128], index: 0, kind: input, shape index: {}]   ;;  %s6930_s1 = inlined_call_operand.hbm [shape: f32[2,16,128], index: 1, kind: input, shape index: {}]   ;;  %s6931_s2 = inlined_call_operand.vmem [shape: f32[2,8,1], index: 2, kind: input, shape index: {}]   ;;  %s6932_s3 = inlined_call_operand.hbm [shape: f32[2,1,16], index: 3, kind: input, shape index: {}]   ;;  %s6933_s4 = inlined_call_operand.hbm [shape: bf16[128,1536], index: 4, kind: input, shape index: {}]   ;;  %s6934_s5 = inlined_call_operand.hbm [shape: f32[1,1536], index: 5, kind: input, shape index: {}]   ;;  %s6935_s6 = inlined_call_operand.hbm [shape: bf16[512,128], index: 6, kind: input, shape index: {}]   ;;  %s6936_s7 = inlined_call_operand.vmem [shape: f32[1,128], index: 7, kind: input, shape index: {}]   ;;  %s6937_s8 = inlined_call_operand.vmem [shape: f32[1,128], index: 8, kind: input, shape index: {}]   ;;  %s6938_s9 = inlined_call_operand.vmem [shape: f32[1,128], index: 9, kind: input, shape index: {}]   ;;  %s6939_s10 = inlined_call_operand.hbm [shape: bf16[128,512], index: 10, kind: input, shape index: {}]   ;;  %s6940_s11 = inlined_call_operand.vmem [shape: f32[1,512], index: 11, kind: input, shape index: {}]   ;;  %s6941_s12 = inlined_call_operand.hbm [shape: bf16[128,1024], index: 12, kind: input, shape index: {}]   ;;  %s6942_s13 = inlined_call_operand.vmem [shape: f32[1,1024], index: 13, kind: input, shape index: {}]   ;;  %s6943_s14 = inlined_call_operand.hbm [shape: bf16[512,128], index: 14, kind: input, shape index: {}]   ;;  %s6944_s15 = inlined_call_operand.vmem [shape: f32[1,128], index: 15, kind: input, shape index: {}]   ;;  %s6945_s16 = inlined_call_operand.vmem [shape: f32[1,128], index: 16, kind: input, shape index: {}]   ;;  %s6946_s17 = inlined_call_operand.vmem [shape: f32[1,128], index: 17, kind: input, shape index: {}]   ;;  %s6947_s18 = inlined_call_operand.hbm [shape: bf16[128,128], index: 18, kind: input, shape index: {}]   ;;  %s6948_s19 = inlined_call_operand.vmem [shape: f32[1,128], index: 19, kind: input, shape index: {}]   ;;  %s6949_s20 = inlined_call_operand.hbm [shape: bf16[128,128], index: 20, kind: input, shape index: {}]   ;;  %s6950_s21 = inlined_call_operand.vmem [shape: f32[1,128], index: 21, kind: input, shape index: {}]   ;;  %s6951_s22 = inlined_call_operand.vmem [shape: f32[1,128], index: 22, kind: input, shape index: {}]   ;;  %s6952_s23 = inlined_call_operand.vmem [shape: f32[1,128], index: 23, kind: input, shape index: {}]   ;;  %s6953_s24 = inlined_call_operand.hbm [shape: f32[2,8,128], index: 24, kind: output, shape index: {}]  }
   0x1   :  { %6969 = sst [smem:[#allocation33_spill]] %s6929_s0 }
   0x2   :  { %6970 = sst [smem:[#allocation34_spill]] %s6930_s1 }
   0x3   :  { %6971 = sst [smem:[#allocation35_spill]] %s6931_s2 }
   0x4   :  { %6972 = sst [smem:[#allocation36_spill]] %s6932_s3 }
   0x5   :  { %6973 = sst [smem:[#allocation37_spill]] %s6933_s4 }
   0x6   :  { %6974 = sst [smem:[#allocation38_spill]] %s6934_s5 }
   0x7   :  { %6975 = sst [smem:[#allocation39_spill]] %s6935_s6 }
   0x8   :  { %6976 = sst [smem:[#allocation40_spill]] %s6936_s7 }
   0x9   :  { %6977 = sst [smem:[#allocation41_spill]] %s6937_s8 }
   0xa   :  { %6978 = sst [smem:[#allocation42_spill]] %s6939_s10 }
   0xb   :  { %6979 = sst [smem:[#allocation43_spill]] %s6941_s12 }
   0xc   :  { %6980 = sst [smem:[#allocation44_spill]] %s6943_s14 }
   0xd   :  { %6981 = sst [smem:[#allocation45_spill]] %s6947_s18 }
   0xe   :  { %6982 = sst [smem:[#allocation46_spill]] %s6948_s19 }
   0xf   :  { %6983 = sst [smem:[#allocation47_spill]] %s6949_s20 }
  0x10   :  { %6984 = sst [smem:[#allocation48_spill]] %s6950_s21 }
  0x11   :  { %6985 = sst [smem:[#allocation49_spill]] %s6951_s22 }
  0x12   :  { %6986 = sst [smem:[#allocation50_spill]] %s6952_s23 }
  0x13   :  { %6987 = sst [smem:[#allocation51_spill]] %s6953_s24 }
  0x14   :  { %29 = vsyncpa [#allocation3], 0 }
  0x15   :  { %31 = vsyncpa [#allocation3 + $0x1], 0 }
  0x16   :  { %32 = vsyncpa [#allocation6], 0 }
  0x17   :  { %34 = vsyncpa [#allocation6 + $0x1], 0 }
  0x18   :  { %35 = vsyncpa [#allocation9], 0 }
  0x19   :  { %36 = vsyncpa [#allocation12], 0 }
  0x1a   :  { %37 = vsyncpa [#allocation15], 0 }
  0x1b   :  { %38 = vsyncpa [#allocation18], 0 }
  0x1c   :  { %39 = vsyncpa [#allocation4], 0 }
  0x1d   :  { %41 = vsyncpa [#allocation4 + $0x1], 0  ;;  %s6327_s5 = smov 0   ;;  %s6329_s26 = smov 0  }
  0x1e   :  { %s6331_s27 = smov 0   ;;  %s6333_s28 = smov 0  }
  0x1f LB: > { %6988 = sst [smem:[#allocation28_spill]] %s6164_s5  ;;  %s6178_s6 = smov [#allocation7]   ;;  %s6176_s28 = sphi %s6333_s28, %s7040_s28   ;;  %s6172_s27 = sphi %s6331_s27, %s7042_s27   ;;  %s6168_s26 = sphi %s6329_s26, %s7044_s26   ;;  %s6164_s5 = sphi %s6327_s5, %s7043_s5  }
  0x20   : > { %6989 = sst [smem:[#allocation29_spill]] %s6172_s27  ;;  %s614_s2 = sshll.u32 %s6178_s6, 4  ;;  %s615_s2 = int_to_ptr.vmem [resolvable:$true] %s614_s2 }
  0x21   : > { %s6348_s29 = sadd.s32 4294967295, %s6176_s28   ;;  %p4769_p0 = scmp.ge.s32.totalorder %s6176_s28, 1 }
  0x22   : > { %p6957_p1 = scmp.eq.s32.totalorder %s6348_s29, 0  ;;  %p602_p2 = scmp.lt.s32.totalorder %s6176_s28, 3 }
  0x23   : > { %s6179_s7 = smov [#allocation8]   ;;  %s6180_s25 = smov [#allocation11]  }
  0x24   : > { %p6353_p3 = pnand %p4769_p0, %p602_p2  ;;  %s628_s30 = sshll.u32 %s6179_s7, 4  ;;  %s629_s30 = int_to_ptr.vmem [resolvable:$true] %s628_s30 }
  0x25   : > { %s660_s8 = sshll.u32 %s6180_s25, 4  ;;  %s5835_s1 = scalar_lea.vmem %s615_s2, 12288  ;;  %s6366_s8 = int_to_ptr.vmem [resolvable:$true] %s660_s8 }
  0x26   : > { %s6990_s0 = scalar_select %p6353_p3, 1, 0 }
  0x27   : > { %p5405_p5 = pneg %p6353_p3  ;;  %p5836_p8 = scmp.ne.s32.totalorder %s615_s2, %s5835_s1 }
  0x28   : > { %p5843_p11 = scmp.lt.s32.totalorder %s615_s2, %s615_s2  ;;  %p5844_p12 = scmp.lt.s32.totalorder %s5835_s1, %s5835_s1 }
  0x29   : > { %p6362_p6 = pnand %p5405_p5, %p6957_p1 }
  0x2a   : > { %p5845_p13 = por %p5844_p12, %p5843_p11 }
  0x2b   : > { %p6370_p7 = pneg %p6362_p6 }
  0x2d   : > { %p5838_p9 = pnand %p5836_p8, %p6370_p7 }
  0x2f   : > { %p5839_p10 = pneg %p5838_p9 }
  0x31   : > { %p5846_p0 = pnand %p5845_p13, %p5839_p10 }
  0x33   : > { %5849 = shalt.err (!%p5846_p0)
}
  0x34   : > { %s6181_s6 = smov 768   ;;  %s6182_s7 = smov 48  }
  0x35   : > { %s6993_s23 = sld [smem:[#allocation37_spill]]  ;;  %s5861_s22 = scalar_lea.vmem %s629_s30, 192 }
  0x36   : > { %p5862_p2 = scmp.ne.s32.totalorder %s629_s30, %s5861_s22  ;;  %p5869_p9 = scmp.lt.s32.totalorder %s629_s30, %s629_s30 }
  0x37   : > { %p5870_p4 = scmp.lt.s32.totalorder %s5861_s22, %s5861_s22 }
  0x38   : > { %p5864_p5 = pnand %p5862_p2, %p6370_p7 }
  0x39   : > { %p5871_p1 = por %p5870_p4, %p5869_p9 }
  0x3a   : > { %p5865_p8 = pneg %p5864_p5 }
  0x3b   : > { %5408 = dma.hbm_to_vmem [thread:$0]  (!%p6362_p6), %s6993_s23, 12288, %s615_s2, [#allocation6], %s6181_s6, %s6181_s6, %s6182_s7  }
  0x3c   : > { %p5872_p11 = pnand %p5871_p1, %p5865_p8 }
  0x3e   : > { %5875 = shalt.err (!%p5872_p11)
}
  0x3f   : > { %s6994_s19 = sld [smem:[#allocation38_spill]]  ;;  %s5887_s23 = scalar_lea.vmem %s6366_s8, 4096 }
  0x40   : > { %p5888_p10 = scmp.ne.s32.totalorder %s6366_s8, %s5887_s23  ;;  %p5895_p0 = scmp.lt.s32.totalorder %s6366_s8, %s6366_s8 }
  0x41   : > { %p5896_p4 = scmp.lt.s32.totalorder %s5887_s23, %s5887_s23 }
  0x42   : > { %p5890_p12 = pnand %p5888_p10, %p6370_p7 }
  0x43   : > { %p5897_p1 = por %p5896_p4, %p5895_p0 }
  0x44   : > { %p5891_p13 = pneg %p5890_p12 }
  0x45   : > { %5411 = dma.hbm_to_vmem [thread:$0]  (!%p6362_p6), %s6994_s19, 192, %s629_s30, [#allocation9]  }
  0x46   : > { %p5898_p2 = pnand %p5897_p1, %p5891_p13 }
  0x48   : > { %5901 = shalt.err (!%p5898_p2)
}
  0x49   : > { %s6183_s22 = smov 256   ;;  %s6184_s21 = smov 16  }
  0x4a   : > { %s6995_s10 = sld [smem:[#allocation42_spill]]  ;;  %s6185_s19 = smov [#allocation14]  }
  0x4b   : > { %s692_s30 = sshll.u32 %s6185_s19, 4  ;;  %s6186_s6 = smov [#allocation10]   ;;  %s693_s30 = int_to_ptr.vmem [resolvable:$true] %s692_s30 }
  0x4c   : > { %s638_s7 = sshll.u32 %s6186_s6, 4  ;;  %s5913_s25 = scalar_lea.vmem %s693_s30, 4096  ;;  %s639_s7 = int_to_ptr.vmem [resolvable:$true] %s638_s7 }
  0x4d   : > { %p5914_p5 = scmp.ne.s32.totalorder %s693_s30, %s5913_s25  ;;  %p5921_p11 = scmp.lt.s32.totalorder %s693_s30, %s693_s30 }
  0x4e   : > { %p5922_p10 = scmp.lt.s32.totalorder %s5913_s25, %s5913_s25 }
  0x4f   : > { %p5916_p8 = pnand %p5914_p5, %p6370_p7 }
  0x50   : > { %5417 = dma.hbm_to_vmem [thread:$0]  (!%p6362_p6), %s6995_s10, 4096, %s6366_s8, [#allocation12], %s6183_s22, %s6183_s22, %s6184_s21  }
  0x51   : > { %p5917_p9 = pneg %p5916_p8  ;;  %p5923_p12 = por %p5922_p10, %p5921_p11 }
  0x53   : > { %p5924_p13 = pnand %p5923_p12, %p5917_p9 }
  0x55   : > { %5927 = shalt.err (!%p5924_p13)
}
  0x56   : > { %s6958_s1 = smov 64   ;;  %s6188_s23 = smov 4  }
  0x57   : > { %s6996_s14 = sld [smem:[#allocation44_spill]]  ;;  %s5939_s21 = scalar_lea.vmem %s639_s7, 4096 }
  0x58   : > { %p5940_p0 = scmp.ne.s32.totalorder %s639_s7, %s5939_s21  ;;  %p5947_p2 = scmp.lt.s32.totalorder %s639_s7, %s639_s7 }
  0x59   : > { %p5948_p5 = scmp.lt.s32.totalorder %s5939_s21, %s5939_s21 }
  0x5a   : > { %p5942_p4 = pnand %p5940_p0, %p6370_p7 }
  0x5b   : > { %p5949_p8 = por %p5948_p5, %p5947_p2 }
  0x5c   : > { %p5943_p1 = pneg %p5942_p4 }
  0x5d   : > { %5423 = dma.hbm_to_vmem [thread:$0]  (!%p6362_p6), %s6996_s14, 4096, %s693_s30, [#allocation15], %s6958_s1, %s6958_s1, %s6188_s23  }
  0x5e   : > { %p5950_p9 = pnand %p5949_p8, %p5943_p1 }
  0x60   : > { %5953 = shalt.err (!%p5950_p9)
}
  0x61   : > { %s6997_s19 = sld [smem:[#allocation39_spill]]  ;;  %s6189_s30 = smov [#allocation13]  }
  0x62   : > { %s676_s6 = sshll.u32 %s6189_s30, 4  ;;  %s677_s6 = int_to_ptr.vmem [resolvable:$true] %s676_s6 }
  0x63   : > { %s5965_s25 = scalar_lea.vmem %s677_s6, 8192  ;;  %p5973_p13 = scmp.lt.s32.totalorder %s677_s6, %s677_s6 }
  0x64   : > { %p5966_p11 = scmp.ne.s32.totalorder %s677_s6, %s5965_s25  ;;  %p5974_p0 = scmp.lt.s32.totalorder %s5965_s25, %s5965_s25 }
  0x66   : > { %p5968_p10 = pnand %p5966_p11, %p6370_p7  ;;  %p5975_p4 = por %p5974_p0, %p5973_p13 }
  0x67   : > { %5414 = dma.hbm_to_vmem [thread:$0]  (!%p6362_p6), %s6997_s19, 4096, %s639_s7, [#allocation9], %s6958_s1, %s6958_s1, %s6188_s23  }
  0x68   : > { %p5969_p12 = pneg %p5968_p10 }
  0x6a   : > { %p5976_p1 = pnand %p5975_p4, %p5969_p12 }
  0x6c   : > { %5979 = shalt.err (!%p5976_p1)
}
  0x6d   : > { %s6190_s8 = smov 512   ;;  %s6191_s22 = smov 32  }
  0x6e   : > { %s6998_s12 = sld [smem:[#allocation43_spill]]  ;;  %s6192_s24 = smov [#allocation16]  }
  0x6f   : > { %s714_s2 = sshll.u32 %s6192_s24, 4  ;;  %s6193_s19 = smov [#allocation17]   ;;  %s715_s2 = int_to_ptr.vmem [resolvable:$true] %s714_s2 }
  0x70   : > { %s730_s30 = sshll.u32 %s6193_s19, 4  ;;  %s5991_s1 = scalar_lea.vmem %s715_s2, 1024  ;;  %s731_s30 = int_to_ptr.vmem [resolvable:$true] %s730_s30 }
  0x71   : > { %p5992_p2 = scmp.ne.s32.totalorder %s715_s2, %s5991_s1  ;;  %p5999_p9 = scmp.lt.s32.totalorder %s715_s2, %s715_s2 }
  0x72   : > { %p6000_p11 = scmp.lt.s32.totalorder %s5991_s1, %s5991_s1 }
  0x73   : > { %p5994_p5 = pnand %p5992_p2, %p6370_p7 }
  0x74   : > { %5420 = dma.hbm_to_vmem [thread:$0]  (!%p6362_p6), %s6998_s12, 8192, %s677_s6, [#allocation12], %s6190_s8, %s6190_s8, %s6191_s22  }
  0x75   : > { %p5995_p8 = pneg %p5994_p5  ;;  %p6001_p10 = por %p6000_p11, %p5999_p9 }
  0x77   : > { %p6002_p12 = pnand %p6001_p10, %p5995_p8 }
  0x79   : > { %6005 = shalt.err (!%p6002_p12)
}
  0x7a   : > { %s6999_s6 = smov 64   ;;  %s7000_s18 = sld [smem:[#allocation45_spill]] }
  0x7b   : > { %s6017_s22 = scalar_lea.vmem %s731_s30, 1024  ;;  %p6025_p1 = scmp.lt.s32.totalorder %s731_s30, %s731_s30 }
  0x7c   : > { %p6018_p13 = scmp.ne.s32.totalorder %s731_s30, %s6017_s22  ;;  %p6026_p2 = scmp.lt.s32.totalorder %s6017_s22, %s6017_s22 }
  0x7e   : > { %p6020_p0 = pnand %p6018_p13, %p6370_p7  ;;  %p6027_p5 = por %p6026_p2, %p6025_p1 }
  0x80   : > { %5426 = dma.hbm_to_vmem [thread:$0]  (!%p6362_p6), %s7000_s18, 1024, %s715_s2, [#allocation15], %s6999_s6, %s6999_s6, %s6188_s23  }
  0x81   : > { %p6021_p4 = pneg %p6020_p0 }
  0x83   : > { %p6028_p8 = pnand %p6027_p5, %p6021_p4 }
  0x85   : > { %6031 = shalt.err (!%p6028_p8)
}
  0x86   : > { %s7001_s20 = sld [smem:[#allocation47_spill]]  ;;  %s4768_s3 = sadd.s32 4294967294, %s6176_s28  }
  0x87   : > { %s6449_s4 = sadd.s32 1, %s6176_s28   ;;  %s80_s24 = sadd.s32 1, %s6172_s27 }
  0x88   : > { %7002 = sst [smem:[#allocation30_spill]] %s6449_s4  ;;  %s77_s7 = ssub.s32 %s6176_s28, %s6449_s4 }
  0x89   : > { %p78_p7 = scmp.eq.s32.totalorder %s77_s7, 0  ;;  %p87_p9 = scmp.ne.s32.totalorder %s6172_s27, %s6168_s26 }
  0x8a   : > { %p88_p11 = scmp.eq.s32.totalorder %s6176_s28, 0  ;;  %p93_p10 = scmp.ne.s32.totalorder %s6168_s26, %s6164_s5 }
  0x8b   : > { %s6460_s2 = scalar_select %p78_p7, %s6172_s27, %s80_s24  }
  0x8c   : > { %5429 = dma.hbm_to_vmem [thread:$0]  (!%p6362_p6), %s7001_s20, 1024, %s731_s30, [#allocation18], %s6999_s6, %s6999_s6, %s6188_s23  }
  0x8d   : > { %7003 = sst [smem:[#allocation31_spill]] %s6460_s2  ;;  %p6462_p12 = por %p88_p11, %p87_p9 }
  0x8e   : > { %p7005_p13 = scmp.eq.s32.totalorder %s6348_s29, 0  ;;  %p589_p0 = scmp.eq.s32.totalorder %s6348_s29, 1 }
  0x8f   : > { %p595_p4 = scmp.eq.s32.totalorder %s4768_s3, 1  ;;  %p5449_p1 = scmp.lt.s32.totalorder %s6176_s28, 2 }
  0x90   : > { %p6468_p6 = por %p7005_p13, %p93_p10  ;;  %s6475_s30 = sand.u32 1, %s6172_s27  }
  0x91   : > { %p6477_p2 = por %p589_p0, %p87_p9  ;;  %p6481_p5 = por %p595_p4, %p93_p10 }
  0x92   : > { %s7006_s23 = scalar_select %p6468_p6, 1, 0 }
  0x93   : > { %s7007_s6 = scalar_select %p6477_p2, 1, 0 }
  0x94   : > { %s7008_s25 = scalar_select %p6481_p5, 1, 0 }
  0x95   : > { %s4779_s8 = sshll.u32 %s6475_s30, 4  ;;  %s5092_s22 = sshll.u32 %s6176_s28, 8 }
  0x96   : > { %7009 = sst [smem:[#allocation32_spill]] %s7008_s25  ;;  %s764_s3 = scalar_lea.vmem [#allocation2], %s4779_s8 }
  0x97   : > { %s7010_s7 = sld [smem:[#allocation34_spill]]  ;;  %s771_s10 = sshll.u32 %s764_s3, 4  ;;  %s6492_s10 = int_to_ptr.vmem [resolvable:$true] %s771_s10 }
  0x98   : > { %p6496_p8 = pnand %p5449_p1, %p6462_p12  ;;  %s761_s18 = scalar_lea.sflag [#allocation3], %s6475_s30 }
  0x9a   : > { %p6034_p9 = pneg %p6496_p8 }
  0x9d   : > { %s6490_s24 = scalar_lea.hbm %s7010_s7, %s5092_s22  ;;  %s6037_s19 = scalar_lea.hbm %s7010_s7, 512 }
  0x9e   : > { %s6032_s20 = scalar_lea.hbm %s6490_s24, 256  ;;  %p6038_p12 = scmp.lt.s32.totalorder %s6490_s24, %s7010_s7 }
  0x9f   : > { %p6033_p7 = scmp.ne.s32.totalorder %s6490_s24, %s6032_s20  ;;  %p6039_p13 = scmp.lt.s32.totalorder %s6037_s19, %s6032_s20 }
  0xa1   : > { %p6035_p11 = pnand %p6034_p9, %p6033_p7  ;;  %p6040_p0 = por %p6039_p13, %p6038_p12 }
  0xa3   : > { %p6036_p10 = pneg %p6035_p11 }
  0xa5   : > { %p6041_p4 = pnand %p6040_p0, %p6036_p10 }
  0xa7   : > { %6044 = shalt.err (!%p6041_p4)
}
  0xa8   : > { %s6045_s3 = scalar_lea.vmem %s6492_s10, 256  ;;  %s6194_s8 = smov [#allocation2]  }
  0xa9   : > { %p6046_p1 = scmp.ne.s32.totalorder %s6492_s10, %s6045_s3  ;;  %s6050_s22 = sshll.u32 %s6194_s8, 4  ;;  %s6051_s22 = int_to_ptr.vmem [resolvable:$false] %s6050_s22 }
  0xaa   : > { %s6052_s14 = scalar_lea.vmem %s6051_s22, 512  ;;  %p6053_p5 = scmp.lt.s32.totalorder %s6492_s10, %s6051_s22 }
  0xab   : > { %p6048_p7 = pnand %p6046_p1, %p6034_p9  ;;  %p6054_p2 = scmp.lt.s32.totalorder %s6052_s14, %s6045_s3 }
  0xad   : > { %p6049_p11 = pneg %p6048_p7  ;;  %p6055_p6 = por %p6054_p2, %p6053_p5 }
  0xaf   : > { %p6056_p12 = pnand %p6055_p6, %p6049_p11 }
  0xb1   : > { %6059 = shalt.err (!%p6056_p12)
}
  0xb2   : > { %s6195_s20 = smov 128   ;;  %s6196_s19 = smov 8  }
  0xb3   : > { %5433 = dma.hbm_to_vmem [thread:$0]  (!%p6496_p8), %s6490_s24, 256, %s6492_s10, %s761_s18, %s6195_s20, %s6195_s20, %s6196_s19  }
  0xb4   : > { %s4782_s1 = sshll.u32 %s6176_s28, 4  ;;  %s791_s21 = scalar_lea.vmem [#allocation5], %s6475_s30 }
  0xb5   : > { %s798_s8 = sshll.u32 %s791_s21, 4  ;;  %s7012_s22 = sld [smem:[#allocation36_spill]]  ;;  %s799_s8 = int_to_ptr.vmem [resolvable:$true] %s798_s8 }
  0xb6   : > { %s7013_s2 = sand.u32 1, %s6176_s28  }
  0xb7   : > { %s789_s27 = scalar_lea.sflag [#allocation6], %s7013_s2 }
  0xbb   : > { %s796_s7 = scalar_lea.hbm %s7012_s22, %s4782_s1  ;;  %s6065_s10 = scalar_lea.hbm %s7012_s22, 32 }
  0xbc   : > { %s6060_s4 = scalar_lea.hbm %s796_s7, 16  ;;  %p6066_p10 = scmp.lt.s32.totalorder %s796_s7, %s7012_s22 }
  0xbd   : > { %p6061_p6 = scmp.ne.s32.totalorder %s796_s7, %s6060_s4  ;;  %p6067_p13 = scmp.lt.s32.totalorder %s6065_s10, %s6060_s4 }
  0xbf   : > { %p6063_p2 = pnand %p6061_p6, %p6034_p9  ;;  %p6068_p0 = por %p6067_p13, %p6066_p10 }
  0xc1   : > { %p6064_p5 = pneg %p6063_p2 }
  0xc3   : > { %p6069_p4 = pnand %p6068_p0, %p6064_p5 }
  0xc5   : > { %6072 = shalt.err (!%p6069_p4)
}
  0xc6   : > { %s6073_s24 = scalar_lea.vmem %s799_s8, 16  ;;  %s6197_s2 = smov [#allocation5]  }
  0xc7   : > { %p6074_p1 = scmp.ne.s32.totalorder %s799_s8, %s6073_s24  ;;  %s6078_s20 = sshll.u32 %s6197_s2, 4  ;;  %s6079_s20 = int_to_ptr.vmem [resolvable:$false] %s6078_s20 }
  0xc8   : > { %s6080_s5 = scalar_lea.vmem %s6079_s20, 32  ;;  %p6081_p12 = scmp.lt.s32.totalorder %s799_s8, %s6079_s20 }
  0xc9   : > { %p6076_p7 = pnand %p6074_p1, %p6034_p9  ;;  %p6082_p6 = scmp.lt.s32.totalorder %s6080_s5, %s6073_s24 }
  0xcb   : > { %p6077_p11 = pneg %p6076_p7  ;;  %p6083_p2 = por %p6082_p6, %p6081_p12 }
  0xcd   : > { %p6084_p3 = pnand %p6083_p2, %p6077_p11 }
  0xcf   : > { %6087 = shalt.err (!%p6084_p3)
}
  0xd0   : > { %5436 = dma.hbm_to_vmem [thread:$0]  (!%p6496_p8), %s796_s7, 16, %s799_s8, %s789_s27  }
  0xd1   : > { %p7014_p5 = scmp.ne.s32.totalorder %s6990_s0, 0 }
  0xd2   : > { %s6552_s4 = sand.u32 (!%p7014_p5), 1, %s6168_s26   ;;  %p7015_p9 = scmp.ne.s32.totalorder (!%p7014_p5), %s7006_s23, 0 }
  0xd3   : > { %807 = sbr.rel (%p7014_p5) target bundleno = 3950 (0xf6e), region = 116  ;;  %s4784_s25 = sshll.u32 (!%p7014_p5), %s6552_s4, 4 }
  0xd4   : > { %s810_s19 = scalar_lea.sflag (!%p7014_p5), [#allocation3], %s6552_s4  ;;  %s6556_s1 = scalar_lea.vmem (!%p7014_p5), [#allocation2], %s4784_s25 }
  0xd8   : > { %6131 = dma.done.wait (%p7015_p9), %s810_s19, 256  }
  0xd9   : > { %6133 = vsyncadd (%p7015_p9), %s810_s19, 4294967040  ;;  %s818_s12 = sand.u32 1, %s6348_s29   ;;  %s821_s0 = scalar_lea.vmem [#allocation5], %s6552_s4 }
  0xda   : > { %s819_s27 = scalar_lea.sflag [#allocation6], %s818_s12 }
  0xdb   : > { %6135 = dma.done.wait (%p7015_p9), %s819_s27, 16  }
  0xdc   : > { %6137 = vsyncadd (%p7015_p9), %s819_s27, 4294967280  ;;  %p7016_p3 = scmp.eq.s32.totalorder %s6348_s29, 0 }
  0xde   : > { %6139 = dma.done.wait (%p7016_p3), [#allocation6], 12288   ;;  %p7017_p8 = pmov %p7016_p3 }
  0xdf   : > { %p7018_p10 = pmov %p7016_p3 }
  0xe0   : > { %6141 = vsyncadd (%p7017_p8), [#allocation6], 4294955008 }
  0xe1   : > { %6143 = dma.done.wait (%p7018_p10), [#allocation9], 4288   ;;  %p7019_p13 = pmov %p7016_p3 }
  0xe2   : > { %p7020_p0 = pmov %p7016_p3 }
  0xe3   : > { %6145 = vsyncadd (%p7019_p13), [#allocation9], 4294963008 }
  0xe4   : > { %6147 = dma.done.wait (%p7020_p0), [#allocation12], 12288   ;;  %p7021_p4 = pmov %p7020_p0 }
  0xe5   : > { %p7022_p1 = pmov %p7020_p0 }
  0xe6   : > { %6149 = vsyncadd (%p7021_p4), [#allocation12], 4294955008 }
  0xe7   : > { %6151 = dma.done.wait (%p7022_p1), [#allocation15], 5120   ;;  %p7023_p7 = pmov %p7020_p0 }
  0xe8   : > { %p7024_p11 = pmov %p7020_p0 }
  0xe9   : > { %6153 = vsyncadd (%p7023_p7), [#allocation15], 4294962176 }
  0xea   : > { %6155 = dma.done.wait (%p7024_p11), [#allocation18], 1024   ;;  %p7025_p12 = pmov %p7020_p0 }
  0xeb   : > { %v6198_v0 = vmov 0   ;;  %v5513_v1 = vld [vmem:[#allocation7 + $0x2a4] ss:$48 sps:$4 sm:$0xff]   ;;  %v5515_v2 = vld [vmem:[#allocation7 + $0x2ac] ss:$48 sps:$4 sm:$0xff]   ;;  %p930_p6 = scmp.lt.s32.totalorder %s6348_s29, 1 }
  0xec   : > { %6157 = vsyncadd (%p7025_p12), [#allocation18], 4294966272  ;;  %1622 = vmatprep.mubr.bf16.mxu0 %v6198_v0  ;;  %1663 = vmatprep.mubr.bf16.mxu1 %v6198_v0  ;;  %v5517_v3 = vld [vmem:[#allocation7 + $0x2a0] ss:$48 sps:$4 sm:$0xff]   ;;  %v5518_v4 = vld [vmem:[#allocation7 + $0x2a8] ss:$48 sps:$4 sm:$0xff]  }
  0xed   : > { %5512 = vset.pattern.permute.xlu0 %v6198_v0  ;;  %1590 = vmatprep.subr.bf16.mxu0 %v5513_v1  ;;  %v5519_v5 = vld [vmem:[#allocation7 + $0x244] ss:$48 sps:$4 sm:$0xff]   ;;  %v5521_v6 = vld [vmem:[#allocation7 + $0x24c] ss:$48 sps:$4 sm:$0xff]   ;;  %v5523_v7 = vld [vmem:[#allocation7 + $0x240] ss:$48 sps:$4 sm:$0xff]  }
  0xee   : > { %1631 = vmatprep.subr.bf16.mxu1 %v5515_v2  ;;  %1591 = vmatpush1.bf16.msra.mxu0 %v5517_v3  ;;  %v5524_v8 = vld [vmem:[#allocation7 + $0x248] ss:$48 sps:$4 sm:$0xff]   ;;  %v5525_v9 = vld [vmem:[#allocation7 + $0x1e4] ss:$48 sps:$4 sm:$0xff]   ;;  %v5527_v10 = vld [vmem:[#allocation7 + $0x1ec] ss:$48 sps:$4 sm:$0xff]  }
  0xef   : > { %1632 = vmatpush1.bf16.msra.mxu1 %v5518_v4  ;;  %1592 = vmatprep.subr.bf16.mxu0 %v5519_v5  ;;  %v5529_v11 = vld [vmem:[#allocation7 + $0x1e0] ss:$48 sps:$4 sm:$0xff]   ;;  %v5530_v12 = vld [vmem:[#allocation7 + $0x1e8] ss:$48 sps:$4 sm:$0xff]   ;;  %v5531_v13 = vld [vmem:[#allocation7 + $0x184] ss:$48 sps:$4 sm:$0xff]  }
  0xf0   : > { %1633 = vmatprep.subr.bf16.mxu1 %v5521_v6  ;;  %v5533_v14 = vld [vmem:[#allocation7 + $0x18c] ss:$48 sps:$4 sm:$0xff]   ;;  %v5535_v15 = vld [vmem:[#allocation7 + $0x180] ss:$48 sps:$4 sm:$0xff]   ;;  %v5536_v16 = vld [vmem:[#allocation7 + $0x188] ss:$48 sps:$4 sm:$0xff]  }
  0xf1   : > { %v5537_v17 = vld [vmem:[#allocation7 + $0x124] ss:$48 sps:$4 sm:$0xff]   ;;  %v5539_v18 = vld [vmem:[#allocation7 + $0x12c] ss:$48 sps:$4 sm:$0xff]   ;;  %v5541_v19 = vld [vmem:[#allocation7 + $0x120] ss:$48 sps:$4 sm:$0xff]  }
  0xf2   : > { %1593 = vmatpush1.bf16.msra.mxu0 %v5523_v7  ;;  %v5542_v20 = vld [vmem:[#allocation7 + $0x128] ss:$48 sps:$4 sm:$0xff]   ;;  %v5543_v21 = vld [vmem:[#allocation7 + $0xc4] ss:$48 sps:$4 sm:$0xff]   ;;  %v5545_v22 = vld [vmem:[#allocation7 + $0xcc] ss:$48 sps:$4 sm:$0xff]  }
  0xf3   : > { %1634 = vmatpush1.bf16.msra.mxu1 %v5524_v8  ;;  %1594 = vmatprep.subr.bf16.mxu0 %v5525_v9  ;;  %s6593_s23 = scalar_select %p930_p6, %s6348_s29, 1  ;;  %v5547_v23 = vld [vmem:[#allocation7 + $0xc0] ss:$48 sps:$4 sm:$0xff]   ;;  %v5548_v24 = vld [vmem:[#allocation7 + $0xc8] ss:$48 sps:$4 sm:$0xff]   ;;  %vm6200_vm0 = vmmov 0  }
  0xf4   : > { %1635 = vmatprep.subr.bf16.mxu1 %v5527_v10  ;;  %v5549_v25 = vld [vmem:[#allocation7 + $0x64] ss:$48 sps:$4 sm:$0xff]   ;;  %v5551_v26 = vld [vmem:[#allocation7 + $0x6c] ss:$48 sps:$4 sm:$0xff]   ;;  %v5553_v27 = vld [vmem:[#allocation7 + $0x60] ss:$48 sps:$4 sm:$0xff]  }
  0xf5   : > { %s4794_s7 = sshll.u32 %s6593_s23, 3  ;;  %v5554_v28 = vld [vmem:[#allocation7 + $0x68] ss:$48 sps:$4 sm:$0xff]   ;;  %v5555_v29 = vld [vmem:[#allocation7 + $0x4] ss:$48 sps:$4 sm:$0xff]   ;;  %s7026_s14 = sld [smem:[#allocation33_spill]] }
  0xf6   : > { %1595 = vmatpush1.bf16.msra.mxu0 %v5529_v11  ;;  %v5557_v30 = vld [vmem:[#allocation7 + $0xc] ss:$48 sps:$4 sm:$0xff]   ;;  %v5559_v31 = vld [vmem:[#allocation7] ss:$48 sps:$4 sm:$0xff]   ;;  %v5560_v32 = vld [vmem:[#allocation7 + $0x8] ss:$48 sps:$4 sm:$0xff]  }
  0xf7   : > { %1636 = vmatpush1.bf16.msra.mxu1 %v5530_v12  ;;  %1596 = vmatprep.subr.bf16.mxu0 %v5531_v13  ;;  %v5563_v34 = vld [vmem:[#allocation7 + $0x2b4] ss:$48 sps:$4 sm:$0xff]   ;;  %v5566_v35 = vld [vmem:[#allocation7 + $0x2bc] ss:$48 sps:$4 sm:$0xff]   ;;  %v5561_v37 = vld [vmem:[#allocation7 + $0x2b0] ss:$48 sps:$4 sm:$0xff]  }
  0xf8   : > { %1637 = vmatprep.subr.bf16.mxu1 %v5533_v14  ;;  %v5564_v38 = vld [vmem:[#allocation7 + $0x2b8] ss:$48 sps:$4 sm:$0xff]   ;;  %v5569_v39 = vld [vmem:[#allocation7 + $0x254] ss:$48 sps:$4 sm:$0xff]   ;;  %v5572_v40 = vld [vmem:[#allocation7 + $0x25c] ss:$48 sps:$4 sm:$0xff]  }
  0xf9   : > { %v5567_v41 = vld [vmem:[#allocation7 + $0x250] ss:$48 sps:$4 sm:$0xff]   ;;  %v5570_v42 = vld [vmem:[#allocation7 + $0x258] ss:$48 sps:$4 sm:$0xff]   ;;  %v5575_v43 = vld [vmem:[#allocation7 + $0x1f4] ss:$48 sps:$4 sm:$0xff]  }
  0xfa   : > { %1597 = vmatpush1.bf16.msra.mxu0 %v5535_v15  ;;  %v5578_v44 = vld [vmem:[#allocation7 + $0x1fc] ss:$48 sps:$4 sm:$0xff]   ;;  %v5573_v45 = vld [vmem:[#allocation7 + $0x1f0] ss:$48 sps:$4 sm:$0xff]   ;;  %v5576_v46 = vld [vmem:[#allocation7 + $0x1f8] ss:$48 sps:$4 sm:$0xff]  }
  0xfb   : > { %1638 = vmatpush1.bf16.msra.mxu1 %v5536_v16  ;;  %1598 = vmatprep.subr.bf16.mxu0 %v5537_v17  ;;  %s6601_s3 = scalar_lea.vmem %s7026_s14, %s4794_s7  ;;  %v5581_v47 = vld [vmem:[#allocation7 + $0x194] ss:$48 sps:$4 sm:$0xff]   ;;  %v5584_v48 = vld [vmem:[#allocation7 + $0x19c] ss:$48 sps:$4 sm:$0xff]   ;;  %v5579_v49 = vld [vmem:[#allocation7 + $0x190] ss:$48 sps:$4 sm:$0xff]  }
  0xfc   : > { %1639 = vmatprep.subr.bf16.mxu1 %v5539_v18  ;;  %v939_v33 = vld [vmem:[%s6601_s3] sm:$0xff]  ;;  %v5582_v50 = vld [vmem:[#allocation7 + $0x198] ss:$48 sps:$4 sm:$0xff]   ;;  %s7027_s30 = sld [smem:[#allocation35_spill]]  ;;  %vm1921_vm1 = vcmask 1043456   ;;  %vm1905_vm3 = vcmask 64512  }
  0xfd   : > { %v6604_v36 = vpack.c.bf16 %v939_v33, %v939_v33  ;;  %v5587_v51 = vld [vmem:[#allocation7 + $0x134] ss:$48 sps:$4 sm:$0xff]   ;;  %v5590_v52 = vld [vmem:[#allocation7 + $0x13c] ss:$48 sps:$4 sm:$0xff]   ;;  %v5585_v53 = vld [vmem:[#allocation7 + $0x130] ss:$48 sps:$4 sm:$0xff]  }
  0xfe   : > { %1599 = vmatpush1.bf16.msra.mxu0 %v5541_v19  ;;  %v5588_v54 = vld [vmem:[#allocation7 + $0x138] ss:$48 sps:$4 sm:$0xff]   ;;  %v5593_v55 = vld [vmem:[#allocation7 + $0xd4] ss:$48 sps:$4 sm:$0xff]   ;;  %v5596_v56 = vld [vmem:[#allocation7 + $0xdc] ss:$48 sps:$4 sm:$0xff]  }
  0xff   : > { %1640 = vmatpush1.bf16.msra.mxu1 %v5542_v20  ;;  %1600 = vmatprep.subr.bf16.mxu0 %v5543_v21  ;;  %v5591_v57 = vld [vmem:[#allocation7 + $0xd0] ss:$48 sps:$4 sm:$0xff]   ;;  %v5594_v58 = vld [vmem:[#allocation7 + $0xd8] ss:$48 sps:$4 sm:$0xff]   ;;  %v5599_v59 = vld [vmem:[#allocation7 + $0x74] ss:$48 sps:$4 sm:$0xff]  }
 0x100   : > { %1641 = vmatprep.subr.bf16.mxu1 %v5545_v22  ;;  %v5602_v60 = vld [vmem:[#allocation7 + $0x7c] ss:$48 sps:$4 sm:$0xff]   ;;  %v5597_v61 = vld [vmem:[#allocation7 + $0x70] ss:$48 sps:$4 sm:$0xff]   ;;  %v5600_v62 = vld [vmem:[#allocation7 + $0x78] ss:$48 sps:$4 sm:$0xff]  }
 0x101   : > { %v5605_v63 = vld [vmem:[#allocation7 + $0x14] ss:$48 sps:$4 sm:$0xff]   ;;  %v5608_v1 = vld [vmem:[#allocation7 + $0x1c] ss:$48 sps:$4 sm:$0xff]   ;;  %v5603_v2 = vld [vmem:[#allocation7 + $0x10] ss:$48 sps:$4 sm:$0xff]  }
 0x102   : > { %1601 = vmatpush1.bf16.msra.mxu0 %v5547_v23  ;;  %v5606_v3 = vld [vmem:[#allocation7 + $0x18] ss:$48 sps:$4 sm:$0xff]   ;;  %v5611_v4 = vld [vmem:[#allocation7 + $0x2c4] ss:$48 sps:$4 sm:$0xff]   ;;  %v5614_v5 = vld [vmem:[#allocation7 + $0x2cc] ss:$48 sps:$4 sm:$0xff]   ;;  %s937_s24 = scalar_lea.vmem %s7027_s30, %s4794_s7 }
 0x103   : > { %1642 = vmatpush1.bf16.msra.mxu1 %v5548_v24  ;;  %1602 = vmatprep.subr.bf16.mxu0 %v5549_v25  ;;  %v5609_v6 = vld [vmem:[#allocation7 + $0x2c0] ss:$48 sps:$4 sm:$0xff]   ;;  %v5612_v7 = vld [vmem:[#allocation7 + $0x2c8] ss:$48 sps:$4 sm:$0xff]   ;;  %v5617_v8 = vld [vmem:[#allocation7 + $0x264] ss:$48 sps:$4 sm:$0xff]  }
 0x104   : > { %1643 = vmatprep.subr.bf16.mxu1 %v5551_v26  ;;  %v5620_v9 = vld [vmem:[#allocation7 + $0x26c] ss:$48 sps:$4 sm:$0xff]   ;;  %v5615_v11 = vld [vmem:[#allocation7 + $0x260] ss:$48 sps:$4 sm:$0xff]   ;;  %v5618_v12 = vld [vmem:[#allocation7 + $0x268] ss:$48 sps:$4 sm:$0xff]  }
 0x105   : > { %v942_v10 = vld [vmem:[%s937_s24] sm:$0xff]  ;;  %v5624_v16 = vld [vmem:[#allocation7 + $0x208] ss:$48 sps:$4 sm:$0xff]   ;;  %s7028_s5 = sld [smem:[#allocation40_spill]]  ;;  %vm3590_vm5 = vcmask 130048   ;;  %s4565_s2 = scalar_lea.sflag [#allocation4], %s6552_s4 }
 0x106   : > { %1603 = vmatpush1.bf16.msra.mxu0 %v5553_v27  ;;  %1838 = vperm.xlu0 %5512, %v942_v10   ;;  %v5623_v13 = vld [vmem:[#allocation7 + $0x204] ss:$48 sps:$4 sm:$0xff]   ;;  %v5626_v14 = vld [vmem:[#allocation7 + $0x20c] ss:$48 sps:$4 sm:$0xff]   ;;  %v5621_v15 = vld [vmem:[#allocation7 + $0x200] ss:$48 sps:$4 sm:$0xff]  }
 0x107   : > { %1644 = vmatpush1.bf16.msra.mxu1 %v5554_v28  ;;  %1604 = vmatprep.subr.bf16.mxu0 %v5555_v29  ;;  %v5629_v17 = vld [vmem:[#allocation7 + $0x1a4] ss:$48 sps:$4 sm:$0xff]   ;;  %v5632_v18 = vld [vmem:[#allocation7 + $0x1ac] ss:$48 sps:$4 sm:$0xff]   ;;  %v5627_v19 = vld [vmem:[#allocation7 + $0x1a0] ss:$48 sps:$4 sm:$0xff]  }
 0x108   : > { %1645 = vmatprep.subr.bf16.mxu1 %v5557_v30  ;;  %v5630_v20 = vld [vmem:[#allocation7 + $0x1a8] ss:$48 sps:$4 sm:$0xff]   ;;  %v5635_v21 = vld [vmem:[#allocation7 + $0x144] ss:$48 sps:$4 sm:$0xff]   ;;  %v5638_v22 = vld [vmem:[#allocation7 + $0x14c] ss:$48 sps:$4 sm:$0xff]  }
 0x109   : > { %v5633_v23 = vld [vmem:[#allocation7 + $0x140] ss:$48 sps:$4 sm:$0xff]   ;;  %v5636_v24 = vld [vmem:[#allocation7 + $0x148] ss:$48 sps:$4 sm:$0xff]   ;;  %v5641_v25 = vld [vmem:[#allocation7 + $0xe4] ss:$48 sps:$4 sm:$0xff]  }
 0x10a   : > { %1605 = vmatpush1.bf16.msra.mxu0 %v5559_v31  ;;  %v5644_v26 = vld [vmem:[#allocation7 + $0xec] ss:$48 sps:$4 sm:$0xff]   ;;  %v5639_v27 = vld [vmem:[#allocation7 + $0xe0] ss:$48 sps:$4 sm:$0xff]   ;;  %v5642_v28 = vld [vmem:[#allocation7 + $0xe8] ss:$48 sps:$4 sm:$0xff]  }
 0x10b   : > { %1646 = vmatpush1.bf16.msra.mxu1 %v5560_v32  ;;  %1672 = vmatprep.subr.bf16.mxu0 %v5563_v34  ;;  %v5647_v29 = vld [vmem:[#allocation7 + $0x84] ss:$48 sps:$4 sm:$0xff]   ;;  %v5650_v30 = vld [vmem:[#allocation7 + $0x8c] ss:$48 sps:$4 sm:$0xff]   ;;  %v5645_v31 = vld [vmem:[#allocation7 + $0x80] ss:$48 sps:$4 sm:$0xff]  }
 0x10c   : > { %1713 = vmatprep.subr.bf16.mxu1 %v5566_v35  ;;  %v5648_v32 = vld [vmem:[#allocation7 + $0x88] ss:$48 sps:$4 sm:$0xff]   ;;  %v5653_v33 = vld [vmem:[#allocation7 + $0x24] ss:$48 sps:$4 sm:$0xff]   ;;  %v5656_v34 = vld [vmem:[#allocation7 + $0x2c] ss:$48 sps:$4 sm:$0xff]  }
 0x10d   : > { %1623 = vmatmul.mubr.bf16.vlgmr.msra.gmra.mxu0 %v6604_v36  ;;  %v5651_v35 = vld [vmem:[#allocation7 + $0x20] ss:$48 sps:$4 sm:$0xff]   ;;  %s7029_s12 = sld [smem:[#allocation41_spill]]  ;;  %p7035_p5 = scmp.ne.s32.totalorder %s7007_s6, 0 }
 0x10e   : > { %1664 = vmatmul.mubr.bf16.vlgmr.msra.gmra.mxu1 %v6604_v36  ;;  %1673 = vmatpush1.bf16.msra.mxu0 %v5561_v37  ;;  %v5654_v37 = vld [vmem:[#allocation7 + $0x28] ss:$48 sps:$4 sm:$0xff]   ;;  %s7030_s20 = sld [smem:[#allocation46_spill]] }
 0x10f   : > { %1714 = vmatpush1.bf16.msra.mxu1 %v5564_v38  ;;  %1674 = vmatprep.subr.bf16.mxu0 %v5569_v39  ;;  %v6199_v38 = vmov 0.0   ;;  %s7031_s19 = sld [smem:[#allocation48_spill]] }
 0x110   : > { %1715 = vmatprep.subr.bf16.mxu1 %v5572_v40  ;;  %1704 = vmatprep.mubr.bf16.mxu0 %v6198_v0  ;;  %s7033_s8 = sld [smem:[#allocation50_spill]] }
 0x111   : > { %1745 = vmatprep.mubr.bf16.mxu1 %v6198_v0  ;;  %s7034_s30 = sld [smem:[#allocation51_spill]] }
 0x112   : > { %1675 = vmatpush1.bf16.msra.mxu0 %v5567_v41 }
 0x113   : > { %1716 = vmatpush1.bf16.msra.mxu1 %v5570_v42  ;;  %1676 = vmatprep.subr.bf16.mxu0 %v5575_v43 }
 0x114   : > { %1717 = vmatprep.subr.bf16.mxu1 %v5578_v44 }
 0x116   : > { %1677 = vmatpush1.bf16.msra.mxu0 %v5573_v45 }
 0x117   : > { %1718 = vmatpush1.bf16.msra.mxu1 %v5576_v46  ;;  %1678 = vmatprep.subr.bf16.mxu0 %v5581_v47  ;;  %v944_v46 = vlaneseq }
 0x118   : > { %1719 = vmatprep.subr.bf16.mxu1 %v5584_v48 }
 0x119   : > { %v6630_v47 = vshrl.u32 %v944_v46, 7 }
 0x11a   : > { %1679 = vmatpush1.bf16.msra.mxu0 %v5579_v49  ;;  %v1046_v49 = vld [vmem:[#allocation8] sm:$0xff] }
 0x11b   : > { %1720 = vmatpush1.bf16.msra.mxu1 %v5582_v50  ;;  %1680 = vmatprep.subr.bf16.mxu0 %v5587_v51  ;;  %v1068_v48 = vsub.s32 4, %v6630_v47  ;;  %v1072_v51 = vsub.s32 5, %v6630_v47 }
 0x11c   : > { %1721 = vmatprep.subr.bf16.mxu1 %v5590_v52 }
 0x11d   : > { %v1069_v50 = vrot.slane %v1046_v49, %v1068_v48 }
 0x11e   : > { %1681 = vmatpush1.bf16.msra.mxu0 %v5585_v53  ;;  %v6639_v53 = vsub.s32 0, %v6630_v47 }
 0x11f   : > { %1722 = vmatpush1.bf16.msra.mxu1 %v5588_v54  ;;  %1682 = vmatprep.subr.bf16.mxu0 %v5593_v55 }
 0x120   : > { %1723 = vmatprep.subr.bf16.mxu1 %v5596_v56 }
 0x122   : > { %1683 = vmatpush1.bf16.msra.mxu0 %v5591_v57  ;;  %v1073_v57 = vrot.slane %v1046_v49, %v1072_v51 }
 0x123   : > { %1724 = vmatpush1.bf16.msra.mxu1 %v5594_v58  ;;  %1684 = vmatprep.subr.bf16.mxu0 %v5599_v59 }
 0x124   : > { %1725 = vmatprep.subr.bf16.mxu1 %v5602_v60 }
 0x126   : > { %1685 = vmatpush1.bf16.msra.mxu0 %v5597_v61  ;;  %v1053_v61 = vrot.slane %v1046_v49, %v6639_v53 }
 0x127   : > { %1726 = vmatpush1.bf16.msra.mxu1 %v5600_v62  ;;  %1686 = vmatprep.subr.bf16.mxu0 %v5605_v63 }
 0x128   : > { %1727 = vmatprep.subr.bf16.mxu1 %v5608_v1  ;;  %v1076_v1 = vsub.s32 6, %v6630_v47 }
 0x12a   : > { %1687 = vmatpush1.bf16.msra.mxu0 %v5603_v2 }
 0x12b   : > { %1728 = vmatpush1.bf16.msra.mxu1 %v5606_v3  ;;  %1754 = vmatprep.subr.bf16.mxu0 %v5611_v4 }
 0x12c   : > { %1795 = vmatprep.subr.bf16.mxu1 %v5614_v5 }
 0x12d   : > { %1705 = vmatmul.mubr.bf16.vlgmr.msra.gmra.mxu0 %v6604_v36 }
 0x12e   : > { %1746 = vmatmul.mubr.bf16.vlgmr.msra.gmra.mxu1 %v6604_v36  ;;  %1755 = vmatpush1.bf16.msra.mxu0 %v5609_v6 }
 0x12f   : > { %1796 = vmatpush1.bf16.msra.mxu1 %v5612_v7  ;;  %1756 = vmatprep.subr.bf16.mxu0 %v5617_v8  ;;  %v6647_v7 = vsub.s32 1, %v6630_v47  ;;  %v1077_v8 = vrot.slane %v1046_v49, %v1076_v1 }
 0x130   : > { %1797 = vmatprep.subr.bf16.mxu1 %v5620_v9  ;;  %1786 = vmatprep.mubr.bf16.mxu0 %v6198_v0 }
 0x131   : > { %1827 = vmatprep.mubr.bf16.mxu1 %v6198_v0 }
 0x132   : > { %1757 = vmatpush1.bf16.msra.mxu0 %v5615_v11  ;;  %v1057_v11 = vrot.slane %v1046_v49, %v6647_v7 }
 0x133   : > { %1798 = vmatpush1.bf16.msra.mxu1 %v5618_v12  ;;  %1758 = vmatprep.subr.bf16.mxu0 %v5623_v13 }
 0x134   : > { %1799 = vmatprep.subr.bf16.mxu1 %v5626_v14  ;;  %v1080_v14 = vsub.s32 7, %v6630_v47 }
 0x136   : > { %1759 = vmatpush1.bf16.msra.mxu0 %v5621_v15 }
 0x137   : > { %1800 = vmatpush1.bf16.msra.mxu1 %v5624_v16  ;;  %1760 = vmatprep.subr.bf16.mxu0 %v5629_v17  ;;  %v6658_v16 = vsub.s32 2, %v6630_v47  ;;  %v1081_v17 = vrot.slane %v1046_v49, %v1080_v14 }
 0x138   : > { %1801 = vmatprep.subr.bf16.mxu1 %v5632_v18 }
 0x13a   : > { %1761 = vmatpush1.bf16.msra.mxu0 %v5627_v19 }
 0x13b   : > { %1802 = vmatpush1.bf16.msra.mxu1 %v5630_v20  ;;  %1762 = vmatprep.subr.bf16.mxu0 %v5635_v21  ;;  %v1061_v20 = vrot.slane %v1046_v49, %v6658_v16 }
 0x13c   : > { %1803 = vmatprep.subr.bf16.mxu1 %v5638_v22 }
 0x13e   : > { %1763 = vmatpush1.bf16.msra.mxu0 %v5633_v23 }
 0x13f   : > { %1804 = vmatpush1.bf16.msra.mxu1 %v5636_v24  ;;  %1764 = vmatprep.subr.bf16.mxu0 %v5641_v25  ;;  %v6668_v24 = vsub.s32 3, %v6630_v47 }
 0x140   : > { %1805 = vmatprep.subr.bf16.mxu1 %v5644_v26  ;;  %v1047_v26 = vld [vmem:[#allocation8 + $0x8] sm:$0xf] }
 0x142   : > { %1765 = vmatpush1.bf16.msra.mxu0 %v5639_v27 }
 0x143   : > { %1806 = vmatpush1.bf16.msra.mxu1 %v5642_v28  ;;  %1766 = vmatprep.subr.bf16.mxu0 %v5647_v29  ;;  %v1065_v28 = vrot.slane %v1046_v49, %v6668_v24 }
 0x144   : > { %1807 = vmatprep.subr.bf16.mxu1 %v5650_v30  ;;  %v1085_v30 = vrot.slane %v1047_v26, %v6639_v53 }
 0x146   : > { %1767 = vmatpush1.bf16.msra.mxu0 %v5645_v31  ;;  %v1093_v31 = vrot.slane %v1047_v26, %v6658_v16 }
 0x147   : > { %1808 = vmatpush1.bf16.msra.mxu1 %v5648_v32  ;;  %1768 = vmatprep.subr.bf16.mxu0 %v5653_v33  ;;  %v1089_v32 = vrot.slane %v1047_v26, %v6647_v7  ;;  %v1097_v33 = vrot.slane %v1047_v26, %v6668_v24 }
 0x148   : > { %1809 = vmatprep.subr.bf16.mxu1 %v5656_v34 }
 0x14a   : > { %1769 = vmatpush1.bf16.msra.mxu0 %v5651_v35 }
 0x14b   : > { %1810 = vmatpush1.bf16.msra.mxu1 %v5654_v37  ;;  %5231 = vmatprep.subr.bf16.mxu0 %v6199_v38 }
 0x14c   : > { %5237 = vmatprep.subr.bf16.mxu1 %v6199_v38 }
 0x14d   : > { %1787 = vmatmul.mubr.bf16.vlgmr.msra.gmra.mxu0 %v6604_v36 }
 0x14e   : > { %1828 = vmatmul.mubr.bf16.vlgmr.msra.gmra.mxu1 %v6604_v36  ;;  %5233 = vmatprep.mubr.msk.bf16.mxu0 %vm6200_vm0, %v6199_v38 }
 0x14f   : > { %5239 = vmatprep.mubr.msk.bf16.mxu1 %vm6200_vm0, %v6199_v38 }
 0x181   : > { %v6636_v52 = vpop.permute.xlu0 %1838 }
 0x1cd   : > { %v1624_v39 = vpop.f32.mrf.mxu0 }
 0x1ce   : > { %v1665_v40 = vpop.f32.mrf.mxu1  ;;  %v1625_v6 = vadd.f32 %v1624_v39, %v1053_v61 }
 0x1cf   : > { %v1626_v41 = vpop.f32.mrf.mxu0  ;;  %v1666_v23 = vadd.f32 %v1665_v40, %v1061_v20 }
 0x1d0   : > { %v6627_v42 = vpop.f32.mrf.mxu1  ;;  %v1853_v10 = vpack.c.bf16 %v1625_v6, %v1625_v6  ;;  %v1627_v15 = vadd.f32 %v1626_v41, %v1057_v11 }
 0x1d1   : > { %v1628_v43 = vpop.f32.mrf.mxu0  ;;  %v1855_v27 = vpack.c.bf16 %v1666_v23, %v1666_v23  ;;  %v1668_v34 = vadd.f32 %v6627_v42, %v1065_v28 }
 0x1d2   : > { %v1669_v44 = vpop.f32.mrf.mxu1  ;;  %v1854_v19 = vpack.c.bf16 %v1627_v15, %v1627_v15 }
 0x1d3   : > { %v1629_v36 = vpop.f32.mrf.mxu0 }
 0x1d4   : > { %v1670_v45 = vpop.f32.mrf.mxu1 }
 0x1ed   : > { %v1706_v54 = vpop.f32.mrf.mxu0 }
 0x1ee   : > { %v1747_v55 = vpop.f32.mrf.mxu1  ;;  %v1707_v56 = vadd.f32 %v1706_v54, %v1069_v50  ;;  %v1856_v50 = vpack.c.bf16 %v1668_v34, %v1668_v34 }
 0x1ef   : > { %v1708_v58 = vpop.f32.mrf.mxu0  ;;  %v1748_v12 = vadd.f32 %v1747_v55, %v1077_v8 }
 0x1f0   : > { %v1749_v59 = vpop.f32.mrf.mxu1  ;;  %v1841_v60 = vmul.f32 %v6636_v52, %v1707_v56  ;;  %v1709_v2 = vadd.f32 %v1708_v58, %v1073_v57 }
 0x1f1   : > { %v1710_v62 = vpop.f32.mrf.mxu0  ;;  %v1843_v18 = vmul.f32 %v6636_v52, %v1748_v12  ;;  %v1750_v21 = vadd.f32 %v1749_v59, %v1081_v17 }
 0x1f2   : > { %v1751_v63 = vpop.f32.mrf.mxu1  ;;  %v1857_v3 = vpack.c.bf16 %v1841_v60, %v1841_v60  ;;  %v1842_v9 = vmul.f32 %v6636_v52, %v1709_v2 }
 0x1f3   : > { %v1711_v4 = vpop.f32.mrf.mxu0  ;;  %v1859_v22 = vpack.c.bf16 %v1843_v18, %v1843_v18  ;;  %v1844_v25 = vmul.f32 %v6636_v52, %v1750_v21 }
 0x1f4   : > { %v1752_v5 = vpop.f32.mrf.mxu1  ;;  %5232 = vmatpush3.bf16.xpose.msra.mxu0 %v1857_v3  ;;  %v1858_v13 = vpack.c.bf16 %v1842_v9, %v1842_v9 }
 0x1f5   : > { %5243 = vmatprep.subr.bf16.mxu0 %v6199_v38  ;;  %v1860_v29 = vpack.c.bf16 %v1844_v25, %v1844_v25  ;;  %v6696_v5 = vand.u32 127, %v944_v46 }
 0x1f7   : > { %vm1851_vm2 = vcmp.gt.s32.totalorder %v6696_v5, %v6630_v47  ;;  %vm946_vm4 = vcmp.lt.s32.totalorder %v6696_v5, 32  ;;  %v5707_v5 = vld [vmem:[#allocation11 + $0x80] ss:$16 sps:$4 sm:$0xff]  }
 0x1f8   : > { %v1852_v6 = vsel %vm1851_vm2, -1e+30, %v6199_v38 }
 0x1fb   : > { %5234 = vmatmul.mubr.bf16.vlgmr.msra.gmra.mxu0 %v1853_v10 }
 0x1fc   : > { %5244 = vmatpush3.bf16.xpose.msra.mxu0 %v1858_v13  ;;  %5245 = vmatprep.mubr.msk.bf16.mxu0 %vm6200_vm0, %v6199_v38 }
 0x1fd   : > { %5255 = vmatprep.subr.bf16.mxu0 %v6199_v38 }
 0x203   : > { %5246 = vmatmul.mubr.bf16.vlgmr.msra.gmra.mxu0 %v1854_v19 }
 0x204   : > { %5256 = vmatpush3.bf16.xpose.msra.mxu0 %v1859_v22  ;;  %5257 = vmatprep.mubr.msk.bf16.mxu0 %vm6200_vm0, %v6199_v38 }
 0x205   : > { %5267 = vmatprep.subr.bf16.mxu0 %v6199_v38 }
 0x20b   : > { %5258 = vmatmul.mubr.bf16.vlgmr.msra.gmra.mxu0 %v1855_v27 }
 0x20c   : > { %5268 = vmatpush3.bf16.xpose.msra.mxu0 %v1860_v29  ;;  %5269 = vmatprep.mubr.msk.bf16.mxu0 %vm6200_vm0, %v6199_v38 }
 0x20d   : > { %v1788_v35 = vpop.f32.mrf.mxu0 }
 0x20e   : > { %v1829_v37 = vpop.f32.mrf.mxu1  ;;  %v1789_v39 = vadd.f32 %v1788_v35, %v1085_v30 }
 0x20f   : > { %v1830_v40 = vadd.f32 %v1829_v37, %v1093_v31  ;;  %v1790_v41 = vpop.f32.mrf.mxu0 }
 0x210   : > { %v1831_v43 = vpop.f32.mrf.mxu1  ;;  %v1845_v44 = vmul.f32 %v6636_v52, %v1789_v39  ;;  %v1791_v45 = vadd.f32 %v1790_v41, %v1089_v32 }
 0x211   : > { %v1847_v36 = vmul.f32 %v6636_v52, %v1830_v40  ;;  %v1832_v49 = vadd.f32 %v1831_v43, %v1097_v33  ;;  %v1792_v54 = vpop.f32.mrf.mxu0 }
 0x212   : > { %v1833_v55 = vpop.f32.mrf.mxu1  ;;  %v1861_v56 = vpack.c.bf16 %v1845_v44, %v1845_v44  ;;  %v1846_v42 = vmul.f32 %v6636_v52, %v1791_v45 }
 0x213   : > { %v1863_v57 = vpack.c.bf16 %v1847_v36, %v1847_v36  ;;  %v1848_v58 = vmul.f32 %v6636_v52, %v1832_v49  ;;  %5270 = vmatmul.mubr.bf16.vlgmr.msra.gmra.mxu0 %v1856_v50  ;;  %v1793_v59 = vpop.f32.mrf.mxu0 }
 0x214   : > { %v1834_v60 = vpop.f32.mrf.mxu1  ;;  %v1862_v61 = vpack.c.bf16 %v1846_v42, %v1846_v42  ;;  %v1923_v63 = vsel %vm1921_vm1, %v1861_v56, 0 }
 0x215   : > { %v1864_v62 = vpack.c.bf16 %v1848_v58, %v1848_v58  ;;  %v6686_v2 = vsel %vm1921_vm1, %v1863_v57, 0  ;;  %5238 = vmatpush3.bf16.msra.mxu1 %v1923_v63  ;;  %v5659_v63 = vld [vmem:[#allocation10 + $0x70] sm:$0xff]  }
 0x216   : > { %5249 = vmatprep.subr.bf16.mxu1 %v6199_v38  ;;  %v6690_v3 = vsel %vm1921_vm1, %v1862_v61, 0  ;;  %v5657_v61 = vld [vmem:[#allocation10 + $0x78] sm:$0xff]  }
 0x217   : > { %v6693_v4 = vsel %vm1921_vm1, %v1864_v62, 0  ;;  %v5658_v62 = vld [vmem:[#allocation10 + $0x38] sm:$0xff]   ;;  %5109 = vmatprep.subr.bf16.mxu0 %v5657_v61 }
 0x218   : > { %5110 = vmatpush3.bf16.msra.mxu0 %v5658_v62 }
 0x219   : > { %5111 = vmatprep.subr.bf16.mxu0 %v5659_v63 }
 0x2bb   : > { %v1899_v8 = vpop.f32.mrf.mxu0 }
 0x2bc   : > { %v1900_v9 = vadd.f32 %v1899_v8, %v1852_v6  ;;  %v5661_v8 = vld [vmem:[#allocation10 + $0x68] sm:$0xff]  }
 0x2bd   : > { %v5235_v10 = vpop.f32.mrf.mxu0 }
 0x2be   : > { %v1906_v11 = vsel %vm1905_vm3, %v1900_v9, -inf  ;;  %v5663_v10 = vld [vmem:[#allocation10 + $0x60] sm:$0xff]  }
 0x2bf   : > { %1907 = vmax.xlane.f32.xlu0 %v1906_v11  ;;  %v1902_v12 = vpop.f32.mrf.mxu0  ;;  %v5664_v11 = vld [vmem:[#allocation10 + $0x20] sm:$0xff]  }
 0x2c0   : > { %v5665_v12 = vld [vmem:[#allocation10 + $0x58] sm:$0xff]  }
 0x2c1   : > { %v5236_v13 = vpop.f32.mrf.mxu0 }
 0x2c2   : > { %v5667_v13 = vld [vmem:[#allocation10 + $0x18] sm:$0xff]  }
 0x2c3   : > { %v1999_v15 = vpop.f32.mrf.mxu0 }
 0x2c4   : > { %v2000_v17 = vadd.f32 %v1999_v15, %v1852_v6 }
 0x2c5   : > { %v5247_v18 = vpop.f32.mrf.mxu0 }
 0x2c6   : > { %v2005_v46 = vsel %vm1905_vm3, %v2000_v17, -inf }
 0x2c7   : > { %2006 = vmax.xlane.f32.xlu1 %v2005_v46  ;;  %v2002_v19 = vpop.f32.mrf.mxu0 }
 0x2c9   : > { %v5248_v20 = vpop.f32.mrf.mxu0 }
 0x2cb   : > { %v2097_v21 = vpop.f32.mrf.mxu0 }
 0x2cc   : > { %v2098_v22 = vadd.f32 %v2097_v21, %v1852_v6 }
 0x2cd   : > { %v5259_v23 = vpop.f32.mrf.mxu0 }
 0x2ce   : > { %v2103_v25 = vsel %vm1905_vm3, %v2098_v22, -inf }
 0x2cf   : > { %2104 = vmax.xlane.f32.xlu1 %v2103_v25  ;;  %v2100_v26 = vpop.f32.mrf.mxu0 }
 0x2d1   : > { %v5260_v27 = vpop.f32.mrf.mxu0 }
 0x2d3   : > { %v2195_v28 = vpop.f32.mrf.mxu0 }
 0x2d4   : > { %v2196_v29 = vadd.f32 %v2195_v28, %v1852_v6  ;;  %v5660_v6 = vld [vmem:[#allocation10 + $0x30] sm:$0xff]   ;;  %v5666_v28 = vld [vmem:[#allocation10 + $0xf8] sm:$0xff]  }
 0x2d5   : > { %v5271_v30 = vpop.f32.mrf.mxu0  ;;  %5112 = vmatpush3.bf16.msra.mxu0 %v5660_v6 }
 0x2d6   : > { %v2201_v31 = vsel %vm1905_vm3, %v2196_v29, -inf  ;;  %5113 = vmatprep.subr.bf16.mxu0 %v5661_v8 }
 0x2d7   : > { %2202 = vmax.xlane.f32.xlu1 %v2201_v31  ;;  %v2198_v32 = vpop.f32.mrf.mxu0 }
 0x2d8   : > { %v5669_v32 = vld [vmem:[#allocation10 + $0x50] sm:$0xff]  }
 0x2d9   : > { %v5272_v33 = vpop.f32.mrf.mxu0 }
 0x2da   : > { %v5670_v33 = vld [vmem:[#allocation10 + $0xf0] sm:$0xff]  }
 0x348   : > { %v1908_v34 = vpop.xlane.xlu0 %1907 }
 0x349   : > { %v1909_v35 = vsub.f32 %v1900_v9, %v1908_v34  ;;  %v5662_v9 = vld [vmem:[#allocation10 + $0x28] sm:$0xff]   ;;  %v5671_v34 = vld [vmem:[#allocation10 + $0x10] sm:$0xff]  }
 0x34a   : > { %5114 = vmatpush3.bf16.msra.mxu0 %v5662_v9 }
 0x34b   : > { %v1910_v37 = vmul.f32 1.442695, %v1909_v35  ;;  %5115 = vmatprep.subr.bf16.mxu0 %v5663_v10  ;;  %v5672_v35 = vld [vmem:[#allocation10 + $0xb0] sm:$0xff]  }
 0x34d   : > { %5785 = vpow2.f32 %v1910_v37  ;;  %v5674_v37 = vld [vmem:[#allocation10 + $0xe8] sm:$0xff]  }
 0x34e   : > { %5116 = vmatpush3.bf16.msra.mxu0 %v5664_v11 }
 0x34f   : > { %5117 = vmatprep.subr.bf16.mxu0 %v5665_v12 }
 0x350   : > { %v2007_v39 = vpop.xlane.xlu1 %2006 }
 0x351   : > { %v2008_v40 = vsub.f32 %v2000_v17, %v2007_v39  ;;  %v5675_v39 = vld [vmem:[#allocation10 + $0x8] sm:$0xff]  }
 0x352   : > { %5118 = vmatpush3.bf16.msra.mxu0 %v5667_v13 }
 0x353   : > { %v2009_v41 = vmul.f32 1.442695, %v2008_v40  ;;  %5119 = vmatprep.subr.bf16.mxu0 %v5669_v32  ;;  %v5676_v40 = vld [vmem:[#allocation10 + $0xa8] sm:$0xff]  }
 0x355   : > { %5787 = vpow2.f32 %v2009_v41  ;;  %v5677_v41 = vld [vmem:[#allocation10 + $0x40] sm:$0xff]  }
 0x356   : > { %5120 = vmatpush3.bf16.msra.mxu0 %v5671_v34 }
 0x358   : > { %v2105_v43 = vpop.xlane.xlu1 %2104 }
 0x359   : > { %v2106_v44 = vsub.f32 %v2098_v22, %v2105_v43  ;;  %v5678_v43 = vld [vmem:[#allocation10 + $0xe0] sm:$0xff]  }
 0x35a   : > { %v5786_v36 = vpop.eup %5785 }
 0x35b   : > { %v2107_v45 = vmul.f32 1.442695, %v2106_v44  ;;  %v1912_v49 = vsel %vm1905_vm3, %v5786_v36, 0.0  ;;  %v5679_v44 = vld [vmem:[#allocation10] sm:$0xff]  }
 0x35c   : > { %1913 = vadd.xlane.f32.xlu1 %v1912_v49  ;;  %v5682_v49 = vld [vmem:[#allocation10 + $0x98] sm:$0xff]  }
 0x35d   : > { %5789 = vpow2.f32 %v2107_v45  ;;  %v5681_v45 = vld [vmem:[#allocation10 + $0xd8] sm:$0xff]  }
 0x360   : > { %v2203_v50 = vpop.xlane.xlu1 %2202 }
 0x361   : > { %v2204_v54 = vsub.f32 %v2196_v29, %v2203_v50  ;;  %v5683_v50 = vld [vmem:[#allocation10 + $0xd0] sm:$0xff]  }
 0x362   : > { %v5788_v55 = vpop.eup %5787 }
 0x363   : > { %v2205_v56 = vmul.f32 1.442695, %v2204_v54  ;;  %v2011_v57 = vsel %vm1905_vm3, %v5788_v55, 0.0  ;;  %v5684_v54 = vld [vmem:[#allocation10 + $0x90] sm:$0xff]  }
 0x364   : > { %2012 = vadd.xlane.f32.xlu1 %v2011_v57  ;;  %v5687_v57 = vld [vmem:[#allocation10 + $0xc0] sm:$0xff]  }
 0x365   : > { %5791 = vpow2.f32 %v2205_v56  ;;  %v5686_v56 = vld [vmem:[#allocation10 + $0x88] sm:$0xff]  }
 0x36a   : > { %v5790_v42 = vpop.eup %5789 }
 0x36b   : > { %v2109_v58 = vsel %vm1905_vm3, %v5790_v42, 0.0 }
 0x36c   : > { %2110 = vadd.xlane.f32.xlu1 %v2109_v58 }
 0x372   : > { %v5792_v59 = vpop.eup %5791 }
 0x373   : > { %v2207_v60 = vsel %vm1905_vm3, %v5792_v59, 0.0 }
 0x374   : > { %2208 = vadd.xlane.f32.xlu1 %v2207_v60 }
 0x3e5   : > { %v1914_v15 = vpop.xlane.xlu1 %1913 }
 0x3e6   : > { %5793 = vrcp.f32 %v1914_v15 }
 0x3ed   : > { %v2013_v17 = vpop.xlane.xlu1 %2012 }
 0x3ee   : > { %5795 = vrcp.f32 %v2013_v17 }
 0x3f3   : > { %v5794_v18 = vpop.eup %5793 }
 0x3f4   : > { %v1916_v46 = vmul.f32 %v5794_v18, %v5786_v36  ;;  %v5680_v36 = vld [vmem:[#allocation10 + $0xa0] sm:$0xff]  }
 0x3f5   : > { %v2111_v19 = vpop.xlane.xlu1 %2110 }
 0x3f6   : > { %5797 = vrcp.f32 %v2111_v19  ;;  %v1917_v20 = vpack.c.bf16 %v1916_v46, %v1916_v46 }
 0x3f8   : > { %5240 = vmatmul.mubr.msk.bf16.vlgmr.msra.gmra.mxu1 %vm1905_vm3, %v1917_v20 }
 0x3f9   : > { %5250 = vmatpush3.bf16.msra.mxu1 %v6690_v3  ;;  %5251 = vmatprep.mubr.msk.bf16.mxu1 %vm6200_vm0, %v6199_v38 }
 0x3fa   : > { %5261 = vmatprep.subr.bf16.mxu1 %v6199_v38 }
 0x3fb   : > { %v5796_v21 = vpop.eup %5795 }
 0x3fc   : > { %v2015_v22 = vmul.f32 %v5796_v21, %v5788_v55  ;;  %v5685_v55 = vld [vmem:[#allocation10 + $0xc8] sm:$0xff]  }
 0x3fd   : > { %v2209_v23 = vpop.xlane.xlu1 %2208 }
 0x3fe   : > { %5799 = vrcp.f32 %v2209_v23  ;;  %v2016_v25 = vpack.c.bf16 %v2015_v22, %v2015_v22 }
 0x400   : > { %5252 = vmatmul.mubr.msk.bf16.vlgmr.msra.gmra.mxu1 %vm1905_vm3, %v2016_v25 }
 0x401   : > { %5262 = vmatpush3.bf16.msra.mxu1 %v6686_v2  ;;  %5263 = vmatprep.mubr.msk.bf16.mxu1 %vm6200_vm0, %v6199_v38  ;;  %v5668_v2 = vld [vmem:[#allocation10 + $0xb8] sm:$0xff]  }
 0x402   : > { %5273 = vmatprep.subr.bf16.mxu1 %v6199_v38 }
 0x403   : > { %v5798_v3 = vpop.eup %5797 }
 0x404   : > { %v2113_v26 = vmul.f32 %v5798_v3, %v5790_v42  ;;  %v5688_v42 = vld [vmem:[#allocation10 + $0x80] sm:$0xff]  }
 0x406   : > { %v2114_v27 = vpack.c.bf16 %v2113_v26, %v2113_v26 }
 0x408   : > { %5264 = vmatmul.mubr.msk.bf16.vlgmr.msra.gmra.mxu1 %vm1905_vm3, %v2114_v27  ;;  %v4897_v27 = vld [vmem:[%s7028_s5] ss:$0 sm:$0xff]  ;;  %s6201_s5 = smov [#allocation19]  }
 0x409   : > { %5274 = vmatpush3.bf16.msra.mxu1 %v6693_v4  ;;  %5275 = vmatprep.mubr.msk.bf16.mxu1 %vm6200_vm0, %v6199_v38  ;;  %v5673_v4 = vld [vmem:[#allocation10 + $0x48] sm:$0xff]   ;;  %s6092_s25 = sshll.u32 %s6201_s5, 4  ;;  %s6093_s25 = int_to_ptr.vmem [resolvable:$false] %s6092_s25 }
 0x40a   : > { %5131 = vmatprep.subr.bf16.mxu1 %v5666_v28  ;;  %5121 = vmatprep.subr.bf16.mxu0 %v5673_v4 }
 0x40b   : > { %v5800_v29 = vpop.eup %5799  ;;  %5122 = vmatpush3.bf16.msra.mxu0 %v5675_v39  ;;  %v5691_v39 = vld [vmem:[#allocation11 + $0xe4] ss:$16 sps:$4 sm:$0xff]  }
 0x40c   : > { %v2211_v30 = vmul.f32 %v5800_v29, %v5792_v59  ;;  %5123 = vmatprep.subr.bf16.mxu0 %v5677_v41  ;;  %v5694_v41 = vld [vmem:[#allocation11 + $0xec] ss:$16 sps:$4 sm:$0xff]  }
 0x40e   : > { %v2212_v31 = vpack.c.bf16 %v2211_v30, %v2211_v30 }
 0x40f   : > { %5124 = vmatpush3.bf16.msra.mxu0 %v5679_v44  ;;  %v5700_v44 = vld [vmem:[#allocation11 + $0xcc] ss:$16 sps:$4 sm:$0xff]  }
 0x410   : > { %5276 = vmatmul.mubr.msk.bf16.vlgmr.msra.gmra.mxu1 %vm1905_vm3, %v2212_v31  ;;  %2851 = vmatprep.subr.bf16.mxu0 %v5691_v39 }
 0x411   : > { %5132 = vmatpush3.bf16.msra.mxu1 %v5668_v2 }
 0x412   : > { %5133 = vmatprep.subr.bf16.mxu1 %v5670_v33 }
 0x415   : > { %5134 = vmatpush3.bf16.msra.mxu1 %v5672_v35  ;;  %v5823_v35 = vld [vmem:[%s6601_s3] sm:$0xff] }
 0x416   : > { %5135 = vmatprep.subr.bf16.mxu1 %v5674_v37  ;;  %v5689_v37 = vld [vmem:[#allocation11 + $0xe0] ss:$16 sps:$4 sm:$0xff]  }
 0x419   : > { %5136 = vmatpush3.bf16.msra.mxu1 %v5676_v40  ;;  %v5692_v40 = vld [vmem:[#allocation11 + $0xe8] ss:$16 sps:$4 sm:$0xff]  }
 0x41a   : > { %5137 = vmatprep.subr.bf16.mxu1 %v5678_v43  ;;  %v5697_v43 = vld [vmem:[#allocation11 + $0xc4] ss:$16 sps:$4 sm:$0xff]  }
 0x41d   : > { %5138 = vmatpush3.bf16.msra.mxu1 %v5680_v36  ;;  %v5695_v36 = vld [vmem:[#allocation11 + $0xc0] ss:$16 sps:$4 sm:$0xff]  }
 0x41e   : > { %5139 = vmatprep.subr.bf16.mxu1 %v5681_v45  ;;  %v5698_v45 = vld [vmem:[#allocation11 + $0xc8] ss:$16 sps:$4 sm:$0xff]  }
 0x421   : > { %5140 = vmatpush3.bf16.msra.mxu1 %v5682_v49 }
 0x422   : > { %5141 = vmatprep.subr.bf16.mxu1 %v5683_v50 }
 0x425   : > { %5142 = vmatpush3.bf16.msra.mxu1 %v5684_v54  ;;  %v6733_v54 = vsel %vm946_vm4, 1.0, %v6199_v38 }
 0x426   : > { %5143 = vmatprep.subr.bf16.mxu1 %v5685_v55 }
 0x429   : > { %5144 = vmatpush3.bf16.msra.mxu1 %v5686_v56 }
 0x42a   : > { %5145 = vmatprep.subr.bf16.mxu1 %v5687_v57 }
 0x42d   : > { %5146 = vmatpush3.bf16.msra.mxu1 %v5688_v42  ;;  %v5703_v42 = vld [vmem:[#allocation11 + $0xa4] ss:$16 sps:$4 sm:$0xff]  }
 0x42e   : > { %2892 = vmatprep.subr.bf16.mxu1 %v5694_v41  ;;  %v2985_v41 = vld [vmem:[#allocation13 + $0x1a0] sm:$0xff] }
 0x4b8   : > { %v1959_v58 = vpop.f32.mrf.mxu1 }
 0x4b9   : > { %v2323_v6 = vpack.c.bf16 %v1959_v58, %v1959_v58  ;;  %v5701_v58 = vld [vmem:[#allocation11 + $0xa0] ss:$16 sps:$4 sm:$0xff]  }
 0x4ba   : > { %v5241_v59 = vpop.f32.mrf.mxu1 }
 0x4bb   : > { %v5706_v59 = vld [vmem:[#allocation11 + $0xac] ss:$16 sps:$4 sm:$0xff]  }
 0x4bc   : > { %v1962_v60 = vpop.f32.mrf.mxu1 }
 0x4bd   : > { %v5704_v60 = vld [vmem:[#allocation11 + $0xa8] ss:$16 sps:$4 sm:$0xff]  }
 0x4be   : > { %v5242_v61 = vpop.f32.mrf.mxu1 }
 0x4bf   : > { %v5709_v61 = vld [vmem:[#allocation11 + $0x84] ss:$16 sps:$4 sm:$0xff]  }
 0x4c0   : > { %v2057_v62 = vpop.f32.mrf.mxu1 }
 0x4c1   : > { %v2324_v63 = vpack.c.bf16 %v2057_v62, %v2057_v62  ;;  %v5710_v62 = vld [vmem:[#allocation11 + $0x88] ss:$16 sps:$4 sm:$0xff]  }
 0x4c2   : > { %v5253_v8 = vpop.f32.mrf.mxu1 }
 0x4c3   : > { %2558 = vmatprep.mubr.bf16.mxu0 %v2324_v63  ;;  %v5712_v63 = vld [vmem:[#allocation11 + $0x8c] ss:$16 sps:$4 sm:$0xff]  }
 0x4c4   : > { %v2060_v9 = vpop.f32.mrf.mxu1  ;;  %2559 = vmatmul.mubr.bf16.vlgmr.msra.gmra.mxu0 %v2323_v6  ;;  %v5715_v6 = vld [vmem:[#allocation11 + $0x64] ss:$16 sps:$4 sm:$0xff]   ;;  %v5718_v8 = vld [vmem:[#allocation11 + $0x6c] ss:$16 sps:$4 sm:$0xff]  }
 0x4c5   : > { %2883 = vmatprep.mubr.bf16.mxu0 %v6198_v0  ;;  %2852 = vmatpush1.bf16.msra.mxu0 %v5689_v37  ;;  %v5713_v9 = vld [vmem:[#allocation11 + $0x60] ss:$16 sps:$4 sm:$0xff]  }
 0x4c6   : > { %v5254_v10 = vpop.f32.mrf.mxu1  ;;  %2853 = vmatprep.subr.bf16.mxu0 %v5697_v43  ;;  %v4931_v37 = vld [vmem:[%s6938_s9] ss:$0 sm:$0xff]  ;;  %v2982_v43 = vld [vmem:[#allocation13 + $0x188] sm:$0xff] }
 0x4c7   : > { %v5716_v10 = vld [vmem:[#allocation11 + $0x68] ss:$16 sps:$4 sm:$0xff]  }
 0x4c8   : > { %v2155_v11 = vpop.f32.mrf.mxu1 }
 0x4c9   : > { %v2325_v46 = vpack.c.bf16 %v2155_v11, %v2155_v11  ;;  %2854 = vmatpush1.bf16.msra.mxu0 %v5695_v36  ;;  %v5721_v11 = vld [vmem:[#allocation11 + $0x44] ss:$16 sps:$4 sm:$0xff]  }
 0x4ca   : > { %v5265_v12 = vpop.f32.mrf.mxu1  ;;  %2855 = vmatprep.subr.bf16.mxu0 %v5703_v42  ;;  %v2974_v42 = vld [vmem:[#allocation13 + $0x148] sm:$0xff] }
 0x4cb   : > { %v5724_v12 = vld [vmem:[#allocation11 + $0x4c] ss:$16 sps:$4 sm:$0xff]  }
 0x4cc   : > { %v2158_v13 = vpop.f32.mrf.mxu1 }
 0x4cd   : > { %2856 = vmatpush1.bf16.msra.mxu0 %v5701_v58  ;;  %v2989_v13 = vld [vmem:[#allocation13 + $0x1c0] sm:$0xff] }
 0x4ce   : > { %v5266_v15 = vpop.f32.mrf.mxu1  ;;  %2857 = vmatprep.subr.bf16.mxu0 %v5709_v61 }
 0x4cf   : > { %v5719_v15 = vld [vmem:[#allocation11 + $0x40] ss:$16 sps:$4 sm:$0xff]  }
 0x4d0   : > { %v2253_v17 = vpop.f32.mrf.mxu1 }
 0x4d1   : > { %v2326_v18 = vpack.c.bf16 %v2253_v17, %v2253_v17  ;;  %2858 = vmatpush1.bf16.msra.mxu0 %v5707_v5  ;;  %v2993_v17 = vld [vmem:[#allocation13 + $0x1e0] sm:$0xff] }
 0x4d2   : > { %v5277_v19 = vpop.f32.mrf.mxu1  ;;  %2859 = vmatprep.subr.bf16.mxu0 %v5715_v6  ;;  %v2965_v5 = vld [vmem:[#allocation13 + $0x100] sm:$0xff]  ;;  %v2970_v6 = vld [vmem:[#allocation13 + $0x128] sm:$0xff] }
 0x4d3   : > { %2598 = vmatprep.mubr.bf16.mxu1 %v2326_v18  ;;  %v5722_v18 = vld [vmem:[#allocation11 + $0x48] ss:$16 sps:$4 sm:$0xff]   ;;  %v5020_v19 = vcombine.low %v2989_v13, %v2993_v17 }
 0x4d4   : > { %v2256_v20 = vpop.f32.mrf.mxu1  ;;  %2599 = vmatmul.mubr.bf16.vlgmr.msra.gmra.mxu1 %v2325_v46  ;;  %v5727_v46 = vld [vmem:[#allocation11 + $0x24] ss:$16 sps:$4 sm:$0xff]  }
 0x4d5   : > { %2924 = vmatprep.mubr.bf16.mxu1 %v6198_v0  ;;  %2893 = vmatpush1.bf16.msra.mxu1 %v5692_v40  ;;  %v5730_v20 = vld [vmem:[#allocation11 + $0x2c] ss:$16 sps:$4 sm:$0xff]   ;;  %v2981_v40 = vld [vmem:[#allocation13 + $0x180] sm:$0xff] }
 0x4d6   : > { %v5278_v21 = vpop.f32.mrf.mxu1  ;;  %2894 = vmatprep.subr.bf16.mxu1 %v5700_v44  ;;  %2860 = vmatpush1.bf16.msra.mxu0 %v5713_v9  ;;  %v2986_v44 = vld [vmem:[#allocation13 + $0x1a8] sm:$0xff]  ;;  %v5012_v58 = vcombine.low %v2981_v40, %v2985_v41 }
 0x4d7   : > { %2861 = vmatprep.subr.bf16.mxu0 %v5721_v11  ;;  %v5725_v21 = vld [vmem:[#allocation11 + $0x20] ss:$16 sps:$4 sm:$0xff]  }
 0x4d8   : > { %v2957_v11 = vld [vmem:[#allocation13 + $0xc0] sm:$0xff] }
 0x4d9   : > { %2895 = vmatpush1.bf16.msra.mxu1 %v5698_v45 }
 0x4da   : > { %2896 = vmatprep.subr.bf16.mxu1 %v5706_v59  ;;  %2862 = vmatpush1.bf16.msra.mxu0 %v5719_v15  ;;  %v5014_v59 = vcombine.low %v2982_v43, %v2986_v44  ;;  %v2958_v15 = vld [vmem:[#allocation13 + $0xc8] sm:$0xff] }
 0x4db   : > { %2863 = vmatprep.subr.bf16.mxu0 %v5727_v46 }
 0x4dd   : > { %2897 = vmatpush1.bf16.msra.mxu1 %v5704_v60 }
 0x4de   : > { %2898 = vmatprep.subr.bf16.mxu1 %v5712_v63  ;;  %2864 = vmatpush1.bf16.msra.mxu0 %v5725_v21  ;;  %v2966_v63 = vld [vmem:[#allocation13 + $0x108] sm:$0xff] }
 0x4df   : > { %v4998_v46 = vcombine.low %v2966_v63, %v2970_v6 }
 0x4e1   : > { %2899 = vmatpush1.bf16.msra.mxu1 %v5710_v62  ;;  %v2969_v62 = vld [vmem:[#allocation13 + $0x120] sm:$0xff] }
 0x4e2   : > { %2900 = vmatprep.subr.bf16.mxu1 %v5718_v8 }
 0x4e5   : > { %2901 = vmatpush1.bf16.msra.mxu1 %v5716_v10  ;;  %v4997_v10 = vcombine.high %v2965_v5, %v2969_v62 }
 0x4e6   : > { %2902 = vmatprep.subr.bf16.mxu1 %v5724_v12  ;;  %v4999_v12 = vcombine.high %v2966_v63, %v2970_v6  ;;  %v2975_v6 = vld [vmem:[#allocation13 + $0x150] sm:$0xff] }
 0x4e9   : > { %2903 = vmatpush1.bf16.msra.mxu1 %v5722_v18  ;;  %v4996_v18 = vcombine.low %v2965_v5, %v2969_v62  ;;  %v2983_v5 = vld [vmem:[#allocation13 + $0x190] sm:$0xff] }
 0x4ea   : > { %2904 = vmatprep.subr.bf16.mxu1 %v5730_v20  ;;  %v2949_v20 = vld [vmem:[#allocation13 + $0x80] sm:$0xff] }
 0x584   : > { %v5125_v22 = vpop.f32.mrf.mxu0 }
 0x586   : > { %v5126_v23 = vpop.f32.mrf.mxu0 }
 0x587   : > { %v5127_v26 = vadd.f32 %v5126_v23, %v5125_v22  ;;  %v5728_v22 = vld [vmem:[#allocation11 + $0x28] ss:$16 sps:$4 sm:$0xff]   ;;  %v5733_v23 = vld [vmem:[#allocation11 + $0x4] ss:$16 sps:$4 sm:$0xff]  }
 0x588   : > { %v5128_v25 = vpop.f32.mrf.mxu0  ;;  %2905 = vmatpush1.bf16.msra.mxu1 %v5728_v22  ;;  %2865 = vmatprep.subr.bf16.mxu0 %v5733_v23  ;;  %v2953_v22 = vld [vmem:[#allocation13 + $0xa0] sm:$0xff]  ;;  %v2950_v23 = vld [vmem:[#allocation13 + $0x88] sm:$0xff] }
 0x589   : > { %v2561_v30 = vadd.f32 %v5127_v26, %v4897_v27  ;;  %v5736_v25 = vld [vmem:[#allocation11 + $0xc] ss:$16 sps:$4 sm:$0xff]   ;;  %v5734_v26 = vld [vmem:[#allocation11 + $0x8] ss:$16 sps:$4 sm:$0xff]   ;;  %v5021_v27 = vcombine.high %v2989_v13, %v2993_v17  ;;  %v2961_v13 = vld [vmem:[#allocation13 + $0xe0] sm:$0xff] }
 0x58a   : > { %v5129_v3 = vpop.f32.mrf.mxu0  ;;  %2906 = vmatprep.subr.bf16.mxu1 %v5736_v25  ;;  %v2962_v17 = vld [vmem:[#allocation13 + $0xe8] sm:$0xff] }
 0x58b   : > { %v5731_v3 = vld [vmem:[#allocation11] ss:$16 sps:$4 sm:$0xff]   ;;  %v4991_v21 = vcombine.high %v2958_v15, %v2962_v17  ;;  %v2954_v25 = vld [vmem:[#allocation13 + $0xa8] sm:$0xff] }
 0x58c   : > { %2866 = vmatpush1.bf16.msra.mxu0 %v5731_v3  ;;  %2907 = vmatpush1.bf16.msra.mxu1 %v5734_v26  ;;  %v4988_v3 = vcombine.low %v2957_v11, %v2961_v13  ;;  %v4990_v26 = vcombine.low %v2958_v15, %v2962_v17  ;;  %v2963_v15 = vld [vmem:[#allocation13 + $0xf0] sm:$0xff] }
 0x58d   : > { %3360 = vmatprep.subr.bf16.mxu0 %v5021_v27  ;;  %v4981_v27 = vcombine.high %v2949_v20, %v2953_v22 }
 0x594   : > { %v5147_v28 = vpop.f32.mrf.mxu1 }
 0x596   : > { %v5148_v29 = vpop.f32.mrf.mxu1 }
 0x597   : > { %v5149_v2 = vadd.f32 %v5148_v29, %v5147_v28  ;;  %v2990_v28 = vld [vmem:[#allocation13 + $0x1c8] sm:$0xff] }
 0x598   : > { %v5150_v31 = vpop.f32.mrf.mxu1  ;;  %v2994_v29 = vld [vmem:[#allocation13 + $0x1e8] sm:$0xff] }
 0x599   : > { %v2601_v32 = vadd.f32 %v5149_v2, %v2561_v30  ;;  %v5023_v30 = vcombine.high %v2990_v28, %v2994_v29  ;;  %v5022_v2 = vcombine.low %v2990_v28, %v2994_v29  ;;  %v2941_v28 = vld [vmem:[#allocation13 + $0x40] sm:$0xff]  ;;  %v4983_v29 = vcombine.high %v2950_v23, %v2954_v25 }
 0x59a   : > { %v5151_v33 = vpop.f32.mrf.mxu1 }
 0x59b   : > { %v2606_v34 = vmul.f32 %v2601_v32, %v6636_v52  ;;  %3403 = vmatprep.subr.bf16.mxu1 %v5023_v30  ;;  %v2945_v30 = vld [vmem:[#allocation13 + $0x60] sm:$0xff] }
 0x59d   : > { %v2607_v4 = vadd.f32 %v5823_v35, %v2606_v34  ;;  %v4930_v35 = vld [vmem:[%s7029_s12] ss:$0 sm:$0xff]  ;;  %s4793_s12 = sshll.u32 %s6552_s4, 3 }
 0x59e   : > { %s929_s14 = scalar_lea.vmem [#allocation19], %s4793_s12 }
 0x59f   : > { %2610 = vadd.xlane.f32.xlu1 %v2607_v4  ;;  %s4578_s3 = sshll.u32 %s929_s14, 4  ;;  %s4579_s3 = int_to_ptr.vmem [resolvable:$true] %s4578_s3 }
 0x5a0   : > { %p6095_p8 = scmp.lt.s32.totalorder %s4579_s3, %s6093_s25 }
 0x628   : > { %v2611_v49 = vpop.xlane.xlu1 %2610 }
 0x629   : > { %v2612_v50 = vmul.f32 0.03125, %v2611_v49  ;;  %v5013_v49 = vcombine.high %v2981_v40, %v2985_v41  ;;  %v2938_v40 = vld [vmem:[#allocation13 + $0x28] sm:$0xff]  ;;  %v4972_v41 = vcombine.low %v2941_v28, %v2945_v30 }
 0x62b   : > { %v2613_v55 = vsub.f32 %v2607_v4, %v2612_v50  ;;  %v2973_v50 = vld [vmem:[#allocation13 + $0x140] sm:$0xff] }
 0x62d   : > { %v6736_v56 = vmul.f32 %v6733_v54, %v2613_v55  ;;  %v5015_v55 = vcombine.high %v2982_v43, %v2986_v44 }
 0x62f   : > { %v2615_v57 = vmul.f32 %v6736_v56, %v6736_v56 }
 0x631   : > { %2616 = vadd.xlane.f32.xlu1 %v2615_v57  ;;  %v2977_v57 = vld [vmem:[#allocation13 + $0x160] sm:$0xff] }
 0x632   : > { %v5005_v60 = vcombine.high %v2973_v50, %v2977_v57  ;;  %v5004_v8 = vcombine.low %v2973_v50, %v2977_v57  ;;  %v940_v50 = vld [vmem:[%s6556_s1] sm:$0xff] }
 0x6ba   : > { %v2617_v31 = vpop.xlane.xlu1 %2616 }
 0x6bb   : > { %v2618_v32 = vmul.f32 0.03125, %v2617_v31  ;;  %v2946_v31 = vld [vmem:[#allocation13 + $0x68] sm:$0xff] }
 0x6bd   : > { %v2619_v33 = vadd.f32 1e-06, %v2618_v32  ;;  %v4980_v32 = vcombine.low %v2949_v20, %v2953_v22  ;;  %v2943_v22 = vld [vmem:[#allocation13 + $0x50] sm:$0xff] }
 0x6bf   : > { %5801 = vrsqrt.f32 %v2619_v33  ;;  %v4982_v33 = vcombine.low %v2950_v23, %v2954_v25  ;;  %v2947_v23 = vld [vmem:[#allocation13 + $0x70] sm:$0xff] }
 0x6cc   : > { %v5802_v34 = vpop.eup %5801 }
 0x6cd   : > { %v2621_v4 = vmul.f32 %v5802_v34, %v6736_v56  ;;  %v2978_v56 = vld [vmem:[#allocation13 + $0x168] sm:$0xff]  ;;  %v4973_v34 = vcombine.high %v2941_v28, %v2945_v30  ;;  %v4976_v28 = vcombine.low %v2943_v22, %v2947_v23 }
 0x6ce   : > { %v5007_v61 = vcombine.high %v2974_v42, %v2978_v56  ;;  %v5006_v9 = vcombine.low %v2974_v42, %v2978_v56  ;;  %v2991_v56 = vld [vmem:[#allocation13 + $0x1d0] sm:$0xff] }
 0x6cf   : > { %v2628_v39 = vmul.f32 %v4930_v35, %v2621_v4  ;;  %v2933_v35 = vld [vmem:[#allocation13] sm:$0xff] }
 0x6d1   : > { %v6747_v36 = vadd.f32 %v4931_v37, %v2628_v39  ;;  %v2937_v37 = vld [vmem:[#allocation13 + $0x20] sm:$0xff]  ;;  %v2934_v39 = vld [vmem:[#allocation13 + $0x8] sm:$0xff] }
 0x6d2   : > { %v4965_v44 = vcombine.high %v2933_v35, %v2937_v37  ;;  %v4966_v57 = vcombine.low %v2934_v39, %v2938_v40 }
 0x6d3   : > { %v2668_v45 = vpack.c.bf16 %v6747_v36, %v6747_v36 }
 0x6d5   : > { %2884 = vmatmul.mubr.bf16.vlgmr.msra.gmra.mxu0 %v2668_v45  ;;  %2925 = vmatmul.mubr.bf16.vlgmr.msra.gmra.mxu1 %v2668_v45  ;;  %v4967_v45 = vcombine.high %v2934_v39, %v2938_v40  ;;  %v2980_v39 = vld [vmem:[#allocation13 + $0x178] sm:$0xff] }
 0x6d6   : > { %3361 = vmatpush1.bf16.msra.mxu0 %v5020_v19  ;;  %3404 = vmatpush1.bf16.msra.mxu1 %v5022_v2  ;;  %v4989_v19 = vcombine.high %v2957_v11, %v2961_v13  ;;  %v2942_v2 = vld [vmem:[#allocation13 + $0x48] sm:$0xff] }
 0x6d7   : > { %3362 = vmatprep.subr.bf16.mxu0 %v5013_v49  ;;  %3405 = vmatprep.subr.bf16.mxu1 %v5015_v55  ;;  %v4975_v4 = vcombine.high %v2942_v2, %v2946_v31  ;;  %v4974_v43 = vcombine.low %v2942_v2, %v2946_v31  ;;  %v4964_v49 = vcombine.low %v2933_v35, %v2937_v37  ;;  %v941_v55 = vld [vmem:[%s6556_s1 + $0x8] sm:$0xff]  ;;  %s7032_s1 = sld [smem:[#allocation49_spill]] }
 0x6d8   : > { %3392 = vmatprep.mubr.bf16.mxu0 %v6198_v0  ;;  %3435 = vmatprep.mubr.bf16.mxu1 %v6198_v0  ;;  %v6755_v42 = vpack.c.bf16 %v941_v55, %v940_v50  ;;  %v2992_v2 = vld [vmem:[#allocation13 + $0x1d8] sm:$0xff] }
 0x6d9   : > { %v2996_v31 = vld [vmem:[#allocation13 + $0x1f8] sm:$0xff] }
 0x6da   : > { %3363 = vmatpush1.bf16.msra.mxu0 %v5012_v58  ;;  %3406 = vmatpush1.bf16.msra.mxu1 %v5014_v59  ;;  %v2995_v58 = vld [vmem:[#allocation13 + $0x1f0] sm:$0xff]  ;;  %v2988_v35 = vld [vmem:[#allocation13 + $0x1b8] sm:$0xff] }
 0x6db   : > { %3364 = vmatprep.subr.bf16.mxu0 %v5005_v60  ;;  %3407 = vmatprep.subr.bf16.mxu1 %v5007_v61  ;;  %v5025_v59 = vcombine.high %v2991_v56, %v2995_v58  ;;  %v5024_v60 = vcombine.low %v2991_v56, %v2995_v58  ;;  %v2987_v61 = vld [vmem:[#allocation13 + $0x1b0] sm:$0xff]  ;;  %v2976_v37 = vld [vmem:[#allocation13 + $0x158] sm:$0xff] }
 0x6dc   : > { %v5017_v62 = vcombine.high %v2983_v5, %v2987_v61  ;;  %v5016_v63 = vcombine.low %v2983_v5, %v2987_v61  ;;  %v2960_v50 = vld [vmem:[#allocation13 + $0xd8] sm:$0xff] }
 0x6dd   : > { %v2964_v55 = vld [vmem:[#allocation13 + $0xf8] sm:$0xff] }
 0x6de   : > { %3365 = vmatpush1.bf16.msra.mxu0 %v5004_v8  ;;  %3408 = vmatpush1.bf16.msra.mxu1 %v5006_v9  ;;  %v2979_v8 = vld [vmem:[#allocation13 + $0x170] sm:$0xff]  ;;  %v4995_v56 = vcombine.high %v2960_v50, %v2964_v55  ;;  %v2952_v58 = vld [vmem:[#allocation13 + $0x98] sm:$0xff] }
 0x6df   : > { %3366 = vmatprep.subr.bf16.mxu0 %v4997_v10  ;;  %3409 = vmatprep.subr.bf16.mxu1 %v4999_v12  ;;  %v2967_v9 = vld [vmem:[#allocation13 + $0x110] sm:$0xff]  ;;  %v5008_v10 = vcombine.low %v2975_v6, %v2979_v8  ;;  %v5009_v11 = vcombine.high %v2975_v6, %v2979_v8 }
 0x6e0   : > { %v2971_v12 = vld [vmem:[#allocation13 + $0x130] sm:$0xff] }
 0x6e1   : > { %v5001_v13 = vcombine.high %v2967_v9, %v2971_v12  ;;  %v5000_v17 = vcombine.low %v2967_v9, %v2971_v12  ;;  %v2936_v9 = vld [vmem:[#allocation13 + $0x18] sm:$0xff] }
 0x6e2   : > { %3367 = vmatpush1.bf16.msra.mxu0 %v4996_v18  ;;  %3410 = vmatpush1.bf16.msra.mxu1 %v4998_v46  ;;  %v2951_v46 = vld [vmem:[#allocation13 + $0x90] sm:$0xff] }
 0x6e3   : > { %3368 = vmatprep.subr.bf16.mxu0 %v4989_v19  ;;  %3411 = vmatprep.subr.bf16.mxu1 %v4991_v21  ;;  %v2955_v19 = vld [vmem:[#allocation13 + $0xb0] sm:$0xff] }
 0x6e4   : > { %v4985_v21 = vcombine.high %v2951_v46, %v2955_v19  ;;  %v4984_v25 = vcombine.low %v2951_v46, %v2955_v19 }
 0x6e6   : > { %3369 = vmatpush1.bf16.msra.mxu0 %v4988_v3  ;;  %3412 = vmatpush1.bf16.msra.mxu1 %v4990_v26  ;;  %v4977_v3 = vcombine.high %v2943_v22, %v2947_v23  ;;  %v2935_v26 = vld [vmem:[#allocation13 + $0x10] sm:$0xff] }
 0x6e7   : > { %3370 = vmatprep.subr.bf16.mxu0 %v4981_v27  ;;  %3413 = vmatprep.subr.bf16.mxu1 %v4983_v29  ;;  %v2939_v27 = vld [vmem:[#allocation13 + $0x30] sm:$0xff] }
 0x6e8   : > { %v4969_v29 = vcombine.high %v2935_v26, %v2939_v27  ;;  %v4968_v30 = vcombine.low %v2935_v26, %v2939_v27 }
 0x6ea   : > { %3371 = vmatpush1.bf16.msra.mxu0 %v4980_v32  ;;  %3414 = vmatpush1.bf16.msra.mxu1 %v4982_v33  ;;  %v2984_v32 = vld [vmem:[#allocation13 + $0x198] sm:$0xff]  ;;  %v5026_v33 = vcombine.low %v2992_v2, %v2996_v31 }
 0x6eb   : > { %3372 = vmatprep.subr.bf16.mxu0 %v4973_v34  ;;  %3415 = vmatprep.subr.bf16.mxu1 %v4975_v4  ;;  %v5027_v34 = vcombine.high %v2992_v2, %v2996_v31  ;;  %v5019_v4 = vcombine.high %v2984_v32, %v2988_v35  ;;  %v5018_v40 = vcombine.low %v2984_v32, %v2988_v35 }
 0x6ee   : > { %3373 = vmatpush1.bf16.msra.mxu0 %v4972_v41  ;;  %3416 = vmatpush1.bf16.msra.mxu1 %v4974_v43  ;;  %v5011_v41 = vcombine.high %v2976_v37, %v2980_v39  ;;  %v2968_v43 = vld [vmem:[#allocation13 + $0x118] sm:$0xff] }
 0x6ef   : > { %3374 = vmatprep.subr.bf16.mxu0 %v4965_v44  ;;  %3417 = vmatprep.subr.bf16.mxu1 %v4967_v45  ;;  %v2972_v44 = vld [vmem:[#allocation13 + $0x138] sm:$0xff]  ;;  %v5010_v45 = vcombine.low %v2976_v37, %v2980_v39 }
 0x6f2   : > { %3375 = vmatpush1.bf16.msra.mxu0 %v4964_v49  ;;  %3418 = vmatpush1.bf16.msra.mxu1 %v4966_v57  ;;  %v5003_v49 = vcombine.high %v2968_v43, %v2972_v44  ;;  %v5002_v57 = vcombine.low %v2968_v43, %v2972_v44 }
 0x6f3   : > { %3446 = vmatprep.subr.bf16.mxu0 %v5025_v59  ;;  %3489 = vmatprep.subr.bf16.mxu1 %v5027_v34  ;;  %v2956_v59 = vld [vmem:[#allocation13 + $0xb8] sm:$0xff] }
 0x6f4   : > { %v4987_v5 = vcombine.high %v2952_v58, %v2956_v59  ;;  %v4986_v61 = vcombine.low %v2952_v58, %v2956_v59 }
 0x6f5   : > { %3393 = vmatmul.mubr.bf16.vlgmr.msra.gmra.mxu0 %v6755_v42  ;;  %3436 = vmatmul.mubr.bf16.vlgmr.msra.gmra.mxu1 %v6755_v42 }
 0x6f6   : > { %3478 = vmatprep.mubr.bf16.mxu0 %v6198_v0  ;;  %3521 = vmatprep.mubr.bf16.mxu1 %v6198_v0  ;;  %v2959_v0 = vld [vmem:[#allocation13 + $0xd0] sm:$0xff] }
 0x6f7   : > { %3447 = vmatpush1.bf16.msra.mxu0 %v5024_v60  ;;  %v4993_v18 = vcombine.high %v2959_v0, %v2963_v15  ;;  %v4992_v20 = vcombine.low %v2959_v0, %v2963_v15  ;;  %3490 = vmatpush1.bf16.msra.mxu1 %v5026_v33  ;;  %v4994_v60 = vcombine.low %v2960_v50, %v2964_v55 }
 0x6f8   : > { %3448 = vmatprep.subr.bf16.mxu0 %v5017_v62  ;;  %3491 = vmatprep.subr.bf16.mxu1 %v5019_v4  ;;  %v2944_v62 = vld [vmem:[#allocation13 + $0x58] sm:$0xff] }
 0x6fb   : > { %3449 = vmatpush1.bf16.msra.mxu0 %v5016_v63  ;;  %3492 = vmatpush1.bf16.msra.mxu1 %v5018_v40  ;;  %v2948_v63 = vld [vmem:[#allocation13 + $0x78] sm:$0xff] }
 0x6fc   : > { %3450 = vmatprep.subr.bf16.mxu0 %v5009_v11  ;;  %3493 = vmatprep.subr.bf16.mxu1 %v5011_v41  ;;  %v4978_v6 = vcombine.low %v2944_v62, %v2948_v63  ;;  %v4979_v8 = vcombine.high %v2944_v62, %v2948_v63 }
 0x6ff   : > { %3451 = vmatpush1.bf16.msra.mxu0 %v5008_v10  ;;  %3494 = vmatpush1.bf16.msra.mxu1 %v5010_v45  ;;  %v2940_v10 = vld [vmem:[#allocation13 + $0x38] sm:$0xff] }
 0x700   : > { %3452 = vmatprep.subr.bf16.mxu0 %v5001_v13  ;;  %3495 = vmatprep.subr.bf16.mxu1 %v5003_v49  ;;  %v4970_v11 = vcombine.low %v2936_v9, %v2940_v10  ;;  %v4971_v12 = vcombine.high %v2936_v9, %v2940_v10 }
 0x703   : > { %3453 = vmatpush1.bf16.msra.mxu0 %v5000_v17  ;;  %3496 = vmatpush1.bf16.msra.mxu1 %v5002_v57 }
 0x704   : > { %3454 = vmatprep.subr.bf16.mxu0 %v4993_v18  ;;  %3497 = vmatprep.subr.bf16.mxu1 %v4995_v56 }
 0x707   : > { %3455 = vmatpush1.bf16.msra.mxu0 %v4992_v20  ;;  %3498 = vmatpush1.bf16.msra.mxu1 %v4994_v60 }
 0x708   : > { %3456 = vmatprep.subr.bf16.mxu0 %v4985_v21  ;;  %3499 = vmatprep.subr.bf16.mxu1 %v4987_v5  ;;  %v6772_v21 = vld [vmem:[%s6942_s13] sm:$0xff] }
 0x709   : > { %v3007_v2 = vrot.slane %v6772_v21, %v6647_v7  ;;  %v3019_v62 = vrot.slane %v6772_v21, %v1068_v48 }
 0x70b   : > { %3457 = vmatpush1.bf16.msra.mxu0 %v4984_v25  ;;  %3500 = vmatpush1.bf16.msra.mxu1 %v4986_v61  ;;  %v2669_v25 = vld [vmem:[%s6940_s11] sm:$0xf] }
 0x70c   : > { %3458 = vmatprep.subr.bf16.mxu0 %v4977_v3  ;;  %3501 = vmatprep.subr.bf16.mxu1 %v4979_v8  ;;  %v2678_v4 = vrot.slane %v2669_v25, %v6647_v7  ;;  %v2682_v45 = vrot.slane %v2669_v25, %v6658_v16  ;;  %v3015_v7 = vrot.slane %v6772_v21, %v6668_v24 }
 0x70d   : > { %v2686_v60 = vrot.slane %v2669_v25, %v6668_v24 }
 0x70f   : > { %3459 = vmatpush1.bf16.msra.mxu0 %v4976_v28  ;;  %3502 = vmatpush1.bf16.msra.mxu1 %v4978_v6  ;;  %v2674_v28 = vrot.slane %v2669_v25, %v6639_v53 }
 0x710   : > { %3460 = vmatprep.subr.bf16.mxu0 %v4969_v29  ;;  %3503 = vmatprep.subr.bf16.mxu1 %v4971_v12  ;;  %v5028_v12 = vld [vmem:[%s821_s0] ss:$0 sm:$0xff]  ;;  %s5089_s0 = sshll.u32 %s6348_s29, 7  ;;  %s6094_s29 = scalar_lea.vmem %s6093_s25, 256 }
 0x711   : > { %s4576_s24 = scalar_lea.hbm %s7034_s30, %s5089_s0 }
 0x713   : > { %3461 = vmatpush1.bf16.msra.mxu0 %v4968_v30  ;;  %3504 = vmatpush1.bf16.msra.mxu1 %v4970_v11 }
 0x714   : > { %5279 = vmatprep.subr.bf16.mxu0 %v6199_v38  ;;  %5285 = vmatprep.subr.bf16.mxu1 %v6199_v38 }
 0x716   : > { %3479 = vmatmul.mubr.bf16.vlgmr.msra.gmra.mxu0 %v6755_v42  ;;  %3522 = vmatmul.mubr.bf16.vlgmr.msra.gmra.mxu1 %v6755_v42  ;;  %v3003_v42 = vrot.slane %v6772_v21, %v6639_v53  ;;  %v3011_v53 = vrot.slane %v6772_v21, %v6658_v16 }
 0x717   : > { %5281 = vmatprep.mubr.msk.bf16.mxu0 %vm6200_vm0, %v6199_v38  ;;  %5287 = vmatprep.mubr.msk.bf16.mxu1 %vm6200_vm0, %v6199_v38 }
 0x795   : > { %v2885_v13 = vpop.f32.mrf.mxu0  ;;  %v2926_v0 = vpop.f32.mrf.mxu1 }
 0x796   : > { %v2886_v31 = vadd.f32 %v2885_v13, %v2674_v28  ;;  %v2927_v57 = vadd.f32 %v2926_v0, %v2682_v45 }
 0x797   : > { %v2887_v15 = vpop.f32.mrf.mxu0  ;;  %v2928_v17 = vpop.f32.mrf.mxu1 }
 0x798   : > { %v3532_v35 = vpack.c.bf16 %v2886_v31, %v2886_v31  ;;  %v2888_v40 = vadd.f32 %v2887_v15, %v2678_v4  ;;  %v3534_v59 = vpack.c.bf16 %v2927_v57, %v2927_v57  ;;  %v2929_v5 = vadd.f32 %v2928_v17, %v2686_v60 }
 0x799   : > { %v2889_v18 = vpop.f32.mrf.mxu0  ;;  %v2930_v46 = vpop.f32.mrf.mxu1 }
 0x79a   : > { %v3533_v49 = vpack.c.bf16 %v2888_v40, %v2888_v40  ;;  %v3535_v61 = vpack.c.bf16 %v2929_v5, %v2929_v5  ;;  %v5737_v5 = vld [vmem:[#allocation14 + $0x78] sm:$0xff]  }
 0x79b   : > { %v2890_v19 = vpop.f32.mrf.mxu0  ;;  %v2931_v20 = vpop.f32.mrf.mxu1 }
 0x7b5   : > { %v3394_v22 = vpop.f32.mrf.mxu0  ;;  %v3437_v32 = vpop.f32.mrf.mxu1 }
 0x7b6   : > { %v3395_v26 = vadd.f32 %v3394_v22, %v3003_v42  ;;  %v3438_v43 = vadd.f32 %v3437_v32, %v3011_v53 }
 0x7b7   : > { %v3396_v23 = vpop.f32.mrf.mxu0  ;;  %v3439_v37 = vpop.f32.mrf.mxu1 }
 0x7b8   : > { %v3397_v34 = vadd.f32 %v3396_v23, %v3007_v2  ;;  %v3440_v56 = vadd.f32 %v3439_v37, %v3015_v7 }
 0x7b9   : > { %v3398_v3 = vpop.f32.mrf.mxu0  ;;  %v3441_v41 = vpop.f32.mrf.mxu1 }
 0x7ba   : > { %v3399_v27 = vadd.f32 %v3398_v3, %v3003_v42  ;;  %v3442_v44 = vadd.f32 %v3441_v41, %v3011_v53 }
 0x7bb   : > { %v3400_v30 = vpop.f32.mrf.mxu0  ;;  %v3443_v55 = vpop.f32.mrf.mxu1 }
 0x7bc   : > { %v3536_v29 = vpack.c.bf16 %v3399_v27, %v3395_v26  ;;  %v3401_v33 = vadd.f32 %v3400_v30, %v3007_v2  ;;  %v3538_v50 = vpack.c.bf16 %v3442_v44, %v3438_v43  ;;  %v3444_v58 = vadd.f32 %v3443_v55, %v3015_v7 }
 0x7be   : > { %5280 = vmatpush3.bf16.xpose.msra.mxu0 %v3536_v29  ;;  %v3537_v39 = vpack.c.bf16 %v3401_v33, %v3397_v34  ;;  %v3539_v16 = vpack.c.bf16 %v3444_v58, %v3440_v56 }
 0x7bf   : > { %5291 = vmatprep.subr.bf16.mxu0 %v6199_v38 }
 0x7c5   : > { %5282 = vmatmul.mubr.bf16.vlgmr.msra.gmra.mxu0 %v3532_v35 }
 0x7c6   : > { %5292 = vmatpush3.bf16.xpose.msra.mxu0 %v3537_v39  ;;  %5293 = vmatprep.mubr.msk.bf16.mxu0 %vm6200_vm0, %v6199_v38 }
 0x7c7   : > { %5303 = vmatprep.subr.bf16.mxu0 %v6199_v38 }
 0x7cd   : > { %5294 = vmatmul.mubr.bf16.vlgmr.msra.gmra.mxu0 %v3533_v49 }
 0x7ce   : > { %5304 = vmatpush3.bf16.xpose.msra.mxu0 %v3538_v50  ;;  %5305 = vmatprep.mubr.msk.bf16.mxu0 %vm6200_vm0, %v6199_v38 }
 0x7cf   : > { %5315 = vmatprep.subr.bf16.mxu0 %v6199_v38 }
 0x7d5   : > { %5306 = vmatmul.mubr.bf16.vlgmr.msra.gmra.mxu0 %v3534_v59 }
 0x7d6   : > { %5316 = vmatpush3.bf16.xpose.msra.mxu0 %v3539_v16  ;;  %5317 = vmatprep.mubr.msk.bf16.mxu0 %vm6200_vm0, %v6199_v38  ;;  %v3480_v63 = vpop.f32.mrf.mxu0 }
 0x7d7   : > { %v3481_v8 = vadd.f32 %v3480_v63, %v3019_v62  ;;  %5169 = vmatprep.subr.bf16.mxu0 %v5737_v5  ;;  %v5740_v63 = vld [vmem:[#allocation14 + $0x30] sm:$0xff]   ;;  %v5765_v5 = vld [vmem:[#allocation14 + $0xc8] sm:$0xff]  }
 0x7d8   : > { %v6801_v6 = vpop.f32.mrf.mxu0 }
 0x7da   : > { %v3484_v9 = vpop.f32.mrf.mxu0 }
 0x7db   : > { %v3485_v24 = vadd.f32 %v3484_v9, %v3019_v62  ;;  %v5739_v62 = vld [vmem:[#allocation14 + $0x70] sm:$0xff]   ;;  %v5742_v9 = vld [vmem:[#allocation14 + $0x28] sm:$0xff]  }
 0x7dc   : > { %v6804_v11 = vpop.f32.mrf.mxu0 }
 0x7dd   : > { %5318 = vmatmul.mubr.bf16.vlgmr.msra.gmra.mxu0 %v3535_v61  ;;  %v3540_v10 = vpack.c.bf16 %v3485_v24, %v3481_v8  ;;  %v5738_v61 = vld [vmem:[#allocation14 + $0x38] sm:$0xff]   ;;  %v5741_v8 = vld [vmem:[#allocation14 + $0x68] sm:$0xff]   ;;  %v5743_v24 = vld [vmem:[#allocation14 + $0x60] sm:$0xff]  }
 0x7de   : > { %5170 = vmatpush3.bf16.msra.mxu0 %v5738_v61  ;;  %v5766_v61 = vld [vmem:[#allocation14 + $0x88] sm:$0xff]  }
 0x7df   : > { %5286 = vmatpush3.bf16.msra.mxu1 %v3540_v10  ;;  %5171 = vmatprep.subr.bf16.mxu0 %v5739_v62  ;;  %v5744_v10 = vld [vmem:[#allocation14 + $0x20] sm:$0xff]  }
 0x7e0   : > { %5297 = vmatprep.subr.bf16.mxu1 %v6199_v38  ;;  %v5767_v62 = vld [vmem:[#allocation14 + $0xc0] sm:$0xff]  }
 0x7e2   : > { %5172 = vmatpush3.bf16.msra.mxu0 %v5740_v63  ;;  %v5768_v63 = vld [vmem:[#allocation14 + $0x80] sm:$0xff]  }
 0x7e3   : > { %5173 = vmatprep.subr.bf16.mxu0 %v5741_v8 }
 0x7e6   : > { %5174 = vmatpush3.bf16.msra.mxu0 %v5742_v9 }
 0x7e7   : > { %5175 = vmatprep.subr.bf16.mxu0 %v5743_v24 }
 0x7ea   : > { %5176 = vmatpush3.bf16.msra.mxu0 %v5744_v10 }
 0x885   : > { %v3584_v13 = vpop.f32.mrf.mxu0 }
 0x886   : > { %v3585_v0 = vadd.f32 %v5028_v12, %v3584_v13  ;;  %v5747_v13 = vld [vmem:[#allocation14 + $0x18] sm:$0xff]  }
 0x887   : > { %v5283_v15 = vpop.f32.mrf.mxu0 }
 0x888   : > { %v3591_v48 = vsel %vm3590_vm5, %v3585_v0, -inf }
 0x889   : > { %3592 = vmax.xlane.f32.xlu0 %v3591_v48  ;;  %v3587_v17 = vpop.f32.mrf.mxu0  ;;  %v3023_v48 = vrot.slane %v6772_v21, %v1072_v51 }
 0x88a   : > { %v3523_v17 = vpop.f32.mrf.mxu1 }
 0x88b   : > { %v5284_v18 = vpop.f32.mrf.mxu0 }
 0x88d   : > { %v3680_v46 = vpop.f32.mrf.mxu0 }
 0x88e   : > { %v3681_v19 = vadd.f32 %v5028_v12, %v3680_v46  ;;  %v3483_v46 = vadd.f32 %v6801_v6, %v3023_v48 }
 0x88f   : > { %v5295_v20 = vpop.f32.mrf.mxu0 }
 0x890   : > { %v3686_v22 = vsel %vm3590_vm5, %v3681_v19, -inf  ;;  %v3525_v20 = vpop.f32.mrf.mxu1 }
 0x891   : > { %3687 = vmax.xlane.f32.xlu1 %v3686_v22  ;;  %v3683_v42 = vpop.f32.mrf.mxu0 }
 0x892   : > { %v3027_v42 = vrot.slane %v6772_v21, %v1076_v1 }
 0x893   : > { %v5296_v23 = vpop.f32.mrf.mxu0 }
 0x894   : > { %v3524_v51 = vadd.f32 %v3523_v17, %v3027_v42 }
 0x895   : > { %v3775_v25 = vpop.f32.mrf.mxu0 }
 0x896   : > { %v3776_v3 = vadd.f32 %v5028_v12, %v3775_v25 }
 0x897   : > { %v5307_v26 = vpop.f32.mrf.mxu0 }
 0x898   : > { %v3781_v27 = vsel %vm3590_vm5, %v3776_v3, -inf  ;;  %v3527_v26 = vpop.f32.mrf.mxu1 }
 0x899   : > { %3782 = vmax.xlane.f32.xlu0 %v3781_v27  ;;  %v3778_v28 = vpop.f32.mrf.mxu0  ;;  %v3528_v27 = vadd.f32 %v3527_v26, %v3027_v42 }
 0x89b   : > { %v5308_v29 = vpop.f32.mrf.mxu0  ;;  %v3542_v28 = vpack.c.bf16 %v3528_v27, %v3524_v51 }
 0x89d   : > { %v3870_v30 = vpop.f32.mrf.mxu0 }
 0x89e   : > { %v3871_v2 = vadd.f32 %v5028_v12, %v3870_v30  ;;  %v5745_v12 = vld [vmem:[#allocation14 + $0x58] sm:$0xff]   ;;  %v3031_v30 = vrot.slane %v6772_v21, %v1080_v14 }
 0x89f   : > { %v5319_v31 = vpop.f32.mrf.mxu0  ;;  %5177 = vmatprep.subr.bf16.mxu0 %v5745_v12  ;;  %v5748_v21 = vld [vmem:[#allocation14 + $0xb8] sm:$0xff]  }
 0x8a0   : > { %v3876_v32 = vsel %vm3590_vm5, %v3871_v2, -inf  ;;  %5178 = vmatpush3.bf16.msra.mxu0 %v5747_v13 }
 0x8a1   : > { %3877 = vmax.xlane.f32.xlu1 %v3876_v32  ;;  %v3873_v33 = vpop.f32.mrf.mxu0  ;;  %v3526_v32 = vadd.f32 %v3525_v20, %v3031_v30 }
 0x8a3   : > { %v5320_v34 = vpop.f32.mrf.mxu0 }
 0x912   : > { %v3593_v35 = vpop.xlane.xlu0 %3592 }
 0x913   : > { %v3594_v4 = vsub.f32 %v3585_v0, %v3593_v35 }
 0x915   : > { %v3595_v37 = vmul.f32 1.442695, %v3594_v4  ;;  %v5746_v4 = vld [vmem:[#allocation14 + $0xf8] sm:$0xff]  }
 0x917   : > { %5803 = vpow2.f32 %v3595_v37 }
 0x91a   : > { %v3688_v39 = vpop.xlane.xlu1 %3687 }
 0x91b   : > { %v3689_v53 = vsub.f32 %v3681_v19, %v3688_v39  ;;  %v3487_v19 = vadd.f32 %v6804_v11, %v3023_v48 }
 0x91d   : > { %v3690_v40 = vmul.f32 1.442695, %v3689_v53  ;;  %v5749_v53 = vld [vmem:[#allocation14 + $0x50] sm:$0xff]  }
 0x91e   : > { %5179 = vmatprep.subr.bf16.mxu0 %v5749_v53 }
 0x91f   : > { %5805 = vpow2.f32 %v3690_v40  ;;  %v5750_v40 = vld [vmem:[#allocation14 + $0xf0] sm:$0xff]  }
 0x922   : > { %v3783_v41 = vpop.xlane.xlu0 %3782 }
 0x923   : > { %v3784_v43 = vsub.f32 %v3776_v3, %v3783_v41  ;;  %v3541_v3 = vpack.c.bf16 %v3487_v19, %v3483_v46  ;;  %v5751_v41 = vld [vmem:[#allocation14 + $0x10] sm:$0xff]  }
 0x924   : > { %v5804_v44 = vpop.eup %5803  ;;  %5180 = vmatpush3.bf16.msra.mxu0 %v5751_v41  ;;  %v5771_v41 = vld [vmem:[#allocation16 + $0x28] sm:$0xff]  }
 0x925   : > { %v3785_v45 = vmul.f32 1.442695, %v3784_v43  ;;  %v3597_v49 = vsel %vm3590_vm5, %v5804_v44, 0.0  ;;  %v5752_v43 = vld [vmem:[#allocation14 + $0xb0] sm:$0xff]  }
 0x926   : > { %3598 = vadd.xlane.f32.xlu0 %v3597_v49  ;;  %v5755_v49 = vld [vmem:[#allocation14 + $0x8] sm:$0xff]  }
 0x927   : > { %5807 = vpow2.f32 %v3785_v45  ;;  %v5754_v45 = vld [vmem:[#allocation14 + $0xe8] sm:$0xff]  }
 0x92a   : > { %v3878_v7 = vpop.xlane.xlu1 %3877 }
 0x92b   : > { %v3879_v50 = vsub.f32 %v3871_v2, %v3878_v7  ;;  %v3529_v2 = vpop.f32.mrf.mxu1  ;;  %v5756_v7 = vld [vmem:[#allocation14 + $0xa8] sm:$0xff]  }
 0x92c   : > { %v5806_v55 = vpop.eup %5805  ;;  %v3530_v33 = vadd.f32 %v3529_v2, %v3031_v30 }
 0x92d   : > { %v3880_v57 = vmul.f32 1.442695, %v3879_v50  ;;  %v3692_v56 = vsel %vm3590_vm5, %v5806_v55, 0.0  ;;  %v5757_v50 = vld [vmem:[#allocation14 + $0x40] sm:$0xff]  }
 0x92e   : > { %3693 = vadd.xlane.f32.xlu1 %v3692_v56  ;;  %v3543_v37 = vpack.c.bf16 %v3530_v33, %v3526_v32  ;;  %v5760_v56 = vld [vmem:[#allocation14 + $0xa0] sm:$0xff]  }
 0x92f   : > { %5809 = vpow2.f32 %v3880_v57  ;;  %v5759_v57 = vld [vmem:[#allocation14] sm:$0xff]  }
 0x934   : > { %v6814_v58 = vpop.eup %5807 }
 0x935   : > { %v3787_v59 = vsel %vm3590_vm5, %v6814_v58, 0.0 }
 0x936   : > { %3788 = vadd.xlane.f32.xlu0 %v3787_v59  ;;  %v5762_v59 = vld [vmem:[#allocation14 + $0x98] sm:$0xff]  }
 0x93c   : > { %v6818_v60 = vpop.eup %5809 }
 0x93d   : > { %v3882_v16 = vsel %vm3590_vm5, %v6818_v60, 0.0 }
 0x93e   : > { %3883 = vadd.xlane.f32.xlu1 %v3882_v16  ;;  %v5764_v16 = vld [vmem:[#allocation14 + $0x90] sm:$0xff]  }
 0x9af   : > { %v3599_v0 = vpop.xlane.xlu0 %3598 }
 0x9b0   : > { %5811 = vrcp.f32 %v3599_v0 }
 0x9b7   : > { %v3694_v15 = vpop.xlane.xlu1 %3693 }
 0x9b8   : > { %5813 = vrcp.f32 %v3694_v15 }
 0x9bd   : > { %v5812_v18 = vpop.eup %5811 }
 0x9be   : > { %v3601_v22 = vmul.f32 %v5812_v18, %v5804_v44  ;;  %v5753_v44 = vld [vmem:[#allocation14 + $0x48] sm:$0xff]  }
 0x9bf   : > { %v3789_v23 = vpop.xlane.xlu0 %3788  ;;  %5181 = vmatprep.subr.bf16.mxu0 %v5753_v44  ;;  %v5774_v44 = vld [vmem:[#allocation16 + $0x10] sm:$0xff]  }
 0x9c0   : > { %5815 = vrcp.f32 %v3789_v23  ;;  %v3602_v25 = vpack.c.bf16 %v3601_v22, %v3601_v22  ;;  %5182 = vmatpush3.bf16.msra.mxu0 %v5755_v49  ;;  %v5776_v49 = vld [vmem:[#allocation16] sm:$0xff]  }
 0x9c1   : > { %5183 = vmatprep.subr.bf16.mxu0 %v5757_v50  ;;  %v5778_v50 = vld [vmem:[#allocation17 + $0x30] sm:$0xff]  }
 0x9c2   : > { %5288 = vmatmul.mubr.msk.bf16.vlgmr.msra.gmra.mxu1 %vm3590_vm5, %v3602_v25 }
 0x9c3   : > { %5298 = vmatpush3.bf16.msra.mxu1 %v3541_v3  ;;  %5299 = vmatprep.mubr.msk.bf16.mxu1 %vm6200_vm0, %v6199_v38 }
 0x9c4   : > { %5309 = vmatprep.subr.bf16.mxu1 %v6199_v38  ;;  %5184 = vmatpush3.bf16.msra.mxu0 %v5759_v57  ;;  %v5780_v57 = vld [vmem:[#allocation17 + $0x20] sm:$0xff]  }
 0x9c5   : > { %v5814_v6 = vpop.eup %5813  ;;  %5327 = vmatprep.subr.bf16.mxu0 %v6199_v38 }
 0x9c6   : > { %v3696_v11 = vmul.f32 %v5814_v6, %v5806_v55  ;;  %v5758_v55 = vld [vmem:[#allocation14 + $0xe0] sm:$0xff]  }
 0x9c7   : > { %v3884_v29 = vpop.xlane.xlu1 %3883 }
 0x9c8   : > { %5817 = vrcp.f32 %v3884_v29  ;;  %v3697_v1 = vpack.c.bf16 %v3696_v11, %v3696_v11  ;;  %v5033_v29 = vld [vmem:[%s6944_s15] ss:$0 sm:$0xff] }
 0x9ca   : > { %5300 = vmatmul.mubr.msk.bf16.vlgmr.msra.gmra.mxu1 %vm3590_vm5, %v3697_v1 }
 0x9cb   : > { %5310 = vmatpush3.bf16.msra.mxu1 %v3542_v28  ;;  %5311 = vmatprep.mubr.msk.bf16.mxu1 %vm6200_vm0, %v6199_v38 }
 0x9cc   : > { %5321 = vmatprep.subr.bf16.mxu1 %v6199_v38 }
 0x9cd   : > { %v5816_v31 = vpop.eup %5815 }
 0x9ce   : > { %v3791_v34 = vmul.f32 %v5816_v31, %v6814_v58  ;;  %v5761_v58 = vld [vmem:[#allocation14 + $0xd8] sm:$0xff]  }
 0x9d0   : > { %v3792_v35 = vpack.c.bf16 %v3791_v34, %v3791_v34 }
 0x9d2   : > { %5312 = vmatmul.mubr.msk.bf16.vlgmr.msra.gmra.mxu1 %vm3590_vm5, %v3792_v35 }
 0x9d3   : > { %5322 = vmatpush3.bf16.msra.mxu1 %v3543_v37  ;;  %5323 = vmatprep.mubr.msk.bf16.mxu1 %vm6200_vm0, %v6199_v38  ;;  %v5769_v37 = vld [vmem:[#allocation16 + $0x38] sm:$0xff]  }
 0x9d4   : > { %5191 = vmatprep.subr.bf16.mxu1 %v5746_v4 }
 0x9d5   : > { %v5818_v47 = vpop.eup %5817 }
 0x9d6   : > { %v3886_v14 = vmul.f32 %v5818_v47, %v6818_v60  ;;  %v5763_v60 = vld [vmem:[#allocation14 + $0xd0] sm:$0xff]  }
 0x9d7   : > { %v5770_v47 = vld [vmem:[#allocation16 + $0x30] sm:$0xff]  }
 0x9d8   : > { %v3887_v39 = vpack.c.bf16 %v3886_v14, %v3886_v14 }
 0x9da   : > { %5324 = vmatmul.mubr.msk.bf16.vlgmr.msra.gmra.mxu1 %vm3590_vm5, %v3887_v39 }
 0x9db   : > { %5192 = vmatpush3.bf16.msra.mxu1 %v5748_v21 }
 0x9dc   : > { %5193 = vmatprep.subr.bf16.mxu1 %v5750_v40 }
 0x9df   : > { %5194 = vmatpush3.bf16.msra.mxu1 %v5752_v43  ;;  %v5772_v43 = vld [vmem:[#allocation16 + $0x20] sm:$0xff]  }
 0x9e0   : > { %5195 = vmatprep.subr.bf16.mxu1 %v5754_v45  ;;  %v5775_v45 = vld [vmem:[#allocation16 + $0x8] sm:$0xff]  }
 0x9e3   : > { %5196 = vmatpush3.bf16.msra.mxu1 %v5756_v7  ;;  %v5777_v7 = vld [vmem:[#allocation17 + $0x38] sm:$0xff]  }
 0x9e4   : > { %5197 = vmatprep.subr.bf16.mxu1 %v5758_v55  ;;  %v5779_v55 = vld [vmem:[#allocation17 + $0x28] sm:$0xff]  }
 0x9e7   : > { %5198 = vmatpush3.bf16.msra.mxu1 %v5760_v56  ;;  %v5781_v56 = vld [vmem:[#allocation17 + $0x18] sm:$0xff]  }
 0x9e8   : > { %5199 = vmatprep.subr.bf16.mxu1 %v5761_v58  ;;  %v5782_v58 = vld [vmem:[#allocation17 + $0x10] sm:$0xff]  }
 0x9eb   : > { %5200 = vmatpush3.bf16.msra.mxu1 %v5762_v59 }
 0x9ec   : > { %5201 = vmatprep.subr.bf16.mxu1 %v5763_v60 }
 0x9ef   : > { %5202 = vmatpush3.bf16.msra.mxu1 %v5764_v16 }
 0x9f0   : > { %5203 = vmatprep.subr.bf16.mxu1 %v5765_v5 }
 0x9f3   : > { %5204 = vmatpush3.bf16.msra.mxu1 %v5766_v61  ;;  %v5066_v61 = vld [vmem:[%s6945_s16] ss:$0 sm:$0xff] }
 0x9f4   : > { %5205 = vmatprep.subr.bf16.mxu1 %v5767_v62 }
 0x9f7   : > { %5206 = vmatpush3.bf16.msra.mxu1 %v5768_v63  ;;  %v5067_v63 = vld [vmem:[%s6946_s17] ss:$0 sm:$0xff] }
 0x9f8   : > { %5347 = vmatprep.subr.bf16.mxu1 %v6199_v38 }
 0xa82   : > { %v3640_v8 = vpop.f32.mrf.mxu1 }
 0xa83   : > { %v3995_v0 = vpack.c.bf16 %v3640_v8, %v3640_v8 }
 0xa84   : > { %v5289_v9 = vpop.f32.mrf.mxu1 }
 0xa86   : > { %v3643_v24 = vpop.f32.mrf.mxu1 }
 0xa88   : > { %v5290_v10 = vpop.f32.mrf.mxu1 }
 0xa89   : > { %v5783_v10 = vld [vmem:[#allocation17 + $0x8] sm:$0xff]  }
 0xa8a   : > { %v3735_v12 = vpop.f32.mrf.mxu1 }
 0xa8b   : > { %v3996_v13 = vpack.c.bf16 %v3735_v12, %v3735_v12  ;;  %v5784_v12 = vld [vmem:[#allocation17] sm:$0xff]  }
 0xa8c   : > { %v5301_v15 = vpop.f32.mrf.mxu1 }
 0xa8d   : > { %4230 = vmatprep.mubr.bf16.mxu0 %v3996_v13  ;;  %v5068_v13 = vld [vmem:[%s7030_s20] ss:$0 sm:$0xff]  ;;  %s6088_s20 = scalar_lea.vmem %s4579_s3, 128 }
 0xa8e   : > { %v3738_v48 = vpop.f32.mrf.mxu1  ;;  %4231 = vmatmul.mubr.bf16.vlgmr.msra.gmra.mxu0 %v3995_v0  ;;  %p6089_p2 = scmp.ne.s32.totalorder %s4579_s3, %s6088_s20  ;;  %p6096_p10 = scmp.lt.s32.totalorder %s6094_s29, %s6088_s20 }
 0xa8f   : > { %5343 = vmatprep.mubr.msk.bf16.mxu0 %vm6200_vm0, %v6199_v38  ;;  %5328 = vmatpush3.bf16.msra.mxu0 %v5769_v37 }
 0xa90   : > { %v5302_v17 = vpop.f32.mrf.mxu1  ;;  %5329 = vmatprep.subr.bf16.mxu0 %v6199_v38  ;;  %p6090_p9 = pnand %p6089_p2, %p7035_p5  ;;  %p6097_p13 = por %p6096_p10, %p6095_p8 }
 0xa92   : > { %v3830_v18 = vpop.f32.mrf.mxu1  ;;  %p6091_p3 = pneg %p6090_p9 }
 0xa93   : > { %v3997_v23 = vpack.c.bf16 %v3830_v18, %v3830_v18  ;;  %5330 = vmatpush3.bf16.msra.mxu0 %v5770_v47 }
 0xa94   : > { %v5313_v46 = vpop.f32.mrf.mxu1  ;;  %5331 = vmatprep.subr.bf16.mxu0 %v6199_v38  ;;  %p6098_p0 = pnand %p6097_p13, %p6091_p3 }
 0xa96   : > { %v3833_v19 = vpop.f32.mrf.mxu1 }
 0xa97   : > { %5332 = vmatpush3.bf16.msra.mxu0 %v5771_v41 }
 0xa98   : > { %v5314_v20 = vpop.f32.mrf.mxu1  ;;  %5333 = vmatprep.subr.bf16.mxu0 %v6199_v38 }
 0xa99   : > { %v5077_v20 = vld [vmem:[%s7031_s19] ss:$0 sm:$0xff] }
 0xa9a   : > { %v3925_v22 = vpop.f32.mrf.mxu1 }
 0xa9b   : > { %v3998_v42 = vpack.c.bf16 %v3925_v22, %v3925_v22  ;;  %5334 = vmatpush3.bf16.msra.mxu0 %v5772_v43 }
 0xa9c   : > { %v5325_v25 = vpop.f32.mrf.mxu1  ;;  %5335 = vmatprep.subr.bf16.mxu0 %v6199_v38 }
 0xa9d   : > { %4270 = vmatprep.mubr.bf16.mxu1 %v3998_v42 }
 0xa9e   : > { %v3928_v3 = vpop.f32.mrf.mxu1  ;;  %4271 = vmatmul.mubr.bf16.vlgmr.msra.gmra.mxu1 %v3997_v23 }
 0xa9f   : > { %5363 = vmatprep.mubr.msk.bf16.mxu1 %vm6200_vm0, %v6199_v38  ;;  %5348 = vmatpush3.bf16.msra.mxu1 %v5777_v7 }
 0xaa0   : > { %v5326_v26 = vpop.f32.mrf.mxu1  ;;  %5349 = vmatprep.subr.bf16.mxu1 %v6199_v38 }
 0xaa3   : > { %5350 = vmatpush3.bf16.msra.mxu1 %v5778_v50 }
 0xaa4   : > { %5351 = vmatprep.subr.bf16.mxu1 %v6199_v38 }
 0xaa7   : > { %5352 = vmatpush3.bf16.msra.mxu1 %v5779_v55 }
 0xaa8   : > { %5353 = vmatprep.subr.bf16.mxu1 %v6199_v38 }
 0xaab   : > { %5354 = vmatpush3.bf16.msra.mxu1 %v5780_v57 }
 0xaac   : > { %5355 = vmatprep.subr.bf16.mxu1 %v6199_v38 }
 0xaaf   : > { %5356 = vmatpush3.bf16.msra.mxu1 %v5781_v56 }
 0xab0   : > { %5357 = vmatprep.subr.bf16.mxu1 %v6199_v38 }
 0xab3   : > { %5358 = vmatpush3.bf16.msra.mxu1 %v5782_v58 }
 0xab4   : > { %5359 = vmatprep.subr.bf16.mxu1 %v6199_v38 }
 0xab7   : > { %5360 = vmatpush3.bf16.msra.mxu1 %v5783_v10 }
 0xab8   : > { %5361 = vmatprep.subr.bf16.mxu1 %v6199_v38 }
 0xabb   : > { %5362 = vmatpush3.bf16.msra.mxu1 %v5784_v12 }
 0xb4e   : > { %v5185_v51 = vpop.f32.mrf.mxu0 }
 0xb50   : > { %v5186_v27 = vpop.f32.mrf.mxu0 }
 0xb51   : > { %v5187_v28 = vadd.f32 %v5186_v27, %v5185_v51 }
 0xb52   : > { %v5188_v6 = vpop.f32.mrf.mxu0 }
 0xb53   : > { %v4233_v2 = vadd.f32 %v5187_v28, %v5033_v29 }
 0xb54   : > { %v5189_v11 = vpop.f32.mrf.mxu0 }
 0xb5e   : > { %v5207_v1 = vpop.f32.mrf.mxu1 }
 0xb60   : > { %v5208_v30 = vpop.f32.mrf.mxu1 }
 0xb61   : > { %v5209_v31 = vadd.f32 %v5208_v30, %v5207_v1 }
 0xb62   : > { %v5210_v32 = vpop.f32.mrf.mxu1 }
 0xb63   : > { %v4273_v33 = vadd.f32 %v5209_v31, %v4233_v2  ;;  %v5086_v2 = vld [vmem:[%s7032_s1] ss:$0 sm:$0xff] }
 0xb64   : > { %v5211_v34 = vpop.f32.mrf.mxu1  ;;  %v5087_v32 = vld [vmem:[%s7033_s8] ss:$0 sm:$0xff] }
 0xb65   : > { %v4278_v35 = vmul.f32 %v4273_v33, %v6636_v52 }
 0xb67   : > { %v4279_v4 = vadd.f32 %v4278_v35, %v6747_v36  ;;  %v5773_v36 = vld [vmem:[#allocation16 + $0x18] sm:$0xff]  }
 0xb68   : > { %5336 = vmatpush3.bf16.msra.mxu0 %v5773_v36 }
 0xb69   : > { %4282 = vadd.xlane.f32.xlu0 %v4279_v4  ;;  %5337 = vmatprep.subr.bf16.mxu0 %v6199_v38 }
 0xb6c   : > { %5338 = vmatpush3.bf16.msra.mxu0 %v5774_v44 }
 0xb6d   : > { %5339 = vmatprep.subr.bf16.mxu0 %v6199_v38 }
 0xb70   : > { %5340 = vmatpush3.bf16.msra.mxu0 %v5775_v45 }
 0xb71   : > { %5341 = vmatprep.subr.bf16.mxu0 %v6199_v38 }
 0xb74   : > { %5342 = vmatpush3.bf16.msra.mxu0 %v5776_v49 }
 0xbf2   : > { %v4283_v14 = vpop.xlane.xlu0 %4282 }
 0xbf3   : > { %v4284_v21 = vmul.f32 0.03125, %v4283_v14 }
 0xbf5   : > { %v4285_v39 = vsub.f32 %v4279_v4, %v4284_v21 }
 0xbf7   : > { %v4286_v53 = vmul.f32 %v6733_v54, %v4285_v39 }
 0xbf9   : > { %v4287_v40 = vmul.f32 %v4286_v53, %v4286_v53 }
 0xbfb   : > { %4288 = vadd.xlane.f32.xlu1 %v4287_v40 }
 0xc84   : > { %v4289_v59 = vpop.xlane.xlu1 %4288 }
 0xc85   : > { %v4290_v60 = vmul.f32 0.03125, %v4289_v59 }
 0xc87   : > { %v4291_v16 = vadd.f32 1e-06, %v4290_v60 }
 0xc89   : > { %5819 = vrsqrt.f32 %v4291_v16 }
 0xc96   : > { %v5820_v5 = vpop.eup %5819 }
 0xc97   : > { %v4293_v62 = vmul.f32 %v5820_v5, %v4286_v53 }
 0xc99   : > { %v4300_v8 = vmul.f32 %v5066_v61, %v4293_v62 }
 0xc9b   : > { %v4307_v9 = vadd.f32 %v5067_v63, %v4300_v8 }
 0xc9d   : > { %v4324_v24 = vpack.c.bf16 %v4307_v9, %v4307_v9 }
 0xc9f   : > { %5344 = vmatmul.mubr.bf16.vlgmr.msra.gmra.mxu0 %v4324_v24 }
 0xd5f   : > { %v4414_v0 = vpop.f32.mrf.mxu0 }
 0xd60   : > { %v4415_v15 = vadd.f32 %v5068_v13, %v4414_v0 }
 0xd61   : > { %v5345_v48 = vpop.f32.mrf.mxu0 }
 0xd62   : > { %v4420_v17 = vmax.f32 %v4415_v15, 0.0 }
 0xd63   : > { %v4417_v18 = vpop.f32.mrf.mxu0 }
 0xd64   : > { %v4437_v46 = vpack.c.bf16 %v4420_v17, %v4420_v17 }
 0xd65   : > { %v5346_v19 = vpop.f32.mrf.mxu0 }
 0xd66   : > { %5364 = vmatmul.mubr.bf16.vlgmr.msra.gmra.mxu1 %v4437_v46 }
 0xe26   : > { %v4527_v22 = vpop.f32.mrf.mxu1 }
 0xe27   : > { %v4528_v38 = vadd.f32 %v5077_v20, %v4527_v22 }
 0xe28   : > { %v5365_v42 = vpop.f32.mrf.mxu1 }
 0xe29   : > { %v4533_v23 = vmul.f32 %v4528_v38, %v6636_v52 }
 0xe2a   : > { %v4530_v25 = vpop.f32.mrf.mxu1 }
 0xe2b   : > { %v4534_v3 = vadd.f32 %v4533_v23, %v4307_v9 }
 0xe2c   : > { %v5366_v26 = vpop.f32.mrf.mxu1 }
 0xe2d   : > { %4537 = vadd.xlane.f32.xlu0 %v4534_v3 }
 0xeb6   : > { %v4538_v51 = vpop.xlane.xlu0 %4537 }
 0xeb7   : > { %v4539_v27 = vmul.f32 0.03125, %v4538_v51 }
 0xeb9   : > { %v4540_v6 = vsub.f32 %v4534_v3, %v4539_v27 }
 0xebb   : > { %v4541_v11 = vmul.f32 %v6733_v54, %v4540_v6 }
 0xebd   : > { %v4542_v28 = vmul.f32 %v4541_v11, %v4541_v11 }
 0xebf   : > { %4543 = vadd.xlane.f32.xlu1 %v4542_v28 }
 0xf48   : > { %v4544_v29 = vpop.xlane.xlu1 %4543 }
 0xf49   : > { %v4545_v1 = vmul.f32 0.03125, %v4544_v29 }
 0xf4b   : > { %v4546_v30 = vadd.f32 1e-06, %v4545_v1 }
 0xf4d   : > { %5821 = vrsqrt.f32 %v4546_v30 }
 0xf5a   : > { %v5822_v52 = vpop.eup %5821 }
 0xf5b   : > { %v4548_v31 = vmul.f32 %v5822_v52, %v4541_v11 }
 0xf5d   : > { %v4555_v54 = vmul.f32 %v5086_v2, %v4548_v31 }
 0xf5f   : > { %v4562_v33 = vadd.f32 %v5087_v32, %v4555_v54 }
 0xf61   : > { %4563 = vst [vmem:[%s929_s14] sm:$0xff] %v4562_v33 }
 0xf62   : > { %6101 = shalt.err (!%p6098_p0)
}
 0xf63   : > { %s6102_s19 = scalar_lea.hbm %s4576_s24, 128  ;;  %s6106_s27 = scalar_lea.hbm %s7034_s30, 256 }
 0xf64   : > { %p6103_p4 = scmp.ne.s32.totalorder %s4576_s24, %s6102_s19  ;;  %p6107_p11 = scmp.lt.s32.totalorder %s4576_s24, %s7034_s30 }
 0xf65   : > { %p6108_p12 = scmp.lt.s32.totalorder %s6106_s27, %s6102_s19 }
 0xf66   : > { %p6104_p1 = pnand %p6103_p4, %p7035_p5 }
 0xf67   : > { %p6109_p6 = por %p6108_p12, %p6107_p11 }
 0xf68   : > { %p6105_p7 = pneg %p6104_p1 }
 0xf6a   : > { %p6110_p2 = pnand %p6109_p6, %p6105_p7 }
 0xf6c   : > { %6113 = shalt.err (!%p6110_p2)
}
 0xf6d   : > { %5403 = dma.vmem_to_hbm [thread:$0]  (%p7035_p5), %s4579_s3, 128, %s4576_s24, %s4565_s2  }
 0xf6e PF: > { %s7036_s7 = sld [smem:[#allocation28_spill]]  ;;  %p7039_p3 = scmp.ge.s32.totalorder %s6176_s28, 2 }
 0xf6f   : > { %s7037_s21 = sld [smem:[#allocation32_spill]] }
 0xf74   : > { %s4590_s8 = sand.u32 1, %s7036_s7  }
 0xf75   : > { %p7038_p9 = scmp.ne.s32.totalorder %s7037_s21, 0  ;;  %s4591_s0 = scalar_lea.sflag [#allocation4], %s4590_s8 }
 0xf77   : > { %p5438_p8 = pnand %p7039_p3, %p7038_p9 }
 0xf79   : > { %p5439_p10 = pneg %p5438_p8 }
 0xf7b   : > { %6159 = dma.done.wait (%p5439_p10), %s4591_s0, 128  }
 0xf7c   : > { %6161 = vsyncadd (%p5439_p10), %s4591_s0, 4294967168  ;;  %s7040_s28 = sld [smem:[#allocation30_spill]]  ;;  %s7043_s5 = smov %s6168_s26 }
 0xf7d   : > { %s7041_s14 = sld [smem:[#allocation29_spill]] }
 0xf7e   : > { %s7042_s27 = sld [smem:[#allocation31_spill]] }
 0xf82   : > { %p44_p13 = scmp.ge.s32.totalorder %s7040_s28, 4  }
 0xf83   : > { %s7044_s26 = smov %s7041_s14 }
 0xf84   :  { %46 = sbr.rel (!%p44_p13) target bundleno = 31 (0x1f), region = 212 }
 0xf89   :  { %4596 = vsyncpa [#allocation3], 1 }
 0xf8a   :  { %4598 = vsyncpa [#allocation3 + $0x1], 1 }
 0xf8b   :  { %4599 = vsyncpa [#allocation6], 1 }
 0xf8c   :  { %4601 = vsyncpa [#allocation6 + $0x1], 1 }
 0xf8d   :  { %4602 = vsyncpa [#allocation9], 1 }
 0xf8e   :  { %4603 = vsyncpa [#allocation12], 1 }
 0xf8f   :  { %4604 = vsyncpa [#allocation15], 1 }
 0xf90   :  { %4605 = vsyncpa [#allocation18], 1 }
 0xf91   :  { %4606 = vsyncpa [#allocation4], 1 }
 0xf92   :  { %4608 = vsyncpa [#allocation4 + $0x1], 1 }

</bundles_post_ra>
